<compile_context>
chip_gen: v7x
topology: tpu7x:2x2x1
jax: 0.10.0
libtpu: 0.0.40
codegen_flags: <defaults>
</compile_context>

<pallas_src>
import functools

import jax
import jax.numpy as jnp
from jax.experimental import pallas as pl
from jax.experimental.pallas import tpu as pltpu


# ----------------------------------------------------------------------------
# Fused kernel. grid = (N, H2 // tH):
#   axis 0 (batch)  -> "parallel"
#   axis 1 (rows)   -> "arbitrary" (sequential; shares the per-batch VMEM slab)
# ----------------------------------------------------------------------------
def decoder_fused_kernel(x1_ref, x2_ref, wup_ref, bup_ref, wcv_ref, bcv_ref,
                         out_ref, slab, *, H, H2, W2, tH, C_out, C_mid):
    t = pl.program_id(1)

    # ---- per-batch prologue: build the zero-padded [up | skip] slab in VMEM
    @pl.when(t == 0)
    def _build_slab():
        # zero only the 1-pixel halo (conv padding); the interior is fully
        # overwritten below, the lane padding beyond C_mid is never contracted.
        zr = jnp.zeros((1, W2 + 2, C_mid), slab.dtype)
        zc = jnp.zeros((H2 + 2, 1, C_mid), slab.dtype)
        slab[0:1, :, :] = zr
        slab[H2 + 1:H2 + 2, :, :] = zr
        slab[:, 0:1, :] = zc
        slab[:, W2 + 1:W2 + 2, :] = zc

        # ConvTranspose2d(k=2, s=2):
        #   up[2i+di, 2j+dj, :] = x1[i, j, :] @ w_up[:, :, di, dj] + b_up
        # x1 arrives width-doubled as (H*W2, Cin) bf16; column parity dj is a
        # single VPU select, row parity di a leading-dim interleave.
        x1w = x1_ref[0]                                       # (H*W2, Cin)
        p = jax.lax.broadcasted_iota(jnp.int32, (H * W2, 1), 0)
        col_par = p % 2                   # == (p % W2) % 2 because W2 is even
        bup = bup_ref[...]                                    # (1, C_out) f32
        rows = []
        for di in range(2):
            y0 = jnp.dot(x1w, wup_ref[2 * di + 0],
                         preferred_element_type=jnp.float32)
            y1 = jnp.dot(x1w, wup_ref[2 * di + 1],
                         preferred_element_type=jnp.float32)
            ydi = jnp.where(col_par == 0, y0, y1) + bup       # (H*W2, C_out)
            rows.append(ydi.reshape(H, W2, C_out))
        up = jnp.stack(rows, axis=1).reshape(H2, W2, C_out)   # row interleave
        slab[1:H2 + 1, 1:W2 + 1, :C_out] = up.astype(slab.dtype)
        slab[1:H2 + 1, 1:W2 + 1, C_out:] = x2_ref[0].astype(slab.dtype)

    # ---- 3x3 conv + bias + ReLU over output rows [t*tH, (t+1)*tH),
    #      channel-major so the store is lane-dense and NCHW-native.
    row0 = pl.multiple_of(t * tH, tH)
    acc = jnp.broadcast_to(bcv_ref[...], (C_out, tH * W2))    # bias hoisted, f32
    for k in range(9):                                        # tap k = dy*3 + dx
        dy, dx = k // 3, k % 3
        win = slab[pl.ds(row0 + dy, tH), pl.ds(dx, W2), :]    # (tH, W2, C_mid)
        win2 = win.reshape(tH * W2, C_mid)      # W2 is a sublane-tile multiple
        # (C_out, C_mid) x (tH*W2, C_mid)^T -> (C_out, tH*W2)   [A @ B^T on MXU]
        acc = acc + jax.lax.dot_general(
            wcv_ref[k], win2, (((1,), (1,)), ((), ())),
            preferred_element_type=jnp.float32)
    out_ref[0] = jnp.maximum(acc, 0.0).astype(out_ref.dtype)


# ----------------------------------------------------------------------------
# Wrapper reproducing Decoder.forward(x1, x2)  (NCHW in / NCHW out)
# ----------------------------------------------------------------------------
def decoder_forward(x1_nchw, x2_nchw, params, *, row_tile=None):
    w_up, b_up = params["w_up"], params["b_up"]          # (Cin,Cout,2,2), (Cout,)
    w_conv, b_conv = params["w_conv"], params["b_conv"]  # (Cout,Cmid,3,3), (Cout,)

    N, C_in, H, W = x1_nchw.shape
    C_out = w_up.shape[1]
    C_skip = x2_nchw.shape[1]
    C_mid = C_out + C_skip
    H2, W2 = 2 * H, 2 * W
    assert w_conv.shape == (C_out, C_mid, 3, 3)
    assert x2_nchw.shape == (N, C_skip, H2, W2)

    # Row tile: target tH*W2 ~ 256 (v6e/v7x MXU M dim); use 128//W2 on v5e.
    if row_tile is None:
        row_tile = max(1, min(H2, 256 // W2))
    tH = max(1, min(H2, row_tile))
    while H2 % tH:          # largest divisor of H2 not above the target
        tH -= 1
    HT = H2 // tH

    # --- boundary layout glue only (bf16 operands halve the DMA bytes) ------
    # width-double x1 (2x, not 4x) so the kernel resolves column parity with a
    # mask and row parity with a leading-dim interleave.
    x1_w = jnp.repeat(x1_nchw, 2, axis=3)                         # (N,Cin,H,W2)
    x1_w = jnp.transpose(x1_w, (0, 2, 3, 1)).reshape(N, H * W2, C_in)
    x1_w = x1_w.astype(jnp.bfloat16)
    x2_nhwc = jnp.transpose(x2_nchw, (0, 2, 3, 1)).astype(jnp.bfloat16)

    # --- weights -------------------------------------------------------------
    w_up_k = jnp.transpose(w_up, (2, 3, 0, 1)).reshape(4, C_in, C_out)
    w_up_k = w_up_k.astype(jnp.bfloat16)                          # k = di*2+dj
    b_up_m = b_up.reshape(1, C_out).astype(jnp.float32)
    # conv taps, channel-major lhs (C_out, C_mid) per tap; the channel concat
    # is implicit in the slab layout [up | skip].
    w_cv_k = jnp.transpose(w_conv, (2, 3, 0, 1)).reshape(9, C_out, C_mid)
    w_cv_k = w_cv_k.astype(jnp.bfloat16)                          # k = dy*3+dx
    b_cv_m = b_conv.reshape(C_out, 1).astype(jnp.float32)

    kernel = functools.partial(decoder_fused_kernel, H=H, H2=H2, W2=W2, tH=tH,
                               C_out=C_out, C_mid=C_mid)

    out_flat = pl.pallas_call(
        kernel,
        out_shape=jax.ShapeDtypeStruct((N, C_out, H2 * W2), jnp.float32),
        grid_spec=pltpu.PrefetchScalarGridSpec(
            num_scalar_prefetch=0,
            grid=(N, HT),
            in_specs=[
                pl.BlockSpec((1, H * W2, C_in), lambda n, t: (n, 0, 0)),
                pl.BlockSpec((1, H2, W2, C_skip), lambda n, t: (n, 0, 0, 0)),
                pl.BlockSpec((4, C_in, C_out), lambda n, t: (0, 0, 0)),
                pl.BlockSpec((1, C_out), lambda n, t: (0, 0)),
                pl.BlockSpec((9, C_out, C_mid), lambda n, t: (0, 0, 0)),
                pl.BlockSpec((C_out, 1), lambda n, t: (0, 0)),
            ],
            out_specs=pl.BlockSpec((1, C_out, tH * W2), lambda n, t: (n, 0, t)),
            scratch_shapes=[
                pltpu.VMEM((H2 + 2, W2 + 2, C_mid), jnp.bfloat16),  # [up|skip]
            ],
        ),
        compiler_params=pltpu.CompilerParams(
            # axis 1 must stay "arbitrary": row tiles t>0 reuse the slab
            # built at t == 0 of the same batch element.
            dimension_semantics=("parallel", "arbitrary"),
            vmem_limit_bytes=32 * 1024 * 1024),
    )(x1_w, x2_nhwc, w_up_k, b_up_m, w_cv_k, b_cv_m)

    return out_flat.reshape(N, C_out, H2, W2)      # NCHW-native, no transpose


# ----------------------------------------------------------------------------
# Pure-JAX (lax conv) reference for verification of the Pallas path.
# ----------------------------------------------------------------------------
def decoder_reference(x1, x2, params):
    w_up, b_up = params["w_up"], params["b_up"]
    w_conv, b_conv = params["w_conv"], params["b_conv"]
    # ConvTranspose2d(k=2,s=2) == lhs-dilated conv with spatially flipped,
    # IO-swapped kernel and padding k-1 on each side.
    k = jnp.transpose(jnp.flip(w_up, (2, 3)), (1, 0, 2, 3))   # (Cout,Cin,2,2)
    up = jax.lax.conv_general_dilated(
        x1, k, window_strides=(1, 1), padding=((1, 1), (1, 1)),
        lhs_dilation=(2, 2),
        dimension_numbers=("NCHW", "OIHW", "NCHW")) + b_up[None, :, None, None]
    cat = jnp.concatenate([up, x2], axis=1)
    out = jax.lax.conv_general_dilated(
        cat, w_conv, window_strides=(1, 1), padding=((1, 1), (1, 1)),
        dimension_numbers=("NCHW", "OIHW", "NCHW")) + b_conv[None, :, None, None]
    return jnp.maximum(out, 0.0)


if __name__ == "__main__":
    # Shapes consistent with the module:
    #   in_channels=8, middle_channels=8, out_channels=4
    #   x1: (2, 8, 8, 8)  -> upsampled to (2, 4, 16, 16)
    #   x2: (2, 4, 16, 16) skip connection
    N, C_in, H, W = 2, 8, 8, 8
    C_out, C_skip = 4, 4
    C_mid = C_out + C_skip

    key = jax.random.PRNGKey(0)
    k1, k2, k3, k4, k5, k6 = jax.random.split(key, 6)
    x1 = jax.random.normal(k1, (N, C_in, H, W), jnp.float32)
    x2 = jax.random.normal(k2, (N, C_skip, 2 * H, 2 * W), jnp.float32)

    params = {
        "w_up":   0.1 * jax.random.normal(k3, (C_in, C_out, 2, 2), jnp.float32),
        "b_up":   0.1 * jax.random.normal(k4, (C_out,), jnp.float32),
        "w_conv": 0.1 * jax.random.normal(k5, (C_out, C_mid, 3, 3), jnp.float32),
        "b_conv": 0.1 * jax.random.normal(k6, (C_out,), jnp.float32),
    }

    fwd = jax.jit(decoder_forward)
    out = jax.block_until_ready(fwd(x1, x2, params))

    # f32 lax reference on bf16-rounded inputs/weights (the kernel uses bf16
    # MXU operands with f32 accumulation), biases kept f32 as in the kernel.
    rnd = lambda a: a.astype(jnp.bfloat16).astype(jnp.float32)
    params_r = {name: (rnd(v) if name.startswith("w_") else v)
                for name, v in params.items()}
    ref = jax.block_until_ready(decoder_reference(rnd(x1), rnd(x2), params_r))

    assert out.shape == (N, C_out, 2 * H, 2 * W), out.shape
    assert jnp.allclose(out, ref, atol=2e-2, rtol=2e-2), \
        float(jnp.max(jnp.abs(out - ref)))
    print("KERNEL_OK")
</pallas_src>

<mosaic_0001>
module attributes {stable_mosaic.version = 11 : i64} {
  func.func @decoder_fused_kernel(%arg0: i32, %arg1: i32, %arg2: memref<1x128x8xbf16, #tpu.memory_space<vmem>>, %arg3: memref<1x16x16x4xbf16, #tpu.memory_space<vmem>>, %arg4: memref<4x8x4xbf16, #tpu.memory_space<vmem>>, %arg5: memref<1x4xf32, #tpu.memory_space<vmem>>, %arg6: memref<9x4x8xbf16, #tpu.memory_space<vmem>>, %arg7: memref<4x1xf32, #tpu.memory_space<vmem>>, %arg8: memref<1x4x256xf32, #tpu.memory_space<vmem>>, %arg9: memref<18x18x8xbf16, #tpu.memory_space<vmem>>) attributes {dimension_semantics = [#tpu.dimension_semantics<parallel>, #tpu.dimension_semantics<arbitrary>], iteration_bounds = array<i64: 2, 1>, scalar_prefetch = 0 : i64, scratch_operands = 1 : i64, tpu.core_type = #tpu.core_type<tc>, window_params = [{transform_indices = @transform_0, window_bounds = array<i64: 1, 128, 8>}, {transform_indices = @transform_1, window_bounds = array<i64: 1, 16, 16, 4>}, {pipeline_mode = #tpu.pipeline_mode<synchronous>, transform_indices = @transform_2, window_bounds = array<i64: 4, 8, 4>}, {pipeline_mode = #tpu.pipeline_mode<synchronous>, transform_indices = @transform_3, window_bounds = array<i64: 1, 4>}, {pipeline_mode = #tpu.pipeline_mode<synchronous>, transform_indices = @transform_4, window_bounds = array<i64: 9, 4, 8>}, {pipeline_mode = #tpu.pipeline_mode<synchronous>, transform_indices = @transform_5, window_bounds = array<i64: 4, 1>}, {transform_indices = @transform_6, window_bounds = array<i64: 1, 4, 256>}]} {
    %c0_i32 = arith.constant 0 : i32
    %0 = arith.cmpi eq, %arg1, %c0_i32 : i32
    %1 = arith.extui %0 : i1 to i32
    %c0_i32_0 = arith.constant 0 : i32
    %2 = arith.cmpi ne, %1, %c0_i32_0 : i32
    scf.if %2 {
      %cst_58 = arith.constant 0.000000e+00 : bf16
      %85 = vector.broadcast %cst_58 : bf16 to vector<1x18x8xbf16>
      %cst_59 = arith.constant 0.000000e+00 : bf16
      %86 = vector.broadcast %cst_59 : bf16 to vector<18x1x8xbf16>
      %c0_60 = arith.constant 0 : index
      %c0_61 = arith.constant 0 : index
      %c0_62 = arith.constant 0 : index
      %87 = vector.load %arg9[%c0_60, %c0_61, %c0_62] : memref<18x18x8xbf16, #tpu.memory_space<vmem>>, vector<1x18x8xbf16>
      tpu.vector_store %arg9[%c0_60, %c0_61, %c0_62], %85 {strides = array<i32>} : memref<18x18x8xbf16, #tpu.memory_space<vmem>>, vector<1x18x8xbf16>,
      %c17 = arith.constant 17 : index
      %c0_63 = arith.constant 0 : index
      %c0_64 = arith.constant 0 : index
      %88 = vector.load %arg9[%c17, %c0_63, %c0_64] : memref<18x18x8xbf16, #tpu.memory_space<vmem>>, vector<1x18x8xbf16>
      tpu.vector_store %arg9[%c17, %c0_63, %c0_64], %85 {strides = array<i32>} : memref<18x18x8xbf16, #tpu.memory_space<vmem>>, vector<1x18x8xbf16>,
      %c0_65 = arith.constant 0 : index
      %c0_66 = arith.constant 0 : index
      %c0_67 = arith.constant 0 : index
      %89 = vector.load %arg9[%c0_65, %c0_66, %c0_67] : memref<18x18x8xbf16, #tpu.memory_space<vmem>>, vector<18x1x8xbf16>
      tpu.vector_store %arg9[%c0_65, %c0_66, %c0_67], %86 {strides = array<i32>} : memref<18x18x8xbf16, #tpu.memory_space<vmem>>, vector<18x1x8xbf16>,
      %c0_68 = arith.constant 0 : index
      %c17_69 = arith.constant 17 : index
      %c0_70 = arith.constant 0 : index
      %90 = vector.load %arg9[%c0_68, %c17_69, %c0_70] : memref<18x18x8xbf16, #tpu.memory_space<vmem>>, vector<18x1x8xbf16>
      tpu.vector_store %arg9[%c0_68, %c17_69, %c0_70], %86 {strides = array<i32>} : memref<18x18x8xbf16, #tpu.memory_space<vmem>>, vector<18x1x8xbf16>,
      %c0_71 = arith.constant 0 : index
      %c0_72 = arith.constant 0 : index
      %c0_73 = arith.constant 0 : index
      %91 = vector.load %arg2[%c0_71, %c0_72, %c0_73] : memref<1x128x8xbf16, #tpu.memory_space<vmem>>, vector<1x128x8xbf16>
      %92 = vector.shape_cast %91 : vector<1x128x8xbf16> to vector<128x8xbf16>
      %93 = tpu.iota {dimensions = array<i32: 0>} : vector<128x1xi32>
      %c2_i32_74 = arith.constant 2 : i32
      %c0_i32_75 = arith.constant 0 : i32
      %94 = arith.cmpi eq, %c2_i32_74, %c0_i32_75 : i32
      %c1_i32_76 = arith.constant 1 : i32
      %95 = arith.select %94, %c1_i32_76, %c2_i32_74 : i32
      %96 = vector.broadcast %95 : i32 to vector<128x1xi32>
      %97 = arith.remsi %93, %96 : vector<128x1xi32>
      %c0_i32_77 = arith.constant 0 : i32
      %98 = vector.broadcast %c0_i32_77 : i32 to vector<128x1xi32>
      %99 = arith.cmpi ne, %97, %98 : vector<128x1xi32>
      %c0_i32_78 = arith.constant 0 : i32
      %100 = vector.broadcast %c0_i32_78 : i32 to vector<128x1xi32>
      %101 = arith.cmpi slt, %97, %100 : vector<128x1xi32>
      %c0_i32_79 = arith.constant 0 : i32
      %102 = arith.cmpi slt, %95, %c0_i32_79 : i32
      %103 = vector.broadcast %102 : i1 to vector<128x1xi1>
      %104 = vector.broadcast %103 : vector<128x1xi1> to vector<128x1xi1>
      %105 = arith.xori %101, %104 : vector<128x1xi1>
      %106 = arith.andi %105, %99 : vector<128x1xi1>
      %107 = vector.broadcast %95 : i32 to vector<128x1xi32>
      %108 = arith.addi %97, %107 : vector<128x1xi32>
      %109 = arith.select %106, %108, %97 : vector<128x1xi1>, vector<128x1xi32>
      %c0_80 = arith.constant 0 : index
      %c0_81 = arith.constant 0 : index
      %110 = vector.load %arg5[%c0_80, %c0_81] : memref<1x4xf32, #tpu.memory_space<vmem>>, vector<1x4xf32>
      %c0_82 = arith.constant 0 : index
      %c0_83 = arith.constant 0 : index
      %c0_84 = arith.constant 0 : index
      %111 = vector.load %arg4[%c0_82, %c0_83, %c0_84] : memref<4x8x4xbf16, #tpu.memory_space<vmem>>, vector<1x8x4xbf16>
      %112 = vector.shape_cast %111 : vector<1x8x4xbf16> to vector<8x4xbf16>
      %cst_85 = arith.constant dense<0.000000e+00> : vector<128x4xf32>
      %113 = tpu.matmul %92, %112, %cst_85 {dimension_numbers = #tpu.dot_dimension_numbers<[1], [0], [0], [1], [0, 0, 1, 1], [], []>} : vector<128x8xbf16>, vector<8x4xbf16>, vector<128x4xf32> -> vector<128x4xf32>
      %c1_86 = arith.constant 1 : index
      %c0_87 = arith.constant 0 : index
      %c0_88 = arith.constant 0 : index
      %114 = vector.load %arg4[%c1_86, %c0_87, %c0_88] : memref<4x8x4xbf16, #tpu.memory_space<vmem>>, vector<1x8x4xbf16>
      %115 = vector.shape_cast %114 : vector<1x8x4xbf16> to vector<8x4xbf16>
      %cst_89 = arith.constant dense<0.000000e+00> : vector<128x4xf32>
      %116 = tpu.matmul %92, %115, %cst_89 {dimension_numbers = #tpu.dot_dimension_numbers<[1], [0], [0], [1], [0, 0, 1, 1], [], []>} : vector<128x8xbf16>, vector<8x4xbf16>, vector<128x4xf32> -> vector<128x4xf32>
      %c0_i32_90 = arith.constant 0 : i32
      %117 = vector.broadcast %c0_i32_90 : i32 to vector<128x1xi32>
      %118 = arith.cmpi eq, %109, %117 : vector<128x1xi32>
      %119 = vector.shape_cast %118 : vector<128x1xi1> to vector<128x1xi1>
      %120 = vector.broadcast %119 : vector<128x1xi1> to vector<128x4xi1>
      %121 = arith.select %120, %113, %116 : vector<128x4xi1>, vector<128x4xf32>
      %122 = vector.broadcast %110 : vector<1x4xf32> to vector<128x4xf32>
      %123 = arith.addf %121, %122 : vector<128x4xf32>
      %124 = vector.shape_cast %123 : vector<128x4xf32> to vector<8x16x4xf32>
      %c2_91 = arith.constant 2 : index
      %c0_92 = arith.constant 0 : index
      %c0_93 = arith.constant 0 : index
      %125 = vector.load %arg4[%c2_91, %c0_92, %c0_93] : memref<4x8x4xbf16, #tpu.memory_space<vmem>>, vector<1x8x4xbf16>
      %126 = vector.shape_cast %125 : vector<1x8x4xbf16> to vector<8x4xbf16>
      %cst_94 = arith.constant dense<0.000000e+00> : vector<128x4xf32>
      %127 = tpu.matmul %92, %126, %cst_94 {dimension_numbers = #tpu.dot_dimension_numbers<[1], [0], [0], [1], [0, 0, 1, 1], [], []>} : vector<128x8xbf16>, vector<8x4xbf16>, vector<128x4xf32> -> vector<128x4xf32>
      %c3_95 = arith.constant 3 : index
      %c0_96 = arith.constant 0 : index
      %c0_97 = arith.constant 0 : index
      %128 = vector.load %arg4[%c3_95, %c0_96, %c0_97] : memref<4x8x4xbf16, #tpu.memory_space<vmem>>, vector<1x8x4xbf16>
      %129 = vector.shape_cast %128 : vector<1x8x4xbf16> to vector<8x4xbf16>
      %cst_98 = arith.constant dense<0.000000e+00> : vector<128x4xf32>
      %130 = tpu.matmul %92, %129, %cst_98 {dimension_numbers = #tpu.dot_dimension_numbers<[1], [0], [0], [1], [0, 0, 1, 1], [], []>} : vector<128x8xbf16>, vector<8x4xbf16>, vector<128x4xf32> -> vector<128x4xf32>
      %c0_i32_99 = arith.constant 0 : i32
      %131 = vector.broadcast %c0_i32_99 : i32 to vector<128x1xi32>
      %132 = arith.cmpi eq, %109, %131 : vector<128x1xi32>
      %133 = vector.shape_cast %132 : vector<128x1xi1> to vector<128x1xi1>
      %134 = vector.broadcast %133 : vector<128x1xi1> to vector<128x4xi1>
      %135 = arith.select %134, %127, %130 : vector<128x4xi1>, vector<128x4xf32>
      %136 = vector.broadcast %110 : vector<1x4xf32> to vector<128x4xf32>
      %137 = arith.addf %135, %136 : vector<128x4xf32>
      %138 = vector.shape_cast %137 : vector<128x4xf32> to vector<8x16x4xf32>
      %139 = vector.shape_cast %124 : vector<8x16x4xf32> to vector<8x1x16x4xf32>
      %140 = vector.shape_cast %138 : vector<8x16x4xf32> to vector<8x1x16x4xf32>
      %141 = tpu.concatenate %139, %140 in 1 : vector<8x1x16x4xf32>, vector<8x1x16x4xf32> -> vector<8x2x16x4xf32>
      %142 = vector.shape_cast %141 : vector<8x2x16x4xf32> to vector<16x16x4xf32>
      %143 = arith.truncf %142 : vector<16x16x4xf32> to vector<16x16x4xbf16>
      %c1_100 = arith.constant 1 : index
      %c1_101 = arith.constant 1 : index
      %c0_102 = arith.constant 0 : index
      %144 = vector.load %arg9[%c1_100, %c1_101, %c0_102] : memref<18x18x8xbf16, #tpu.memory_space<vmem>>, vector<16x16x4xbf16>
      tpu.vector_store %arg9[%c1_100, %c1_101, %c0_102], %143 {strides = array<i32>} : memref<18x18x8xbf16, #tpu.memory_space<vmem>>, vector<16x16x4xbf16>,
      %c0_103 = arith.constant 0 : index
      %c0_104 = arith.constant 0 : index
      %c0_105 = arith.constant 0 : index
      %c0_106 = arith.constant 0 : index
      %145 = vector.load %arg3[%c0_103, %c0_104, %c0_105, %c0_106] : memref<1x16x16x4xbf16, #tpu.memory_space<vmem>>, vector<1x16x16x4xbf16>
      %146 = vector.shape_cast %145 : vector<1x16x16x4xbf16> to vector<16x16x4xbf16>
      %c1_107 = arith.constant 1 : index
      %c1_108 = arith.constant 1 : index
      %c4_109 = arith.constant 4 : index
      %147 = vector.load %arg9[%c1_107, %c1_108, %c4_109] : memref<18x18x8xbf16, #tpu.memory_space<vmem>>, vector<16x16x4xbf16>
      tpu.vector_store %arg9[%c1_107, %c1_108, %c4_109], %146 {strides = array<i32>} : memref<18x18x8xbf16, #tpu.memory_space<vmem>>, vector<16x16x4xbf16>,
    } else {
    }
    %c16_i32 = arith.constant 16 : i32
    %3 = arith.muli %arg1, %c16_i32 : i32
    %4 = tpu.assume_multiple %3, 16 : i32
    %c0 = arith.constant 0 : index
    %c0_1 = arith.constant 0 : index
    %5 = vector.load %arg7[%c0, %c0_1] : memref<4x1xf32, #tpu.memory_space<vmem>>, vector<4x1xf32>
    %6 = vector.shape_cast %5 : vector<4x1xf32> to vector<4x1xf32>
    %7 = vector.broadcast %6 : vector<4x1xf32> to vector<4x256xf32>
    %c0_i32_2 = arith.constant 0 : i32
    %8 = arith.addi %4, %c0_i32_2 : i32
    %9 = arith.index_cast %8 : i32 to index
    %c0_3 = arith.constant 0 : index
    %c0_4 = arith.constant 0 : index
    %10 = vector.load %arg9[%9, %c0_3, %c0_4] : memref<18x18x8xbf16, #tpu.memory_space<vmem>>, vector<16x16x8xbf16>
    %11 = vector.shape_cast %10 : vector<16x16x8xbf16> to vector<256x8xbf16>
    %c0_5 = arith.constant 0 : index
    %c0_6 = arith.constant 0 : index
    %c0_7 = arith.constant 0 : index
    %12 = vector.load %arg6[%c0_5, %c0_6, %c0_7] : memref<9x4x8xbf16, #tpu.memory_space<vmem>>, vector<1x4x8xbf16>
    %13 = vector.shape_cast %12 : vector<1x4x8xbf16> to vector<4x8xbf16>
    %cst = arith.constant dense<0.000000e+00> : vector<4x256xf32>
    %14 = tpu.matmul %13, %11, %cst {dimension_numbers = #tpu.dot_dimension_numbers<[1], [1], [0], [0], [0, 0, 1, 0], [], []>} : vector<4x8xbf16>, vector<256x8xbf16>, vector<4x256xf32> -> vector<4x256xf32>
    %15 = arith.addf %7, %14 : vector<4x256xf32>
    %c0_i32_8 = arith.constant 0 : i32
    %16 = arith.addi %4, %c0_i32_8 : i32
    %17 = arith.index_cast %16 : i32 to index
    %c1 = arith.constant 1 : index
    %c0_9 = arith.constant 0 : index
    %18 = vector.load %arg9[%17, %c1, %c0_9] : memref<18x18x8xbf16, #tpu.memory_space<vmem>>, vector<16x16x8xbf16>
    %19 = vector.shape_cast %18 : vector<16x16x8xbf16> to vector<256x8xbf16>
    %c1_10 = arith.constant 1 : index
    %c0_11 = arith.constant 0 : index
    %c0_12 = arith.constant 0 : index
    %20 = vector.load %arg6[%c1_10, %c0_11, %c0_12] : memref<9x4x8xbf16, #tpu.memory_space<vmem>>, vector<1x4x8xbf16>
    %21 = vector.shape_cast %20 : vector<1x4x8xbf16> to vector<4x8xbf16>
    %cst_13 = arith.constant dense<0.000000e+00> : vector<4x256xf32>
    %22 = tpu.matmul %21, %19, %cst_13 {dimension_numbers = #tpu.dot_dimension_numbers<[1], [1], [0], [0], [0, 0, 1, 0], [], []>} : vector<4x8xbf16>, vector<256x8xbf16>, vector<4x256xf32> -> vector<4x256xf32>
    %23 = arith.addf %15, %22 : vector<4x256xf32>
    %c0_i32_14 = arith.constant 0 : i32
    %24 = arith.addi %4, %c0_i32_14 : i32
    %25 = arith.index_cast %24 : i32 to index
    %c2 = arith.constant 2 : index
    %c0_15 = arith.constant 0 : index
    %26 = vector.load %arg9[%25, %c2, %c0_15] : memref<18x18x8xbf16, #tpu.memory_space<vmem>>, vector<16x16x8xbf16>
    %27 = vector.shape_cast %26 : vector<16x16x8xbf16> to vector<256x8xbf16>
    %c2_16 = arith.constant 2 : index
    %c0_17 = arith.constant 0 : index
    %c0_18 = arith.constant 0 : index
    %28 = vector.load %arg6[%c2_16, %c0_17, %c0_18] : memref<9x4x8xbf16, #tpu.memory_space<vmem>>, vector<1x4x8xbf16>
    %29 = vector.shape_cast %28 : vector<1x4x8xbf16> to vector<4x8xbf16>
    %cst_19 = arith.constant dense<0.000000e+00> : vector<4x256xf32>
    %30 = tpu.matmul %29, %27, %cst_19 {dimension_numbers = #tpu.dot_dimension_numbers<[1], [1], [0], [0], [0, 0, 1, 0], [], []>} : vector<4x8xbf16>, vector<256x8xbf16>, vector<4x256xf32> -> vector<4x256xf32>
    %31 = arith.addf %23, %30 : vector<4x256xf32>
    %c1_i32 = arith.constant 1 : i32
    %32 = arith.addi %4, %c1_i32 : i32
    %33 = arith.index_cast %32 : i32 to index
    %c0_20 = arith.constant 0 : index
    %c0_21 = arith.constant 0 : index
    %34 = vector.load %arg9[%33, %c0_20, %c0_21] : memref<18x18x8xbf16, #tpu.memory_space<vmem>>, vector<16x16x8xbf16>
    %35 = vector.shape_cast %34 : vector<16x16x8xbf16> to vector<256x8xbf16>
    %c3 = arith.constant 3 : index
    %c0_22 = arith.constant 0 : index
    %c0_23 = arith.constant 0 : index
    %36 = vector.load %arg6[%c3, %c0_22, %c0_23] : memref<9x4x8xbf16, #tpu.memory_space<vmem>>, vector<1x4x8xbf16>
    %37 = vector.shape_cast %36 : vector<1x4x8xbf16> to vector<4x8xbf16>
    %cst_24 = arith.constant dense<0.000000e+00> : vector<4x256xf32>
    %38 = tpu.matmul %37, %35, %cst_24 {dimension_numbers = #tpu.dot_dimension_numbers<[1], [1], [0], [0], [0, 0, 1, 0], [], []>} : vector<4x8xbf16>, vector<256x8xbf16>, vector<4x256xf32> -> vector<4x256xf32>
    %39 = arith.addf %31, %38 : vector<4x256xf32>
    %c1_i32_25 = arith.constant 1 : i32
    %40 = arith.addi %4, %c1_i32_25 : i32
    %41 = arith.index_cast %40 : i32 to index
    %c1_26 = arith.constant 1 : index
    %c0_27 = arith.constant 0 : index
    %42 = vector.load %arg9[%41, %c1_26, %c0_27] : memref<18x18x8xbf16, #tpu.memory_space<vmem>>, vector<16x16x8xbf16>
    %43 = vector.shape_cast %42 : vector<16x16x8xbf16> to vector<256x8xbf16>
    %c4 = arith.constant 4 : index
    %c0_28 = arith.constant 0 : index
    %c0_29 = arith.constant 0 : index
    %44 = vector.load %arg6[%c4, %c0_28, %c0_29] : memref<9x4x8xbf16, #tpu.memory_space<vmem>>, vector<1x4x8xbf16>
    %45 = vector.shape_cast %44 : vector<1x4x8xbf16> to vector<4x8xbf16>
    %cst_30 = arith.constant dense<0.000000e+00> : vector<4x256xf32>
    %46 = tpu.matmul %45, %43, %cst_30 {dimension_numbers = #tpu.dot_dimension_numbers<[1], [1], [0], [0], [0, 0, 1, 0], [], []>} : vector<4x8xbf16>, vector<256x8xbf16>, vector<4x256xf32> -> vector<4x256xf32>
    %47 = arith.addf %39, %46 : vector<4x256xf32>
    %c1_i32_31 = arith.constant 1 : i32
    %48 = arith.addi %4, %c1_i32_31 : i32
    %49 = arith.index_cast %48 : i32 to index
    %c2_32 = arith.constant 2 : index
    %c0_33 = arith.constant 0 : index
    %50 = vector.load %arg9[%49, %c2_32, %c0_33] : memref<18x18x8xbf16, #tpu.memory_space<vmem>>, vector<16x16x8xbf16>
    %51 = vector.shape_cast %50 : vector<16x16x8xbf16> to vector<256x8xbf16>
    %c5 = arith.constant 5 : index
    %c0_34 = arith.constant 0 : index
    %c0_35 = arith.constant 0 : index
    %52 = vector.load %arg6[%c5, %c0_34, %c0_35] : memref<9x4x8xbf16, #tpu.memory_space<vmem>>, vector<1x4x8xbf16>
    %53 = vector.shape_cast %52 : vector<1x4x8xbf16> to vector<4x8xbf16>
    %cst_36 = arith.constant dense<0.000000e+00> : vector<4x256xf32>
    %54 = tpu.matmul %53, %51, %cst_36 {dimension_numbers = #tpu.dot_dimension_numbers<[1], [1], [0], [0], [0, 0, 1, 0], [], []>} : vector<4x8xbf16>, vector<256x8xbf16>, vector<4x256xf32> -> vector<4x256xf32>
    %55 = arith.addf %47, %54 : vector<4x256xf32>
    %c2_i32 = arith.constant 2 : i32
    %56 = arith.addi %4, %c2_i32 : i32
    %57 = arith.index_cast %56 : i32 to index
    %c0_37 = arith.constant 0 : index
    %c0_38 = arith.constant 0 : index
    %58 = vector.load %arg9[%57, %c0_37, %c0_38] : memref<18x18x8xbf16, #tpu.memory_space<vmem>>, vector<16x16x8xbf16>
    %59 = vector.shape_cast %58 : vector<16x16x8xbf16> to vector<256x8xbf16>
    %c6 = arith.constant 6 : index
    %c0_39 = arith.constant 0 : index
    %c0_40 = arith.constant 0 : index
    %60 = vector.load %arg6[%c6, %c0_39, %c0_40] : memref<9x4x8xbf16, #tpu.memory_space<vmem>>, vector<1x4x8xbf16>
    %61 = vector.shape_cast %60 : vector<1x4x8xbf16> to vector<4x8xbf16>
    %cst_41 = arith.constant dense<0.000000e+00> : vector<4x256xf32>
    %62 = tpu.matmul %61, %59, %cst_41 {dimension_numbers = #tpu.dot_dimension_numbers<[1], [1], [0], [0], [0, 0, 1, 0], [], []>} : vector<4x8xbf16>, vector<256x8xbf16>, vector<4x256xf32> -> vector<4x256xf32>
    %63 = arith.addf %55, %62 : vector<4x256xf32>
    %c2_i32_42 = arith.constant 2 : i32
    %64 = arith.addi %4, %c2_i32_42 : i32
    %65 = arith.index_cast %64 : i32 to index
    %c1_43 = arith.constant 1 : index
    %c0_44 = arith.constant 0 : index
    %66 = vector.load %arg9[%65, %c1_43, %c0_44] : memref<18x18x8xbf16, #tpu.memory_space<vmem>>, vector<16x16x8xbf16>
    %67 = vector.shape_cast %66 : vector<16x16x8xbf16> to vector<256x8xbf16>
    %c7 = arith.constant 7 : index
    %c0_45 = arith.constant 0 : index
    %c0_46 = arith.constant 0 : index
    %68 = vector.load %arg6[%c7, %c0_45, %c0_46] : memref<9x4x8xbf16, #tpu.memory_space<vmem>>, vector<1x4x8xbf16>
    %69 = vector.shape_cast %68 : vector<1x4x8xbf16> to vector<4x8xbf16>
    %cst_47 = arith.constant dense<0.000000e+00> : vector<4x256xf32>
    %70 = tpu.matmul %69, %67, %cst_47 {dimension_numbers = #tpu.dot_dimension_numbers<[1], [1], [0], [0], [0, 0, 1, 0], [], []>} : vector<4x8xbf16>, vector<256x8xbf16>, vector<4x256xf32> -> vector<4x256xf32>
    %71 = arith.addf %63, %70 : vector<4x256xf32>
    %c2_i32_48 = arith.constant 2 : i32
    %72 = arith.addi %4, %c2_i32_48 : i32
    %73 = arith.index_cast %72 : i32 to index
    %c2_49 = arith.constant 2 : index
    %c0_50 = arith.constant 0 : index
    %74 = vector.load %arg9[%73, %c2_49, %c0_50] : memref<18x18x8xbf16, #tpu.memory_space<vmem>>, vector<16x16x8xbf16>
    %75 = vector.shape_cast %74 : vector<16x16x8xbf16> to vector<256x8xbf16>
    %c8 = arith.constant 8 : index
    %c0_51 = arith.constant 0 : index
    %c0_52 = arith.constant 0 : index
    %76 = vector.load %arg6[%c8, %c0_51, %c0_52] : memref<9x4x8xbf16, #tpu.memory_space<vmem>>, vector<1x4x8xbf16>
    %77 = vector.shape_cast %76 : vector<1x4x8xbf16> to vector<4x8xbf16>
    %cst_53 = arith.constant dense<0.000000e+00> : vector<4x256xf32>
    %78 = tpu.matmul %77, %75, %cst_53 {dimension_numbers = #tpu.dot_dimension_numbers<[1], [1], [0], [0], [0, 0, 1, 0], [], []>} : vector<4x8xbf16>, vector<256x8xbf16>, vector<4x256xf32> -> vector<4x256xf32>
    %79 = arith.addf %71, %78 : vector<4x256xf32>
    %cst_54 = arith.constant 0.000000e+00 : f32
    %80 = vector.broadcast %cst_54 : f32 to vector<4x256xf32>
    %81 = arith.maximumf %79, %80 : vector<4x256xf32>
    %c0_55 = arith.constant 0 : index
    %c0_56 = arith.constant 0 : index
    %c0_57 = arith.constant 0 : index
    %82 = vector.load %arg8[%c0_55, %c0_56, %c0_57] : memref<1x4x256xf32, #tpu.memory_space<vmem>>, vector<1x4x256xf32>
    %83 = vector.shape_cast %82 : vector<1x4x256xf32> to vector<4x256xf32>
    %84 = vector.shape_cast %81 : vector<4x256xf32> to vector<1x4x256xf32>
    tpu.vector_store %arg8[%c0_55, %c0_56, %c0_57], %84 {strides = array<i32>} : memref<1x4x256xf32, #tpu.memory_space<vmem>>, vector<1x4x256xf32>,
    return
  }
  func.func @transform_0(%arg0: i32, %arg1: i32) -> (i32, i32, i32) {
    %c0_i32 = arith.constant 0 : i32
    %c0_i32_0 = arith.constant 0 : i32
    %c0_i32_1 = arith.constant 0 : i32
    return %arg0, %c0_i32, %c0_i32_0 : i32, i32, i32
  }
  func.func @transform_1(%arg0: i32, %arg1: i32) -> (i32, i32, i32, i32) {
    %c0_i32 = arith.constant 0 : i32
    %c0_i32_0 = arith.constant 0 : i32
    %c0_i32_1 = arith.constant 0 : i32
    %c0_i32_2 = arith.constant 0 : i32
    return %arg0, %c0_i32, %c0_i32_0, %c0_i32_1 : i32, i32, i32, i32
  }
  func.func @transform_2(%arg0: i32, %arg1: i32) -> (i32, i32, i32) {
    %c0_i32 = arith.constant 0 : i32
    %c0_i32_0 = arith.constant 0 : i32
    %c0_i32_1 = arith.constant 0 : i32
    %c0_i32_2 = arith.constant 0 : i32
    return %c0_i32, %c0_i32_0, %c0_i32_1 : i32, i32, i32
  }
  func.func @transform_3(%arg0: i32, %arg1: i32) -> (i32, i32) {
    %c0_i32 = arith.constant 0 : i32
    %c0_i32_0 = arith.constant 0 : i32
    %c0_i32_1 = arith.constant 0 : i32
    return %c0_i32, %c0_i32_0 : i32, i32
  }
  func.func @transform_4(%arg0: i32, %arg1: i32) -> (i32, i32, i32) {
    %c0_i32 = arith.constant 0 : i32
    %c0_i32_0 = arith.constant 0 : i32
    %c0_i32_1 = arith.constant 0 : i32
    %c0_i32_2 = arith.constant 0 : i32
    return %c0_i32, %c0_i32_0, %c0_i32_1 : i32, i32, i32
  }
  func.func @transform_5(%arg0: i32, %arg1: i32) -> (i32, i32) {
    %c0_i32 = arith.constant 0 : i32
    %c0_i32_0 = arith.constant 0 : i32
    %c0_i32_1 = arith.constant 0 : i32
    return %c0_i32, %c0_i32_0 : i32, i32
  }
  func.func @transform_6(%arg0: i32, %arg1: i32) -> (i32, i32, i32) {
    %c0_i32 = arith.constant 0 : i32
    %c0_i32_0 = arith.constant 0 : i32
    return %arg0, %c0_i32, %arg1 : i32, i32, i32
  }
}

</mosaic_0001>

<bundles_post_ra>
// kernel: decoder_forward.1
= control target key start
LH: loop header
LB: loop body
LE: loop exit
PB: predicated region body
PF: predicated region fallthrough
CT: control target
= control target key end

     0   :  { %s6875_s21 = smov 0   ;;  %s6877_s22 = smov 0   ;;  %s9226_s0 = inlined_call_operand.vmem [shape: bf16[2,128,8], index: 0, kind: input, shape index: {}]   ;;  %s9227_s1 = inlined_call_operand.vmem [shape: bf16[2,16,16,4], index: 1, kind: input, shape index: {}]   ;;  %s9228_s2 = inlined_call_operand.vmem [shape: bf16[4,8,4], index: 2, kind: input, shape index: {}]   ;;  %s9229_s3 = inlined_call_operand.vmem [shape: f32[1,4], index: 3, kind: input, shape index: {}]   ;;  %s9230_s4 = inlined_call_operand.vmem [shape: bf16[9,4,8], index: 4, kind: input, shape index: {}]   ;;  %s9231_s5 = inlined_call_operand.vmem [shape: f32[4,1], index: 5, kind: input, shape index: {}]   ;;  %s9232_s6 = inlined_call_operand.vmem [shape: f32[2,4,256], index: 6, kind: output, shape index: {}]  }
   0x1   :  { %s6879_s23 = smov 0  }
   0x2 LB: > { %s28_s24 = sadd.s32 1, %s6832_s22  ;;  %p5790_p0 = scmp.ge.s32.totalorder %s6836_s23, 1  ;;  %s6836_s23 = sphi %s6879_s23, %s16_s23   ;;  %s6832_s22 = sphi %s6877_s22, %s9634_s22   ;;  %s6828_s21 = sphi %s6875_s21, %s9633_s21  }
   0x3   : > { %p30_p1 = scmp.ge.s32.totalorder %s28_s24, 2  ;;  %p236_p2 = scmp.lt.s32.totalorder %s6836_s23, 3 }
   0x5   : > { %s9636_s24 = smov (%p30_p1, %s28_s24), 0  ;;  %p237_p3 = pnand %p5790_p0, %p236_p2 }
   0x7   : > { %240 = sbr.rel (%p237_p3) target bundleno = 970 (0x3ca), region = 44 }
   0xe   : > { %v648_v0 = vld [vmem:[%s9228_s2] sm:$0xf]  ;;  %vm714_vm0 = vcmask 1043456   ;;  %p275_p4 = scmp.lt.s32.totalorder %s6828_s21, 1  ;;  %v5813_v2 = vld [vmem:[%s9228_s2 + $0x4] sm:$0xf] }
   0xf   : > { %6613 = vmatprep.subr.msk.bf16.mxu1 %vm714_vm0, %v648_v0  ;;  %v716_v1 = vsel %vm714_vm0, %v648_v0, 0  ;;  %v5823_v3 = vld [vmem:[%s9228_s2 + $0x8] sm:$0xf]  ;;  %vm9236_vm1 = vcmask 64512   ;;  %v6921_v6 = vld [vmem:[%s9228_s2 + $0xc] sm:$0xf] }
  0x10   : > { %6510 = vmatpush3.bf16.msra.mxu1 %v716_v1  ;;  %s9638_s21 = smov (!%p275_p4, %s6828_s21), 1  ;;  %6615 = vmatprep.subr.msk.bf16.mxu0 %vm714_vm0, %v5823_v3  ;;  %v1006_v4 = vsel %vm714_vm0, %v5823_v3, 0  ;;  %v818_v8 = vsel %vm714_vm0, %v5813_v2, 0  ;;  %s6838_s17 = smov 4   ;;  %vm9237_vm2 = vsmask.f32 256 }
  0x11   : > { %6614 = vmatprep.subr.msk.bf16.mxu1 %vm714_vm0, %v5813_v2  ;;  %s6276_s7 = sshll.u32 %s9638_s21, 6  ;;  %6546 = vmatpush3.bf16.msra.mxu0 %v1006_v4  ;;  %s6277_s13 = sshll.u32 %s9638_s21, 7  ;;  %vm1335_vm3 = vsmask.f32 4368  ;;  %vm303_vm5 = vcmask 57344   ;;  %vm300_vm9 = vcmask 60416  }
  0x12   : > { %s6913_s10 = scalar_lea.vmem %s9226_s0, %s6276_s7  ;;  %s6944_s16 = scalar_lea.vmem %s9227_s1, %s6277_s13  ;;  %vm6988_vm4 = vmor %vm9237_vm2, %vm1335_vm3  ;;  %vm9244_vm7 = vsmask.f32 7938  ;;  %vm9245_vm13 = vcmask 27648  }
  0x13   : > { %v6916_v5 = vld [vmem:[%s6913_s10] sm:$0xff]   ;;  %v6924_v7 = vld [vmem:[%s6913_s10 + $0x8] sm:$0xff]   ;;  %v6931_v9 = vld [vmem:[%s6913_s10 + $0x10] sm:$0xff]   ;;  %s6278_s8 = sshll.u32 %s9638_s21, 3 }
  0x14   : > { %6511 = vmatprep.mubr.msk.bf16.mxu1 %vm9236_vm1, %v6916_v5  ;;  %6547 = vmatprep.mubr.msk.bf16.mxu0 %vm9236_vm1, %v6916_v5  ;;  %v6951_v10 = vld [vmem:[%s6913_s10 + $0x18] sm:$0xff]   ;;  %v6954_v11 = vld [vmem:[%s6913_s10 + $0x20] sm:$0xff]   ;;  %v1793_v24 = vld [vmem:[%s6944_s16 + $0x48] sm:$0xf]  ;;  %s293_s11 = scalar_lea.vmem %s9232_s6, %s6278_s8 }
  0x15   : > { %6512 = vmatmul.mubr.msk.bf16.vlgmr.msra.gmra.mrb[0].mxu1 %vm9236_vm1, %v6924_v7  ;;  %6548 = vmatmul.mubr.msk.bf16.vlgmr.msra.gmra.mrb[0].mxu0 %vm9236_vm1, %v6924_v7  ;;  %v1775_v12 = vld [vmem:[%s6944_s16] sm:$0xf]  ;;  %v1776_v17 = vld [vmem:[%s6944_s16 + $0x4] sm:$0xf]  ;;  %v1777_v26 = vld [vmem:[%s6944_s16 + $0x8] sm:$0xf] }
  0x16   : > { %6528 = vmatpush3.bf16.msra.mxu1 %v818_v8  ;;  %6515 = vmatprep.mubr.msk.bf16.mxu1 %vm9236_vm1, %v6931_v9  ;;  %v1791_v13 = vld [vmem:[%s6944_s16 + $0x40] sm:$0xf]  ;;  %v1808_v14 = vshrl.u32 %v1775_v12, 16  ;;  %v1811_v15 = vshll.u32 %v1775_v12, 16  ;;  %v1792_v18 = vld [vmem:[%s6944_s16 + $0x44] sm:$0xf]  ;;  %vm7138_vm6 = vmand %vm303_vm5, %vm9237_vm2 }
  0x17   : > { %6616 = vmatprep.subr.msk.bf16.mxu1 %vm714_vm0, %v6921_v6  ;;  %6551 = vmatprep.mubr.msk.bf16.mxu0 %vm9236_vm1, %v6931_v9  ;;  %v1944_v16 = vshrl.u32 %v1791_v13, 16  ;;  %v1952_v20 = vshrl.u32 %v1792_v18, 16  ;;  %v1947_v22 = vshll.u32 %v1791_v13, 16  ;;  %v1816_v23 = vshrl.u32 %v1776_v17, 16  ;;  %v1778_v28 = vld [vmem:[%s6944_s16 + $0xc] sm:$0xf]  ;;  %vm7146_vm8 = vmand %vm303_vm5, %vm9244_vm7 }
  0x18   : > { %v1810_v19 = vrot.slane %v1808_v14, 7  ;;  %v1819_v29 = vshll.u32 %v1776_v17, 16  ;;  %v6972_v30 = vld [vmem:[%s6913_s10 + $0x28] sm:$0xff]   ;;  %v1961_v32 = vshrl.u32 %v1793_v24, 16  ;;  %v1964_v33 = vshll.u32 %v1793_v24, 16  ;;  %v6976_v34 = vld [vmem:[%s6913_s10 + $0x30] sm:$0xff]  }
  0x19   : > { %v1946_v21 = vrot.slane %v1944_v16, 7  ;;  %v1954_v27 = vrot.slane %v1952_v20, 7  ;;  %v1818_v36 = vrot.slane %v1816_v23, 7  ;;  %v1825_v37 = vshrl.u32 %v1777_v26, 16  ;;  %v1794_v41 = vld [vmem:[%s6944_s16 + $0x4c] sm:$0xf] }
  0x1a   : > { %v1813_v25 = vor.u32 %v1811_v15, %v1810_v19  ;;  %v1955_v38 = vshll.u32 %v1792_v18, 16  ;;  %v1833_v39 = vshrl.u32 %v1778_v28, 16  ;;  %v1963_v40 = vrot.slane %v1961_v32, 7  ;;  %v6998_v57 = vld [vmem:[%s6913_s10 + $0x38] sm:$0xff]   ;;  %v1779_v61 = vld [vmem:[%s6944_s16 + $0x10] sm:$0xf] }
  0x1b   : > { %v1959_v31 = vrot.slane %v1954_v27, 4  ;;  %v1949_v35 = vor.u32 %v1947_v22, %v1946_v21  ;;  %v1814_v42 = vrot.slane %v1810_v19, 4  ;;  %v1821_v43 = vor.u32 %v1819_v29, %v1818_v36  ;;  %v1795_v1 = vld [vmem:[%s6944_s16 + $0x50] sm:$0xf]  ;;  %v1780_v2 = vld [vmem:[%s6944_s16 + $0x14] sm:$0xf] }
  0x1c   : > { %2079 = vrot.lane.b32.xlu0 %v1813_v25, %s6838_s17  ;;  %v1966_v44 = vor.u32 %v1964_v33, %v1963_v40  ;;  %v1823_v45 = vrot.slane %v1818_v36, 4  ;;  %v1827_v46 = vrot.slane %v1825_v37, 7  ;;  %v1828_v47 = vshll.u32 %v1777_v26, 16  ;;  %v1796_v3 = vld [vmem:[%s6944_s16 + $0x54] sm:$0xf] }
  0x1d   : > { %6516 = vmatmul.mubr.msk.bf16.gmra.mrb[4].mxu1 %vm9236_vm1, %v6951_v10  ;;  %6552 = vmatmul.mubr.msk.bf16.gmra.mrb[4].mxu0 %vm9236_vm1, %v6951_v10  ;;  %v1969_v48 = vshrl.u32 %v1794_v41, 16  ;;  %v1957_v49 = vor.u32 %v1955_v38, %v1954_v27  ;;  %v1835_v51 = vrot.slane %v1833_v39, 7  ;;  %v1836_v52 = vshll.u32 %v1778_v28, 16  ;;  %v1782_v36 = vld [vmem:[%s6944_s16 + $0x1c] sm:$0xf] }
  0x1e   : > { %6519 = vmatprep.mubr.msk.bf16.mxu1 %vm9236_vm1, %v6954_v11  ;;  %6555 = vmatprep.mubr.msk.bf16.mxu0 %vm9236_vm1, %v6954_v11  ;;  %v1822_v53 = vsel %vm6988_vm4, %v1814_v42, %v1821_v43  ;;  %v1950_v54 = vrot.slane %v1946_v21, 4  ;;  %v1972_v56 = vshll.u32 %v1794_v41, 16  ;;  %v1830_v58 = vor.u32 %v1828_v47, %v1827_v46  ;;  %v1798_v37 = vld [vmem:[%s6944_s16 + $0x5c] sm:$0xf] }
  0x1f   : > { %2131 = vrot.lane.b32.xlu1 %v1959_v31, %s6838_s17  ;;  %v1971_v55 = vrot.slane %v1969_v48, 7  ;;  %v1831_v59 = vrot.slane %v1827_v46, 4  ;;  %v1838_v60 = vor.u32 %v1836_v52, %v1835_v51  ;;  %v1967_v63 = vrot.slane %v1963_v40, 4  ;;  %v1781_v31 = vld [vmem:[%s6944_s16 + $0x18] sm:$0xf] }
  0x20   : > { %2127 = vrot.lane.b32.xlu0 %v1949_v35, %s6838_s17  ;;  %v1958_v62 = vsel %vm6988_vm4, %v1950_v54, %v1957_v49  ;;  %v1842_v8 = vshrl.u32 %v1779_v61, 16  ;;  %v1978_v12 = vshrl.u32 %v1795_v1, 16  ;;  %v1850_v13 = vshrl.u32 %v1780_v2, 16  ;;  %v1797_v35 = vld [vmem:[%s6944_s16 + $0x58] sm:$0xf] }
  0x21   : > { %v1974_v0 = vor.u32 %v1972_v56, %v1971_v55  ;;  %v1839_v4 = vsel %vm6988_vm4, %v1831_v59, %v1838_v60  ;;  %v1986_v15 = vshrl.u32 %v1796_v3, 16  ;;  %v1108_v16 = vsel %vm714_vm0, %v6921_v6, 0  ;;  %v1783_v60 = vld [vmem:[%s6944_s16 + $0x20] sm:$0xf] }
  0x22   : > { %v1840_v17 = vrot.slane %v1835_v51, 4  ;;  %v1845_v18 = vshll.u32 %v1779_v61, 16  ;;  %v1844_v19 = vrot.slane %v1842_v8, 7  ;;  %v1976_v20 = vrot.slane %v1971_v55, 4 }
  0x23   : > { %2133 = vrot.lane.b32.xlu1 %v1966_v44, %s6838_s17  ;;  %v1975_v14 = vsel %vm6988_vm4, %v1967_v63, %v1974_v0  ;;  %v1980_v21 = vrot.slane %v1978_v12, 7  ;;  %v1981_v22 = vshll.u32 %v1795_v1, 16  ;;  %v1852_v23 = vrot.slane %v1850_v13, 7  ;;  %v1799_v63 = vld [vmem:[%s6944_s16 + $0x60] sm:$0xf] }
  0x24   : > { %2083 = vrot.lane.b32.xlu0 %v1823_v45, %s6838_s17  ;;  %v1853_v24 = vshll.u32 %v1780_v2, 16  ;;  %v1988_v25 = vrot.slane %v1986_v15, 7  ;;  %v1989_v26 = vshll.u32 %v1796_v3, 16  ;;  %v1847_v6 = vor.u32 %v1845_v18, %v1844_v19  ;;  %v1784_v0 = vld [vmem:[%s6944_s16 + $0x24] sm:$0xf] }
  0x25   : > { %6520 = vmatmul.mubr.msk.bf16.gmra.mrb[8].mxu1 %vm9236_vm1, %v6972_v30  ;;  %6556 = vmatmul.mubr.msk.bf16.gmra.mrb[8].mxu0 %vm9236_vm1, %v6972_v30  ;;  %v1983_v27 = vor.u32 %v1981_v22, %v1980_v21  ;;  %v1848_v28 = vrot.slane %v1844_v19, 4  ;;  %v1984_v32 = vrot.slane %v1980_v21, 4  ;;  %v1859_v38 = vshrl.u32 %v1781_v31, 16  ;;  %v1800_v1 = vld [vmem:[%s6944_s16 + $0x64] sm:$0xf] }
  0x26   : > { %6523 = vmatprep.mubr.msk.bf16.mxu1 %vm9236_vm1, %v6976_v34  ;;  %6559 = vmatprep.mubr.msk.bf16.mxu0 %vm9236_vm1, %v6976_v34  ;;  %v1855_v29 = vor.u32 %v1853_v24, %v1852_v23  ;;  %v1991_v33 = vor.u32 %v1989_v26, %v1988_v25  ;;  %v1995_v39 = vshrl.u32 %v1797_v35, 16  ;;  %v1867_v41 = vshrl.u32 %v1782_v36, 16 }
  0x27   : > { %2081 = vrot.lane.b32.xlu1 %v1822_v53, %s6838_s17  ;;  %v2003_v43 = vshrl.u32 %v1798_v37, 16  ;;  %v1857_v44 = vrot.slane %v1852_v23, 4  ;;  %v1862_v45 = vshll.u32 %v1781_v31, 16  ;;  %v1861_v46 = vrot.slane %v1859_v38, 7  ;;  %v1801_v31 = vld [vmem:[%s6944_s16 + $0x68] sm:$0xf] }
  0x28   : > { %2085 = vrot.lane.b32.xlu0 %v1830_v58, %s6838_s17  ;;  %v1856_v40 = vsel %vm6988_vm4, %v1848_v28, %v1855_v29  ;;  %v1992_v42 = vsel %vm6988_vm4, %v1984_v32, %v1991_v33  ;;  %v1993_v47 = vrot.slane %v1988_v25, 4  ;;  %v1997_v48 = vrot.slane %v1995_v39, 7  ;;  %v1785_v25 = vld [vmem:[%s6944_s16 + $0x28] sm:$0xf]  ;;  %v1786_v32 = vld [vmem:[%s6944_s16 + $0x2c] sm:$0xf] }
  0x29   : > { %v1998_v49 = vshll.u32 %v1797_v35, 16  ;;  %v1869_v51 = vrot.slane %v1867_v41, 7  ;;  %v1870_v52 = vshll.u32 %v1782_v36, 16  ;;  %v2005_v53 = vrot.slane %v2003_v43, 7  ;;  %v1802_v33 = vld [vmem:[%s6944_s16 + $0x6c] sm:$0xf] }
  0x2a   : > { %v2006_v54 = vshll.u32 %v1798_v37, 16  ;;  %v1864_v55 = vor.u32 %v1862_v45, %v1861_v46  ;;  %v1865_v58 = vrot.slane %v1861_v46, 4  ;;  %v2001_v61 = vrot.slane %v1997_v48, 4 }
  0x2b   : > { %2129 = vrot.lane.b32.xlu1 %v1958_v62, %s6838_s17  ;;  %v2000_v56 = vor.u32 %v1998_v49, %v1997_v48  ;;  %v1872_v59 = vor.u32 %v1870_v52, %v1869_v51  ;;  %v1876_v2 = vshrl.u32 %v1783_v60, 16  ;;  %v2012_v3 = vshrl.u32 %v1799_v63, 16  ;;  %v1787_v49 = vld [vmem:[%s6944_s16 + $0x30] sm:$0xf] }
  0x2c   : > { %2087 = vrot.lane.b32.xlu0 %v1839_v4, %s6838_s17  ;;  %v2008_v62 = vor.u32 %v2006_v54, %v2005_v53  ;;  %v1884_v8 = vshrl.u32 %v1784_v0, 16  ;;  %v2020_v13 = vshrl.u32 %v1800_v1, 16  ;;  %v1879_v15 = vshll.u32 %v1783_v60, 16 }
  0x2d   : > { %6524 = vmatmul.mubr.msk.bf16.gmra.mrb[12].mxu1 %vm9236_vm1, %v6998_v57  ;;  %6560 = vmatmul.mubr.msk.bf16.gmra.mrb[12].mxu0 %vm9236_vm1, %v6998_v57  ;;  %v1873_v4 = vsel %vm6988_vm4, %v1865_v58, %v1872_v59  ;;  %v2014_v18 = vrot.slane %v2012_v3, 7  ;;  %v2015_v19 = vshll.u32 %v1799_v63, 16  ;;  %v1887_v21 = vshll.u32 %v1784_v0, 16  ;;  %v1788_v58 = vld [vmem:[%s6944_s16 + $0x34] sm:$0xf] }
  0x2e   : > { %6529 = vmatprep.mubr.msk.bf16.mxu1 %vm9236_vm1, %v6916_v5  ;;  %v2009_v12 = vsel %vm6988_vm4, %v2001_v61, %v2008_v62  ;;  %v2022_v22 = vrot.slane %v2020_v13, 7  ;;  %v2023_v23 = vshll.u32 %v1800_v1, 16  ;;  %v1893_v35 = vshrl.u32 %v1785_v25, 16  ;;  %v1804_v59 = vld [vmem:[%s6944_s16 + $0x74] sm:$0xf] }
  0x2f   : > { %2135 = vrot.lane.b32.xlu1 %v1975_v14, %s6838_s17  ;;  %v1874_v14 = vrot.slane %v1869_v51, 4  ;;  %v2017_v26 = vor.u32 %v2015_v19, %v2014_v18  ;;  %v2018_v28 = vrot.slane %v2014_v18, 4  ;;  %v1901_v37 = vshrl.u32 %v1786_v32, 16  ;;  %v1789_v18 = vld [vmem:[%s6944_s16 + $0x38] sm:$0xf] }
  0x30   : > { %2089 = vrot.lane.b32.xlu0 %v1840_v17, %s6838_s17  ;;  %v2010_v17 = vrot.slane %v2005_v53, 4  ;;  %v2025_v29 = vor.u32 %v2023_v23, %v2022_v22  ;;  %v2037_v39 = vshrl.u32 %v1802_v33, 16  ;;  %v1896_v41 = vshll.u32 %v1785_v25, 16  ;;  %v1790_v23 = vld [vmem:[%s6944_s16 + $0x3c] sm:$0xf] }
  0x31   : > { %v2027_v43 = vrot.slane %v2022_v22, 4  ;;  %v2032_v45 = vshll.u32 %v1801_v31, 16  ;;  %v1903_v46 = vrot.slane %v1901_v37, 7  ;;  %v2040_v48 = vshll.u32 %v1802_v33, 16 }
  0x32   : > { %v2026_v38 = vsel %vm6988_vm4, %v2018_v28, %v2025_v29  ;;  %v1910_v60 = vshrl.u32 %v1787_v49, 16  ;;  %v1918_v63 = vshrl.u32 %v1788_v58, 16  ;;  %v2054_v1 = vshrl.u32 %v1804_v59, 16 }
  0x33   : > { %2137 = vrot.lane.b32.xlu1 %v1976_v20, %s6838_s17  ;;  %v1886_v20 = vrot.slane %v1884_v8, 7  ;;  %v1921_v13 = vshll.u32 %v1788_v58, 16  ;;  %v1927_v25 = vshrl.u32 %v1789_v18, 16  ;;  %v1930_v33 = vshll.u32 %v1789_v18, 16 }
  0x34   : > { %2091 = vrot.lane.b32.xlu0 %v1847_v6, %s6838_s17  ;;  %v1938_v37 = vshll.u32 %v1790_v23, 16 }
  0x35   : > { %6530 = vmatmul.mubr.msk.bf16.vlgmr.msra.gmra.mrb[16].mxu1 %vm9236_vm1, %v6924_v7 }
  0x36   : > { %6564 = vmatpush3.bf16.msra.mxu1 %v1108_v16  ;;  %6533 = vmatprep.mubr.msk.bf16.mxu1 %vm9236_vm1, %v6931_v9  ;;  %v1878_v16 = vrot.slane %v1876_v2, 7  ;;  %v1913_v2 = vshll.u32 %v1787_v49, 16 }
  0x37   : > { %2139 = vrot.lane.b32.xlu1 %v1983_v27, %s6838_s17  ;;  %v1889_v27 = vor.u32 %v1887_v21, %v1886_v20 }
  0x38   : > { %2093 = vrot.lane.b32.xlu0 %v1856_v40, %s6838_s17  ;;  %v1881_v24 = vor.u32 %v1879_v15, %v1878_v16  ;;  %v1882_v6 = vrot.slane %v1878_v16, 4  ;;  %v1895_v40 = vrot.slane %v1893_v35, 7  ;;  %v2057_v15 = vshll.u32 %v1804_v59, 16  ;;  %v333_v59 = vld [vmem:[#allocation2 + $0x54] sm:$0x1] }
  0x3a   : > { %v1890_v36 = vsel %vm6988_vm4, %v1882_v6, %v1889_v27  ;;  %v1899_v52 = vrot.slane %v1895_v40, 4  ;;  %v1935_v6 = vshrl.u32 %v1790_v23, 16  ;;  %v1806_v27 = vld [vmem:[%s6944_s16 + $0x7c] sm:$0xf] }
  0x3b   : > { %2141 = vrot.lane.b32.xlu1 %v1992_v42, %s6838_s17  ;;  %v1891_v42 = vrot.slane %v1886_v20, 4  ;;  %v2071_v28 = vshrl.u32 %v1806_v27, 16 }
  0x3c   : > { %2095 = vrot.lane.b32.xlu0 %v1857_v44, %s6838_s17 }
  0x3d   : > { %6534 = vmatmul.mubr.msk.bf16.gmra.mrb[20].mxu1 %vm9236_vm1, %v6951_v10 }
  0x3e   : > { %6537 = vmatprep.mubr.msk.bf16.mxu1 %vm9236_vm1, %v6954_v11 }
  0x3f   : > { %2143 = vrot.lane.b32.xlu1 %v1993_v47, %s6838_s17  ;;  %v1904_v47 = vshll.u32 %v1786_v32, 16 }
  0x40   : > { %2097 = vrot.lane.b32.xlu0 %v1864_v55, %s6838_s17 }
  0x41   : > { %v1906_v53 = vor.u32 %v1904_v47, %v1903_v46 }
  0x43   : > { %2145 = vrot.lane.b32.xlu1 %v2000_v56, %s6838_s17  ;;  %v1803_v56 = vld [vmem:[%s6944_s16 + $0x70] sm:$0xf]  ;;  %v1907_v62 = vsel %vm6988_vm4, %v1899_v52, %v1906_v53  ;;  %v315_v52 = vld [vmem:[#allocation2 + $0xc] sm:$0x1] }
  0x44   : > { %2099 = vrot.lane.b32.xlu0 %v1873_v4, %s6838_s17  ;;  %v2046_v61 = vshrl.u32 %v1803_v56, 16  ;;  %v2049_v8 = vshll.u32 %v1803_v56, 16  ;;  %v316_v53 = vsel %vm7138_vm6, 0, %v315_v52  ;;  %v371_v56 = vld [vmem:[#allocation2 + $0x14] sm:$0x1] }
  0x45   : > { %6538 = vmatmul.mubr.msk.bf16.gmra.mrb[24].mxu1 %vm9236_vm1, %v6972_v30  ;;  %317 = vst [vmem:[#allocation2 + $0xc] sm:$0x1] %v316_v53  ;;  %v372_v58 = vsel %vm7146_vm8, 0, %v371_v56  ;;  %v398_v53 = vld [vmem:[#allocation2 + $0x80] sm:$0x1] }
  0x46   : > { %6541 = vmatprep.mubr.msk.bf16.mxu1 %vm9236_vm1, %v6976_v34  ;;  %v2048_v4 = vrot.slane %v2046_v61, 7  ;;  %373 = vst [vmem:[#allocation2 + $0x14] sm:$0x1] %v372_v58  ;;  %v327_v61 = vld [vmem:[#allocation2 + $0x3c] sm:$0x1] }
  0x47   : > { %2147 = vrot.lane.b32.xlu1 %v2009_v12, %s6838_s17  ;;  %v1920_v12 = vrot.slane %v1918_v63, 7  ;;  %v389_v63 = vld [vmem:[#allocation2 + $0x5c] sm:$0x1] }
  0x48   : > { %2101 = vrot.lane.b32.xlu0 %v1874_v14, %s6838_s17  ;;  %v2056_v14 = vrot.slane %v2054_v1, 7  ;;  %v2052_v21 = vrot.slane %v2048_v4, 4  ;;  %v383_v1 = vld [vmem:[#allocation2 + $0x44] sm:$0x1] }
  0x49   : > { %v1923_v20 = vor.u32 %v1921_v13, %v1920_v12  ;;  %v1925_v29 = vrot.slane %v1920_v12, 4  ;;  %v395_v13 = vld [vmem:[#allocation2 + $0x74] sm:$0x1] }
  0x4a   : > { %v2059_v22 = vor.u32 %v2057_v15, %v2056_v14  ;;  %v2061_v32 = vrot.slane %v2056_v14, 4  ;;  %v396_v14 = vsel %vm7146_vm8, 0, %v395_v13  ;;  %v357_v15 = vld [vmem:[#allocation2 + $0xb4] sm:$0x1] }
  0x4b   : > { %2149 = vrot.lane.b32.xlu1 %v2010_v17, %s6838_s17  ;;  %v2051_v17 = vor.u32 %v2049_v8, %v2048_v4  ;;  %v401_v8 = vld [vmem:[#allocation2 + $0x8c] sm:$0x1]  ;;  %397 = vst [vmem:[#allocation2 + $0x74] sm:$0x1] %v396_v14 }
  0x4c   : > { %2103 = vrot.lane.b32.xlu0 %v1881_v24, %s6838_s17  ;;  %v1805_v24 = vld [vmem:[%s6944_s16 + $0x78] sm:$0xf]  ;;  %v402_v12 = vsel %vm7146_vm8, 0, %v401_v8 }
  0x4d   : > { %6542 = vmatmul.mubr.msk.bf16.gmra.mrb[28].mxu1 %vm9236_vm1, %v6998_v57  ;;  %403 = vst [vmem:[#allocation2 + $0x8c] sm:$0x1] %v402_v12 }
  0x4e   : > { %6565 = vmatprep.mubr.msk.bf16.mxu1 %vm9236_vm1, %v6916_v5  ;;  %v2029_v5 = vshrl.u32 %v1801_v31, 16  ;;  %v1929_v31 = vrot.slane %v1927_v25, 7  ;;  %v324_v25 = vld [vmem:[#allocation2 + $0x30] sm:$0x1] }
  0x4f   : > { %2151 = vrot.lane.b32.xlu1 %v2017_v26, %s6838_s17  ;;  %v2060_v26 = vsel %vm6988_vm4, %v2052_v21, %v2059_v22  ;;  %v407_v22 = vld [vmem:[#allocation2 + $0xa4] sm:$0x1] }
  0x50   : > { %2105 = vrot.lane.b32.xlu0 %v1890_v36, %s6838_s17  ;;  %v2031_v44 = vrot.slane %v2029_v5, 7  ;;  %v2066_v5 = vshll.u32 %v1805_v24, 16  ;;  %v1937_v36 = vrot.slane %v1935_v6, 7  ;;  %v408_v23 = vsel %vm7146_vm8, 0, %v407_v22 }
  0x51   : > { %409 = vst [vmem:[#allocation2 + $0xa4] sm:$0x1] %v408_v23 }
  0x52   : > { %v2034_v51 = vor.u32 %v2032_v45, %v2031_v44  ;;  %v2035_v54 = vrot.slane %v2031_v44, 4  ;;  %v1942_v47 = vrot.slane %v1937_v36, 4 }
  0x53   : > { %2153 = vrot.lane.b32.xlu1 %v2026_v38, %s6838_s17  ;;  %v2073_v38 = vrot.slane %v2071_v28, 7 }
  0x54   : > { %2107 = vrot.lane.b32.xlu0 %v1891_v42, %s6838_s17  ;;  %v1940_v42 = vor.u32 %v1938_v37, %v1937_v36 }
  0x55   : > { %6566 = vmatmul.mubr.msk.bf16.vlgmr.msra.gmra.mrb[32].mxu1 %vm9236_vm1, %v6924_v7  ;;  %v2039_v7 = vrot.slane %v2037_v39, 7  ;;  %v2074_v39 = vshll.u32 %v1806_v27, 16  ;;  %v380_v27 = vld [vmem:[#allocation2 + $0x38] sm:$0x1] }
  0x56   : > { %6569 = vmatprep.mubr.msk.bf16.mxu1 %vm9236_vm1, %v6931_v9  ;;  %v1898_v9 = vor.u32 %v1896_v41, %v1895_v40  ;;  %v1933_v41 = vrot.slane %v1929_v31, 4  ;;  %v381_v28 = vsel %vm7146_vm8, 0, %v380_v27 }
  0x57   : > { %2155 = vrot.lane.b32.xlu1 %v2027_v43, %s6838_s17  ;;  %v2042_v55 = vor.u32 %v2040_v48, %v2039_v7  ;;  %v2044_v3 = vrot.slane %v2039_v7, 4  ;;  %v2076_v44 = vor.u32 %v2074_v39, %v2073_v38  ;;  %v2078_v7 = vrot.slane %v2073_v38, 4  ;;  %v321_v48 = vld [vmem:[#allocation2 + $0x24] sm:$0x1]  ;;  %382 = vst [vmem:[#allocation2 + $0x38] sm:$0x1] %v381_v28 }
  0x58   : > { %2109 = vrot.lane.b32.xlu0 %v1898_v9, %s6838_s17  ;;  %v1941_v45 = vsel %vm6988_vm4, %v1933_v41, %v1940_v42  ;;  %v9271_v9 = vmov 0  ;;  %v322_v49 = vsel %vm7138_vm6, 0, %v321_v48  ;;  %v392_v39 = vld [vmem:[#allocation2 + $0x68] sm:$0x1] }
  0x59   : > { %v2043_v0 = vsel %vm6988_vm4, %v2035_v54, %v2042_v55  ;;  %v9272_v9 = vsel %vm7138_vm6, 4294967295, %v9271_v9  ;;  %323 = vst [vmem:[#allocation2 + $0x24] sm:$0x1] %v322_v49  ;;  %v377_v54 = vld [vmem:[#allocation2 + $0x2c] sm:$0x1] }
  0x5a   : > { %9273 = vst [vmem:[#allocation3_spill] sm:$0xff] %v9272_v9  ;;  %v378_v55 = vsel %vm7146_vm8, 0, %v377_v54  ;;  %v399_v54 = vsel %vm7146_vm8, 0, %v398_v53 }
  0x5b   : > { %2157 = vrot.lane.b32.xlu1 %v2034_v51, %s6838_s17  ;;  %v9274_v51 = vmov 0  ;;  %379 = vst [vmem:[#allocation2 + $0x2c] sm:$0x1] %v378_v55  ;;  %400 = vst [vmem:[#allocation2 + $0x80] sm:$0x1] %v399_v54 }
  0x5c   : > { %2111 = vrot.lane.b32.xlu0 %v1907_v62, %s6838_s17  ;;  %v9275_v51 = vsel %vm7146_vm8, 4294967295, %v9274_v51  ;;  %v328_v62 = vsel %vm7138_vm6, 0, %v327_v61 }
  0x5d   : > { %6570 = vmatmul.mubr.msk.bf16.gmra.mrb[36].mxu1 %vm9236_vm1, %v6951_v10  ;;  %v1912_v10 = vrot.slane %v1910_v60, 7  ;;  %9276 = vst [vmem:[#allocation4_spill] sm:$0xff] %v9275_v51  ;;  %v334_v60 = vsel %vm7138_vm6, 0, %v333_v59  ;;  %329 = vst [vmem:[#allocation2 + $0x3c] sm:$0x1] %v328_v62 }
  0x5e   : > { %6573 = vmatprep.mubr.msk.bf16.mxu1 %vm9236_vm1, %v6954_v11  ;;  %v1908_v11 = vrot.slane %v1903_v46, 4  ;;  %335 = vst [vmem:[#allocation2 + $0x54] sm:$0x1] %v334_v60  ;;  %v360_v62 = vld [vmem:[#allocation2 + $0xc0] sm:$0x1] }
  0x5f   : > { %2159 = vrot.lane.b32.xlu1 %v2043_v0, %s6838_s17  ;;  %v1915_v16 = vor.u32 %v1913_v2, %v1912_v10  ;;  %v1916_v19 = vrot.slane %v1912_v10, 4  ;;  %v390_v0 = vsel %vm7146_vm8, 0, %v389_v63  ;;  %v384_v10 = vsel %vm7146_vm8, 0, %v383_v1  ;;  %v345_v2 = vld [vmem:[#allocation2 + $0x84] sm:$0x1] }
  0x60   : > { %2113 = vrot.lane.b32.xlu0 %v1908_v11, %s6838_s17  ;;  %391 = vst [vmem:[#allocation2 + $0x5c] sm:$0x1] %v390_v0  ;;  %385 = vst [vmem:[#allocation2 + $0x44] sm:$0x1] %v384_v10  ;;  %v346_v11 = vsel %vm7138_vm6, 0, %v345_v2  ;;  %v361_v1 = vsel %vm7138_vm6, 0, %v360_v62 }
  0x61   : > { %347 = vst [vmem:[#allocation2 + $0x84] sm:$0x1] %v346_v11  ;;  %v354_v10 = vld [vmem:[#allocation2 + $0xa8] sm:$0x1]  ;;  %362 = vst [vmem:[#allocation2 + $0xc0] sm:$0x1] %v361_v1 }
  0x63   : > { %2161 = vrot.lane.b32.xlu1 %v2044_v3, %s6838_s17  ;;  %v339_v3 = vld [vmem:[#allocation2 + $0x6c] sm:$0x1] }
  0x64   : > { %2115 = vrot.lane.b32.xlu0 %v1915_v16, %s6838_s17  ;;  %v340_v4 = vsel %vm7138_vm6, 0, %v339_v3  ;;  %v358_v16 = vsel %vm7138_vm6, 0, %v357_v15  ;;  %v355_v3 = vsel %vm7138_vm6, 0, %v354_v10 }
  0x65   : > { %6574 = vmatmul.mubr.msk.bf16.gmra.mrb[40].mxu1 %vm9236_vm1, %v6972_v30  ;;  %v2063_v30 = vshrl.u32 %v1805_v24, 16  ;;  %341 = vst [vmem:[#allocation2 + $0x6c] sm:$0x1] %v340_v4  ;;  %359 = vst [vmem:[#allocation2 + $0xb4] sm:$0x1] %v358_v16 }
  0x66   : > { %6577 = vmatprep.mubr.msk.bf16.mxu1 %vm9236_vm1, %v6976_v34  ;;  %v1924_v34 = vsel %vm6988_vm4, %v1916_v19, %v1923_v20  ;;  %v413_v20 = vld [vmem:[#allocation2 + $0xbc] sm:$0x1]  ;;  %356 = vst [vmem:[#allocation2 + $0xa8] sm:$0x1] %v355_v3 }
  0x67   : > { %2163 = vrot.lane.b32.xlu1 %v2051_v17, %s6838_s17  ;;  %v2065_v35 = vrot.slane %v2063_v30, 7  ;;  %v351_v17 = vld [vmem:[#allocation2 + $0x9c] sm:$0x1]  ;;  %v414_v21 = vsel %vm7146_vm8, 0, %v413_v20  ;;  %v325_v30 = vsel %vm7138_vm6, 0, %v324_v25 }
  0x68   : > { %2117 = vrot.lane.b32.xlu0 %v1924_v34, %s6838_s17  ;;  %v352_v19 = vsel %vm7138_vm6, 0, %v351_v17  ;;  %415 = vst [vmem:[#allocation2 + $0xbc] sm:$0x1] %v414_v21  ;;  %v318_v34 = vld [vmem:[#allocation2 + $0x18] sm:$0x1] }
  0x69   : > { %v2068_v40 = vor.u32 %v2066_v5, %v2065_v35  ;;  %v2069_v43 = vrot.slane %v2065_v35, 4  ;;  %353 = vst [vmem:[#allocation2 + $0x9c] sm:$0x1] %v352_v19  ;;  %326 = vst [vmem:[#allocation2 + $0x30] sm:$0x1] %v325_v30  ;;  %v319_v6 = vsel %vm7138_vm6, 0, %v318_v34 }
  0x6a   : > { %320 = vst [vmem:[#allocation2 + $0x18] sm:$0x1] %v319_v6  ;;  %v330_v5 = vld [vmem:[#allocation2 + $0x48] sm:$0x1]  ;;  %v410_v34 = vld [vmem:[#allocation2 + $0xb0] sm:$0x1] }
  0x6b   : > { %2165 = vrot.lane.b32.xlu1 %v2060_v26, %s6838_s17  ;;  %v2077_v46 = vsel %vm6988_vm4, %v2069_v43, %v2076_v44  ;;  %v331_v36 = vsel %vm7138_vm6, 0, %v330_v5  ;;  %v348_v44 = vld [vmem:[#allocation2 + $0x90] sm:$0x1]  ;;  %v416_v30 = vld [vmem:[#allocation2 + $0xc8] sm:$0x1]  ;;  %v6839_v6 = vmov 0  }
  0x6c   : > { %2119 = vrot.lane.b32.xlu0 %v1925_v29, %s6838_s17  ;;  %v374_v29 = vld [vmem:[#allocation2 + $0x20] sm:$0x1]  ;;  %332 = vst [vmem:[#allocation2 + $0x48] sm:$0x1] %v331_v36  ;;  %301 = vst.msk [vmem:[#allocation2] sm:$0xf] %vm300_vm9, %v6839_v6 }
  0x6d   : > { %6578 = vmatmul.mubr.msk.bf16.gmra.mrb[44].mxu1 %vm9236_vm1, %v6998_v57  ;;  %v1932_v57 = vor.u32 %v1930_v33, %v1929_v31  ;;  %v375_v31 = vsel %vm7146_vm8, 0, %v374_v29  ;;  %v336_v33 = vld [vmem:[#allocation2 + $0x60] sm:$0x1]  ;;  %302 = vst.msk [vmem:[#allocation2 + $0x4] sm:$0xf] %vm300_vm9, %v6839_v6  ;;  %6715 = vset.pattern.permute.xlu0 %v6839_v6  ;;  %v417_v29 = vsel %vm7146_vm8, 0, %v416_v30 }
  0x6e   : > { %376 = vst [vmem:[#allocation2 + $0x20] sm:$0x1] %v375_v31  ;;  %v337_v35 = vsel %vm7138_vm6, 0, %v336_v33  ;;  %304 = vst.msk [vmem:[#allocation2 + $0x8] sm:$0x1] %vm303_vm5, %v6839_v6  ;;  %v411_v31 = vsel %vm7146_vm8, 0, %v410_v34  ;;  %v438_v33 = vlaneseq }
  0x6f   : > { %2167 = vrot.lane.b32.xlu1 %v2061_v32, %s6838_s17  ;;  %338 = vst [vmem:[#allocation2 + $0x60] sm:$0x1] %v337_v35  ;;  %306 = vst.msk [vmem:[#allocation2 + $0xcc] sm:$0xf] %vm300_vm9, %v6839_v6 }
  0x70   : > { %2121 = vrot.lane.b32.xlu0 %v1932_v57, %s6838_s17  ;;  %v393_v57 = vsel %vm7146_vm8, 0, %v392_v39  ;;  %307 = vst.msk [vmem:[#allocation2 + $0xd0] sm:$0xf] %vm300_vm9, %v6839_v6  ;;  %418 = vst [vmem:[#allocation2 + $0xc8] sm:$0x1] %v417_v29  ;;  %v7292_v39 = vshrl.u32 %v438_v33, 7 }
  0x71   : > { %394 = vst [vmem:[#allocation2 + $0x68] sm:$0x1] %v393_v57  ;;  %308 = vst.msk [vmem:[#allocation2 + $0xd4] sm:$0x1] %vm303_vm5, %v6839_v6 }
  0x72   : > { %412 = vst [vmem:[#allocation2 + $0xb0] sm:$0x1] %v411_v31  ;;  %v441_v53 = vadd.s32 16, %v7292_v39  ;;  %v442_v54 = vadd.s32 24, %v7292_v39  ;;  %v440_v10 = vadd.s32 8, %v7292_v39  ;;  %v445_v3 = vadd.s32 48, %v7292_v39 }
  0x73   : > { %2169 = vrot.lane.b32.xlu1 %v2068_v40, %s6838_s17  ;;  %v386_v40 = vld [vmem:[#allocation2 + $0x50] sm:$0x1]  ;;  %v443_v34 = vadd.s32 32, %v7292_v39 }
  0x74   : > { %2123 = vrot.lane.b32.xlu0 %v1941_v45, %s6838_s17  ;;  %v387_v41 = vsel %vm7146_vm8, 0, %v386_v40  ;;  %v349_v45 = vsel %vm7138_vm6, 0, %v348_v44  ;;  %v312_v44 = vld [vmem:[#allocation2] sm:$0x1]  ;;  %v473_v31 = vand.u32 1, %v441_v53  ;;  %v480_v9 = vand.u32 1, %v442_v54 }
  0x75   : > { %388 = vst [vmem:[#allocation2 + $0x50] sm:$0x1] %v387_v41  ;;  %350 = vst [vmem:[#allocation2 + $0x90] sm:$0x1] %v349_v45  ;;  %v444_v53 = vadd.s32 40, %v7292_v39  ;;  %v9311_v54 = vmov 0 }
  0x76   : > { %vm7341_vm10 = vcmp.eq.s32.totalorder %v473_v31, 0  ;;  %vm7349_vm12 = vcmp.eq.s32.totalorder %v480_v9, 0  ;;  %v9320_v31 = vmov 0 }
  0x77   : > { %2171 = vrot.lane.b32.xlu1 %v2077_v46, %s6838_s17  ;;  %v342_v46 = vld [vmem:[#allocation2 + $0x78] sm:$0x1] }
  0x78   : > { %2125 = vrot.lane.b32.xlu0 %v1942_v47, %s6838_s17  ;;  %v343_v47 = vsel %vm7138_vm6, 0, %v342_v46 }
  0x79   : > { %344 = vst [vmem:[#allocation2 + $0x78] sm:$0x1] %v343_v47  ;;  %v313_v47 = vsel %vm7138_vm6, 0, %v312_v44  ;;  %vm7436_vm6 = vmand %vm9245_vm13, %vm9244_vm7  ;;  %vm9341_vm7 = vcmask 24576  }
  0x7a   : > { %314 = vst [vmem:[#allocation2] sm:$0x1] %v313_v47  ;;  %v459_v47 = vand.u32 1, %v7292_v39 }
  0x7b   : > { %2173 = vrot.lane.b32.xlu1 %v2078_v7, %s6838_s17  ;;  %v404_v7 = vld [vmem:[#allocation2 + $0x98] sm:$0x1] }
  0x7c   : > { %v405_v52 = vsel %vm7146_vm8, 0, %v404_v7  ;;  %vm7345_vm11 = vcmp.eq.s32.totalorder %v459_v47, 0  ;;  %v447_v47 = vadd.s32 64, %v7292_v39  ;;  %vm9340_vm8 = vsmask.f32 256 }
  0x7d   : > { %406 = vst [vmem:[#allocation2 + $0x98] sm:$0x1] %v405_v52  ;;  %v9312_v54 = vsel %vm7345_vm11, 4294967295, %v9311_v54  ;;  %vm7448_vm13 = vmand %vm9341_vm7, %vm9340_vm8  ;;  %vm9344_vm7 = vcmask 64512   ;;  %vm9345_vm8 = vcmask 27648  }
  0x7e   : > { %9313 = vst [vmem:[#allocation37_spill] sm:$0xff] %v9312_v54 }
  0x81   : > { %v6725_v54 = vld [vmem:[#allocation2] sm:$0xff]  }
  0x8e   : > { %v7174_v18 = vpop.permute.xlu0 %2079 }
  0x91   : > { %v7200_v37 = vpop.permute.xlu1 %2131 }
  0x92   : > { %v7182_v24 = vpop.permute.xlu0 %2127  ;;  %9279 = vst [vmem:[#allocation7_spill] sm:$0xff] %v7200_v37 }
  0x93   : > { %9277 = vst [vmem:[#allocation5_spill] sm:$0xff] %v7182_v24 }
  0x95   : > { %v7208_v42 = vpop.permute.xlu1 %2133 }
  0x96   : > { %v7186_v26 = vpop.permute.xlu0 %2083  ;;  %9281 = vst [vmem:[#allocation9_spill] sm:$0xff] %v7208_v42  ;;  %v501_v42 = vand.u32 1, %v445_v3  ;;  %v7356_v3 = vld [vmem:[%s9229_s3] ss:$0 sm:$0xff] }
  0x98   : > { %vm7362_vm15 = vcmp.eq.s32.totalorder %v501_v42, 0 }
  0x99   : > { %v7216_v48 = vpop.permute.xlu1 %2081  ;;  %v9321_v31 = vsel %vm7362_vm15, 4294967295, %v9320_v31 }
  0x9a   : > { %v7194_v32 = vpop.permute.xlu0 %2085  ;;  %9322 = vst [vmem:[#allocation40_spill] sm:$0xff] %v9321_v31 }
  0x9b   : > { %9278 = vst [vmem:[#allocation6_spill] sm:$0xff] %v7194_v32 }
  0x9d   : > { %v7224_v55 = vpop.permute.xlu1 %2129 }
  0x9e   : > { %v7202_v38 = vpop.permute.xlu0 %2087  ;;  %9283 = vst [vmem:[#allocation11_spill] sm:$0xff] %v7224_v55 }
  0x9f   : > { %9280 = vst [vmem:[#allocation8_spill] sm:$0xff] %v7202_v38  ;;  %v7388_v38 = vadd.s32 96, %v7292_v39 }
  0xa1   : > { %v7228_v58 = vpop.permute.xlu1 %2135 }
  0xa2   : > { %v7210_v43 = vpop.permute.xlu0 %2089  ;;  %9284 = vst [vmem:[#allocation12_spill] sm:$0xff] %v7228_v58  ;;  %v466_v58 = vand.u32 1, %v440_v10  ;;  %v9314_v10 = vmov 0 }
  0xa3   : > { %9282 = vst [vmem:[#allocation10_spill] sm:$0xff] %v7210_v43  ;;  %v9315_v10 = vsel %vm7349_vm12, 4294967295, %v9314_v10 }
  0xa4   : > { %9316 = vst [vmem:[#allocation38_spill] sm:$0xff] %v9315_v10  ;;  %vm7358_vm14 = vcmp.eq.s32.totalorder %v466_v58, 0  ;;  %v450_v58 = vadd.s32 88, %v7292_v39 }
  0xa5   : > { %v7232_v60 = vpop.permute.xlu1 %2137 }
  0xa6   : > { %v7218_v49 = vpop.permute.xlu0 %2091  ;;  %9285 = vst [vmem:[#allocation13_spill] sm:$0xff] %v7232_v60  ;;  %v536_v37 = vand.u32 1, %v450_v58 }
  0xa8   : > { %vm7430_vm2 = vcmp.eq.s32.totalorder %v536_v37, 0 }
  0xa9   : > { %v7236_v63 = vpop.permute.xlu1 %2139 }
  0xaa   : > { %v7226_v56 = vpop.permute.xlu0 %2093 }
  0xad   : > { %v7260_v16 = vpop.permute.xlu1 %2141 }
  0xae   : > { %v7230_v59 = vpop.permute.xlu0 %2095 }
  0xb1   : > { %v7286_v35 = vpop.permute.xlu1 %2143 }
  0xb2   : > { %v7234_v61 = vpop.permute.xlu0 %2097  ;;  %9297 = vst [vmem:[#allocation25_spill] sm:$0xff] %v7286_v35 }
  0xb3   : > { %9286 = vst [vmem:[#allocation14_spill] sm:$0xff] %v7234_v61  ;;  %v7381_v61 = vadd.s32 112, %v7292_v39 }
  0xb5   : > { %v7312_v62 = vpop.permute.xlu1 %2145 }
  0xb6   : > { %v7238_v0 = vpop.permute.xlu0 %2099  ;;  %9302 = vst [vmem:[#allocation30_spill] sm:$0xff] %v7312_v62 }
  0xb7   : > { %9287 = vst [vmem:[#allocation15_spill] sm:$0xff] %v7238_v0 }
  0xb9   : > { %v7338_v43 = vpop.permute.xlu1 %2147 }
  0xba   : > { %v7262_v17 = vpop.permute.xlu0 %2101  ;;  %9307 = vst [vmem:[#allocation35_spill] sm:$0xff] %v7338_v43 }
  0xbb   : > { %9292 = vst [vmem:[#allocation20_spill] sm:$0xff] %v7262_v17  ;;  %v494_v17 = vand.u32 1, %v444_v53 }
  0xbd   : > { %v7397_v0 = vpop.permute.xlu1 %2149  ;;  %vm7411_vm1 = vcmp.eq.s32.totalorder %v494_v17, 0 }
  0xbe   : > { %v7288_v5 = vpop.permute.xlu0 %2103  ;;  %9325 = vst [vmem:[#allocation41_spill] sm:$0xff] %v7397_v0 }
  0xc1   : > { %v7443_v37 = vpop.permute.xlu1 %2151 }
  0xc2   : > { %v7314_v1 = vpop.permute.xlu0 %2105  ;;  %9339 = vst [vmem:[#allocation43_spill] sm:$0xff] %v7443_v37 }
  0xe8   : > { %v7242_v2 = vpop.f32.mrb[0].mxu1  ;;  %v7244_v11 = vpop.f32.mrb[0].mxu0 }
  0xe9   : > { %9288 = vst [vmem:[#allocation16_spill] sm:$0xff] %v7244_v11  ;;  %v7248_v4 = vpop.f32.mrb[1].mxu1  ;;  %v7250_v8 = vpop.f32.mrb[1].mxu0 }
  0xea   : > { %9289 = vst [vmem:[#allocation17_spill] sm:$0xff] %v7250_v8  ;;  %v7252_v12 = vpop.f32.mrb[2].mxu1  ;;  %v7254_v13 = vpop.f32.mrb[2].mxu0 }
  0xeb   : > { %9290 = vst [vmem:[#allocation18_spill] sm:$0xff] %v7254_v13  ;;  %v7256_v14 = vpop.f32.mrb[3].mxu1  ;;  %v7258_v15 = vpop.f32.mrb[3].mxu0 }
  0xec   : > { %9291 = vst [vmem:[#allocation19_spill] sm:$0xff] %v7258_v15 }
  0xf0   : > { %v7264_v19 = vpop.f32.mrb[4].mxu1  ;;  %v7266_v20 = vpop.f32.mrb[4].mxu0 }
  0xf1   : > { %9293 = vst [vmem:[#allocation21_spill] sm:$0xff] %v7266_v20  ;;  %v7268_v21 = vpop.f32.mrb[5].mxu1  ;;  %v7270_v22 = vpop.f32.mrb[5].mxu0 }
  0xf2   : > { %9294 = vst [vmem:[#allocation22_spill] sm:$0xff] %v7270_v22  ;;  %v7272_v23 = vpop.f32.mrb[6].mxu1  ;;  %v7274_v25 = vpop.f32.mrb[6].mxu0 }
  0xf3   : > { %9295 = vst [vmem:[#allocation23_spill] sm:$0xff] %v7274_v25  ;;  %v7278_v27 = vpop.f32.mrb[7].mxu1  ;;  %v7280_v28 = vpop.f32.mrb[7].mxu0  ;;  %v7400_v25 = vadd.s32 104, %v7292_v39 }
  0xf4   : > { %9296 = vst [vmem:[#allocation24_spill] sm:$0xff] %v7280_v28 }
  0xf8   : > { %v7290_v36 = vpop.f32.mrb[8].mxu1  ;;  %v7294_v57 = vpop.f32.mrb[8].mxu0 }
  0xf9   : > { %9298 = vst [vmem:[#allocation26_spill] sm:$0xff] %v7294_v57  ;;  %v7296_v40 = vpop.f32.mrb[9].mxu1  ;;  %v7298_v41 = vpop.f32.mrb[9].mxu0  ;;  %v7378_v57 = vadd.s32 72, %v7292_v39 }
  0xfa   : > { %9299 = vst [vmem:[#allocation27_spill] sm:$0xff] %v7298_v41  ;;  %v7300_v45 = vpop.f32.mrb[10].mxu1  ;;  %v7302_v46 = vpop.f32.mrb[10].mxu0 }
  0xfb   : > { %9300 = vst [vmem:[#allocation28_spill] sm:$0xff] %v7302_v46  ;;  %v7306_v7 = vpop.f32.mrb[11].mxu1  ;;  %v7308_v52 = vpop.f32.mrb[11].mxu0  ;;  %v9308_v46 = vmov 0 }
  0xfc   : > { %9301 = vst [vmem:[#allocation29_spill] sm:$0xff] %v7308_v52  ;;  %v487_v52 = vand.u32 1, %v443_v34  ;;  %v9309_v46 = vsel %vm7341_vm10, 4294967295, %v9308_v46  ;;  %v9317_v34 = vmov 0 }
  0xfd   : > { %9310 = vst [vmem:[#allocation36_spill] sm:$0xff] %v9309_v46  ;;  %v9318_v34 = vsel %vm7358_vm14, 4294967295, %v9317_v34 }
  0xfe   : > { %9319 = vst [vmem:[#allocation39_spill] sm:$0xff] %v9318_v34  ;;  %vm7369_vm3 = vcmp.eq.s32.totalorder %v487_v52, 0  ;;  %v1660_v34 = vld [vmem:[#allocation2 + $0xc] sm:$0xf] }
 0x100   : > { %v7318_v30 = vpop.f32.mrb[12].mxu1  ;;  %v7321_v6 = vpop.f32.mrb[12].mxu0 }
 0x101   : > { %9303 = vst [vmem:[#allocation31_spill] sm:$0xff] %v7321_v6  ;;  %v7323_v29 = vpop.f32.mrb[13].mxu1  ;;  %v7325_v33 = vpop.f32.mrb[13].mxu0  ;;  %v446_v6 = vadd.s32 56, %v7292_v39 }
 0x102   : > { %9304 = vst [vmem:[#allocation32_spill] sm:$0xff] %v7325_v33  ;;  %v7327_v44 = vpop.f32.mrb[14].mxu1  ;;  %v7330_v51 = vpop.f32.mrb[14].mxu0  ;;  %v449_v33 = vadd.s32 80, %v7292_v39 }
 0x103   : > { %9305 = vst [vmem:[#allocation33_spill] sm:$0xff] %v7330_v51  ;;  %v7332_v60 = vpop.f32.mrb[15].mxu1  ;;  %v7334_v62 = vpop.f32.mrb[15].mxu0  ;;  %v9323_v51 = vmov 0  ;;  %v508_v43 = vand.u32 1, %v446_v6 }
 0x104   : > { %9306 = vst [vmem:[#allocation34_spill] sm:$0xff] %v7334_v62  ;;  %v7367_v62 = vpop.permute.xlu0 %2107  ;;  %v9324_v51 = vsel %vm7369_vm3, 4294967295, %v9323_v51  ;;  %v529_v41 = vand.u32 1, %v449_v33 }
 0x105   : > { %vm7406_vm5 = vcmp.eq.s32.totalorder %v508_v43, 0  ;;  %v9331_v43 = vmov 0 }
 0x106   : > { %vm7419_vm0 = vcmp.eq.s32.totalorder %v529_v41, 0 }
 0x107   : > { %v9332_v43 = vsel %vm7419_vm0, 4294967295, %v9331_v43 }
 0x108   : > { %v6531_v9 = vpop.f32.mrb[16].mxu1 }
 0x109   : > { %v967_v42 = vsel %vm7341_vm10, %v7242_v2, %v6531_v9  ;;  %v854_v32 = vpop.f32.mrb[17].mxu1  ;;  %v7391_v2 = vadd.s32 120, %v7292_v39 }
 0x10a   : > { %v989_v52 = vadd.f32 %v7356_v3, %v967_v42  ;;  %v965_v6 = vsel %vm7345_vm11, %v7248_v4, %v854_v32  ;;  %v6532_v53 = vpop.f32.mrb[18].mxu1  ;;  %v515_v42 = vand.u32 1, %v447_v47  ;;  %v9328_v47 = vmov 0 }
 0x10b   : > { %v987_v33 = vadd.f32 %v7356_v3, %v965_v6  ;;  %v968_v9 = vsel %vm7349_vm12, %v7252_v12, %v6532_v53  ;;  %v857_v28 = vpop.f32.mrb[19].mxu1  ;;  %v9326_v6 = vmov 0  ;;  %v9329_v47 = vsel %vm7411_vm1, 4294967295, %v9328_v47 }
 0x10c   : > { %v6283_v32 = vpack.c.bf16 %v989_v52, %v989_v52  ;;  %v990_v4 = vadd.f32 %v7356_v3, %v968_v9  ;;  %v966_v22 = vsel %vm7358_vm14, %v7256_v14, %v857_v28  ;;  %v9327_v6 = vsel %vm7406_vm5, 4294967295, %v9326_v6  ;;  %v7417_v14 = vpop.permute.xlu0 %2109 }
 0x10d   : > { %v6279_v12 = vpack.c.bf16 %v987_v33, %v987_v33  ;;  %v988_v53 = vadd.f32 %v7356_v3, %v966_v22  ;;  %9330 = vst [vmem:[#allocation42_spill] sm:$0xff] %v7417_v14  ;;  %vm7426_vm9 = vcmp.eq.s32.totalorder %v515_v42, 0  ;;  %v9333_v14 = vmov 0 }
 0x10e   : > { %v1372_v9 = vshrl.u32 %v6283_v32, 16  ;;  %v6284_v0 = vpack.c.bf16 %v990_v4, %v990_v4  ;;  %v1375_v17 = vshll.u32 %v6283_v32, 16  ;;  %v9334_v14 = vsel %vm7426_vm9, 4294967295, %v9333_v14 }
 0x10f   : > { %v1338_v58 = vshrl.u32 %v6279_v12, 16  ;;  %v6280_v33 = vpack.c.bf16 %v988_v53, %v988_v53  ;;  %v1341_v35 = vshll.u32 %v6279_v12, 16  ;;  %v1677_v53 = vld [vmem:[#allocation2 + $0x24] sm:$0xf] }
 0x110   : > { %v1374_v39 = vrot.slane %v1372_v9, 7  ;;  %v1380_v52 = vshrl.u32 %v6284_v0, 16  ;;  %v1383_v24 = vshll.u32 %v6284_v0, 16  ;;  %v6535_v4 = vpop.f32.mrb[20].mxu1  ;;  %v7457_v31 = vpop.permute.xlu0 %2111 }
 0x111   : > { %v1340_v9 = vrot.slane %v1338_v58, 7  ;;  %v1346_v12 = vshrl.u32 %v6280_v33, 16  ;;  %v1349_v0 = vshll.u32 %v6280_v33, 16  ;;  %v971_v42 = vsel %vm7362_vm15, %v7264_v19, %v6535_v4  ;;  %v870_v20 = vpop.f32.mrb[21].mxu1  ;;  %v1681_v19 = vld [vmem:[#allocation2 + $0x2c] sm:$0x1] }
 0x112   : > { %v1377_v22 = vor.u32 %v1375_v17, %v1374_v39  ;;  %v1378_v28 = vrot.slane %v1374_v39, 4  ;;  %v1382_v15 = vrot.slane %v1380_v52, 7  ;;  %v993_v10 = vadd.f32 %v7356_v3, %v971_v42  ;;  %v6536_v13 = vpop.f32.mrb[22].mxu1 }
 0x113   : > { %v1343_v8 = vor.u32 %v1341_v35, %v1340_v9  ;;  %v1344_v58 = vrot.slane %v1340_v9, 4  ;;  %v1348_v4 = vrot.slane %v1346_v12, 7  ;;  %v969_v39 = vsel %vm7369_vm3, %v7268_v21, %v870_v20  ;;  %v873_v17 = vpop.f32.mrb[23].mxu1  ;;  %v1667_v35 = vld [vmem:[#allocation2 + $0x14] sm:$0x1] }
 0x114   : > { %v1678_v52 = vsel %vm7436_vm6, %v1377_v22, %v1677_v53  ;;  %v1385_v42 = vor.u32 %v1383_v24, %v1382_v15  ;;  %v1387_v37 = vrot.slane %v1382_v15, 4  ;;  %v6291_v9 = vpack.c.bf16 %v993_v10, %v993_v10 }
 0x115   : > { %1679 = vst [vmem:[#allocation2 + $0x24] sm:$0xf] %v1678_v52  ;;  %v1661_v46 = vsel %vm7436_vm6, %v1343_v8, %v1660_v34  ;;  %v1351_v11 = vor.u32 %v1349_v0, %v1348_v4  ;;  %v1353_v12 = vrot.slane %v1348_v4, 4  ;;  %v991_v55 = vadd.f32 %v7356_v3, %v969_v39 }
 0x116   : > { %1662 = vst [vmem:[#allocation2 + $0xc] sm:$0xf] %v1661_v46  ;;  %v1386_v20 = vsel %vm6988_vm4, %v1378_v28, %v1385_v42  ;;  %v1682_v24 = vsel %vm7448_vm13, %v1387_v37, %v1681_v19  ;;  %v1440_v15 = vshrl.u32 %v6291_v9, 16  ;;  %v7467_v21 = vsel %vm9344_vm7, %v6725_v54, 0  ;;  %v7477_v28 = vpop.permute.xlu1 %2153 }
 0x117   : > { %1680 = vst.msk [vmem:[#allocation2 + $0x28] sm:$0xf] %vm9345_vm8, %v1386_v20  ;;  %1683 = vst [vmem:[#allocation2 + $0x2c] sm:$0x1] %v1682_v24  ;;  %v1352_v8 = vsel %vm6988_vm4, %v1344_v58, %v1351_v11  ;;  %v1668_v10 = vsel %vm7448_vm13, %v1353_v12, %v1667_v35  ;;  %v6287_v46 = vpack.c.bf16 %v991_v55, %v991_v55  ;;  %v9346_v22 = vand.u32 1, %v7378_v57  ;;  %v7521_v35 = vpop.permute.xlu0 %2113 }
 0x118   : > { %v972_v34 = vsel %vm7406_vm5, %v7272_v23, %v6536_v13  ;;  %vm9349_vm8 = vcmask 60448   ;;  %vm9350_vm3 = vcmask 27648   ;;  %1669 = vst [vmem:[#allocation2 + $0x14] sm:$0x1] %v1668_v10  ;;  %v7488_v11 = vrot.slane %v1440_v15, 7  ;;  %v6539_v23 = vpop.f32.mrb[24].mxu1 }
 0x119   : > { %vm7481_vm7 = vcmp.eq.s32.totalorder %v9346_v22, 0  ;;  %2245 = vst.msk [vmem:[#allocation2 + $0x28] sm:$0xf] %vm9349_vm8, %v7226_v56  ;;  %v1443_v55 = vshll.u32 %v6291_v9, 16  ;;  %v994_v53 = vadd.f32 %v7356_v3, %v972_v34  ;;  %v970_v13 = vsel %vm7411_vm1, %v7278_v27, %v873_v17  ;;  %vm9351_vm5 = vmmov %vm9349_vm8  ;;  %v1705_v57 = vld [vmem:[#allocation2 + $0x54] sm:$0xf] }
 0x11a   : > { %1664 = vst.msk [vmem:[#allocation2 + $0x10] sm:$0xf] %vm9350_vm3, %v1352_v8  ;;  %v1406_v0 = vshrl.u32 %v6287_v46, 16  ;;  %v1409_v37 = vshll.u32 %v6287_v46, 16  ;;  %v992_v56 = vadd.f32 %v7356_v3, %v970_v13  ;;  %v975_v58 = vsel %vm7419_vm0, %v7290_v36, %v6539_v23  ;;  %v886_v19 = vpop.f32.mrb[25].mxu1 }
 0x11b   : > { %2229 = vst.msk [vmem:[#allocation2 + $0x10] sm:$0xf] %vm9351_vm5, %v7216_v48  ;;  %v9352_v4 = vand.u32 1, %v7381_v61  ;;  %v9355_v27 = vand.u32 1, %v7388_v38  ;;  %v9356_v48 = vmov 0  ;;  %vm9359_vm1 = vcmask 60448  }
 0x11c   : > { %vm9358_vm5 = vsmask.f32 7938  ;;  %v1445_v36 = vor.u32 %v1443_v55, %v7488_v11  ;;  %v1446_v61 = vrot.slane %v7488_v11, 4  ;;  %v6292_v52 = vpack.c.bf16 %v994_v53, %v994_v53  ;;  %v6540_v38 = vpop.f32.mrb[26].mxu1  ;;  %v2242_v8 = vld [vmem:[#allocation2 + $0x24] sm:$0xf] }
 0x11d   : > { %vm7502_vm3 = vcmp.eq.s32.totalorder %v9352_v4, 0  ;;  %vm7508_vm8 = vcmp.eq.s32.totalorder %v9355_v27, 0  ;;  %vm7514_vm15 = vmand %vm9359_vm1, %vm9358_vm5  ;;  %v997_v42 = vadd.f32 %v7356_v3, %v975_v58  ;;  %v1408_v9 = vrot.slane %v1406_v0, 7  ;;  %v889_v15 = vpop.f32.mrb[27].mxu1  ;;  %v1691_v34 = vld [vmem:[#allocation2 + $0x3c] sm:$0xf] }
 0x11e   : > { %v9357_v48 = vsel %vm7508_vm8, 4294967295, %v9356_v48  ;;  %v6288_v12 = vpack.c.bf16 %v992_v56, %v992_v56  ;;  %v973_v20 = vsel %vm7426_vm9, %v7296_v40, %v886_v19  ;;  %v976_v24 = vsel %vm7430_vm2, %v7300_v45, %v6540_v38  ;;  %v2225_v23 = vld [vmem:[#allocation2 + $0xc] sm:$0xf]  ;;  %v1709_v58 = vld [vmem:[#allocation2 + $0x5c] sm:$0x1]  ;;  %v7546_v19 = vpop.permute.xlu1 %2155 }
 0x11f   : > { %vm9362_vm1 = vsmask.f32 256  ;;  %vm9363_vm5 = vcmask 57376   ;;  %v1706_v46 = vsel %vm7436_vm6, %v1445_v36, %v1705_v57  ;;  %v1448_v22 = vshrl.u32 %v6292_v52, 16  ;;  %v2246_v4 = vld [vmem:[#allocation2 + $0x2c] sm:$0x1] }
 0x120   : > { %vm7531_vm0 = vmand %vm9363_vm5, %vm9362_vm1  ;;  %v1451_v55 = vshll.u32 %v6292_v52, 16  ;;  %v6299_v53 = vpack.c.bf16 %v997_v42, %v997_v42  ;;  %v9366_v40 = vand.u32 1, %v7391_v2  ;;  %v2243_v45 = vsel %vm7514_vm15, %v7218_v49, %v2242_v8  ;;  %1707 = vst [vmem:[#allocation2 + $0x54] sm:$0xf] %v1706_v46  ;;  %v1695_v46 = vld [vmem:[#allocation2 + $0x44] sm:$0x1] }
 0x121   : > { %v1411_v0 = vor.u32 %v1409_v37, %v1408_v9  ;;  %v1412_v56 = vrot.slane %v1408_v9, 4  ;;  %v1414_v57 = vshrl.u32 %v6288_v12, 16  ;;  %2244 = vst [vmem:[#allocation2 + $0x24] sm:$0xf] %v2243_v45  ;;  %v2226_v2 = vsel %vm7514_vm15, %v7174_v18, %v2225_v23  ;;  %v2232_v37 = vld [vmem:[#allocation2 + $0x14] sm:$0x1] }
 0x122   : > { %vm7539_vm9 = vcmp.eq.s32.totalorder %v9366_v40, 0  ;;  %v1450_v27 = vrot.slane %v1448_v22, 7  ;;  %v1417_v36 = vshll.u32 %v6288_v12, 16  ;;  %v1508_v52 = vshrl.u32 %v6299_v53, 16  ;;  %2227 = vst [vmem:[#allocation2 + $0xc] sm:$0xf] %v2226_v2  ;;  %v2116_v40 = vpop.permute.xlu0 %2115 }
 0x123   : > { %v2247_v49 = vsel %vm7531_vm0, %v7230_v59, %v2246_v4  ;;  %v1692_v42 = vsel %vm7436_vm6, %v1411_v0, %v1691_v34  ;;  %v1416_v38 = vrot.slane %v1414_v57, 7  ;;  %v1511_v9 = vshll.u32 %v6299_v53, 16  ;;  %v6543_v45 = vpop.f32.mrb[28].mxu1  ;;  %v1733_v2 = vld [vmem:[#allocation2 + $0x84] sm:$0xf] }
 0x124   : > { %2248 = vst [vmem:[#allocation2 + $0x2c] sm:$0x1] %v2247_v49  ;;  %v2233_v18 = vsel %vm7531_vm0, %v7186_v26, %v2232_v37  ;;  %1693 = vst [vmem:[#allocation2 + $0x3c] sm:$0xf] %v1692_v42  ;;  %v1453_v8 = vor.u32 %v1451_v55, %v1450_v27  ;;  %v1455_v12 = vrot.slane %v1450_v27, 4  ;;  %v7559_v22 = vrot.slane %v1508_v52, 7  ;;  %v7574_v49 = vpop.permute.xlu1 %2157 }
 0x125   : > { %2234 = vst [vmem:[#allocation2 + $0x14] sm:$0x1] %v2233_v18  ;;  %v1419_v59 = vor.u32 %v1417_v36, %v1416_v38  ;;  %v1421_v23 = vrot.slane %v1416_v38, 4  ;;  %v995_v34 = vadd.f32 %v7356_v3, %v973_v20  ;;  %v998_v53 = vadd.f32 %v7356_v3, %v976_v24  ;;  %v902_v0 = vpop.f32.mrb[29].mxu1 }
 0x126   : > { %v1710_v26 = vsel %vm7448_vm13, %v1455_v12, %v1709_v58  ;;  %v1513_v55 = vor.u32 %v1511_v9, %v7559_v22  ;;  %v1514_v57 = vrot.slane %v7559_v22, 4  ;;  %v974_v4 = vsel %vm7481_vm7, %v7306_v7, %v889_v15  ;;  %v6544_v27 = vpop.f32.mrb[30].mxu1 }
 0x127   : > { %1711 = vst [vmem:[#allocation2 + $0x5c] sm:$0x1] %v1710_v26  ;;  %v1420_v36 = vsel %vm6988_vm4, %v1412_v56, %v1419_v59  ;;  %v1696_v20 = vsel %vm7448_vm13, %v1421_v23, %v1695_v46  ;;  %v6295_v24 = vpack.c.bf16 %v995_v34, %v995_v34  ;;  %v6300_v52 = vpack.c.bf16 %v998_v53, %v998_v53  ;;  %v7576_v58 = vpop.f32.mrb[31].mxu1  ;;  %v2270_v37 = vld [vmem:[#allocation2 + $0x54] sm:$0xf] }
 0x128   : > { %vm9369_vm1 = vcmask 27648   ;;  %1697 = vst [vmem:[#allocation2 + $0x44] sm:$0x1] %v1696_v20  ;;  %v1734_v7 = vsel %vm7436_vm6, %v1513_v55, %v1733_v2  ;;  %v996_v15 = vadd.f32 %v7356_v3, %v974_v4  ;;  %v979_v56 = vsel %vm7502_vm3, %v7318_v30, %v6543_v45  ;;  %v2118_v45 = vpop.permute.xlu0 %2117  ;;  %v1719_v34 = vld [vmem:[#allocation2 + $0x6c] sm:$0xf]  ;;  %v7611_v20 = vpop.f32.mrb[32].mxu1 }
 0x129   : > { %1694 = vst.msk [vmem:[#allocation2 + $0x40] sm:$0xf] %vm9369_vm1, %v1420_v36  ;;  %v977_v42 = vsel %vm7508_vm8, %v7323_v29, %v902_v0  ;;  %v9370_v38 = vand.u32 1, %v7400_v25  ;;  %vm9373_vm1 = vcmask 60448   ;;  %1735 = vst [vmem:[#allocation2 + $0x84] sm:$0xf] %v1734_v7  ;;  %v2271_v30 = vsel %vm7514_vm15, %v2116_v40, %v2270_v37 }
 0x12a   : > { %2259 = vst.msk [vmem:[#allocation2 + $0x40] sm:$0xf] %vm9373_vm1, %v7314_v1  ;;  %v1474_v18 = vshrl.u32 %v6295_v24, 16  ;;  %v1477_v12 = vshll.u32 %v6295_v24, 16  ;;  %v1516_v46 = vshrl.u32 %v6300_v52, 16  ;;  %v1519_v22 = vshll.u32 %v6300_v52, 16 }
 0x12b   : > { %vm7590_vm5 = vcmp.eq.s32.totalorder %v9370_v38, 0  ;;  %v6296_v59 = vpack.c.bf16 %v996_v15, %v996_v15  ;;  %v1001_v29 = vadd.f32 %v7356_v3, %v979_v56  ;;  %v999_v25 = vadd.f32 %v7356_v3, %v977_v42  ;;  %v2256_v23 = vld [vmem:[#allocation2 + $0x3c] sm:$0xf]  ;;  %2272 = vst [vmem:[#allocation2 + $0x54] sm:$0xf] %v2271_v30 }
 0x12c   : > { %v1476_v2 = vrot.slane %v1474_v18, 7  ;;  %v1518_v53 = vrot.slane %v1516_v46, 7  ;;  %v1454_v1 = vsel %vm6988_vm4, %v1446_v61, %v1453_v8  ;;  %v980_v0 = vsel %vm7539_vm9, %v7327_v44, %v6544_v27  ;;  %v1737_v26 = vld [vmem:[#allocation2 + $0x8c] sm:$0x1]  ;;  %v7614_v44 = vpop.permute.xlu1 %2159  ;;  %v7616_v27 = vpop.f32.mrb[33].mxu1 }
 0x12d   : > { %v2257_v40 = vsel %vm7514_vm15, %v7288_v5, %v2256_v23  ;;  %v1482_v55 = vshrl.u32 %v6296_v59, 16  ;;  %v1485_v4 = vshll.u32 %v6296_v59, 16  ;;  %v6307_v36 = vpack.c.bf16 %v1001_v29, %v1001_v29  ;;  %v1723_v52 = vld [vmem:[#allocation2 + $0x74] sm:$0x1]  ;;  %v7618_v56 = vpop.f32.mrb[34].mxu1 }
 0x12e   : > { %vm9374_vm1 = vcmask 27648   ;;  %2258 = vst [vmem:[#allocation2 + $0x3c] sm:$0xf] %v2257_v40  ;;  %v1479_v11 = vor.u32 %v1477_v12, %v1476_v2  ;;  %v1480_v24 = vrot.slane %v1476_v2, 4  ;;  %v1521_v61 = vor.u32 %v1519_v22, %v1518_v53  ;;  %v1761_v46 = vld [vmem:[#allocation2 + $0xb4] sm:$0xf] }
 0x12f   : > { %1708 = vst.msk [vmem:[#allocation2 + $0x58] sm:$0xf] %vm9374_vm1, %v1454_v1  ;;  %v1523_v8 = vrot.slane %v1518_v53, 4  ;;  %vm9375_vm8 = vcmask 60448   ;;  %v1484_v5 = vrot.slane %v1482_v55, 7  ;;  %v1576_v7 = vshrl.u32 %v6307_v36, 16  ;;  %v2120_v53 = vpop.permute.xlu0 %2119 }
 0x130   : > { %2273 = vst.msk [vmem:[#allocation2 + $0x58] sm:$0xf] %vm9375_vm8, %v2118_v45  ;;  %v1579_v15 = vshll.u32 %v6307_v36, 16  ;;  %v6303_v37 = vpack.c.bf16 %v999_v25, %v999_v25  ;;  %v2260_v42 = vld [vmem:[#allocation2 + $0x44] sm:$0x1]  ;;  %v1720_v38 = vsel %vm7436_vm6, %v1479_v11, %v1719_v34  ;;  %v1522_v18 = vsel %vm6988_vm4, %v1514_v57, %v1521_v61  ;;  %v7627_v59 = vpop.f32.mrb[35].mxu1  ;;  %vm9376_vm8 = vmmov %vm9374_vm1  ;;  %v7653_v11 = vpop.permute.xlu1 %2161 }
 0x131   : > { %v1738_v12 = vsel %vm7448_vm13, %v1523_v8, %v1737_v26  ;;  %v1002_v22 = vadd.f32 %v7356_v3, %v980_v0  ;;  %v2261_v30 = vsel %vm7531_vm0, %v7367_v62, %v2260_v42  ;;  %v2298_v29 = vld [vmem:[#allocation2 + $0x84] sm:$0xf]  ;;  %1721 = vst [vmem:[#allocation2 + $0x6c] sm:$0xf] %v1720_v38  ;;  %1736 = vst.msk [vmem:[#allocation2 + $0x88] sm:$0xf] %vm9376_vm8, %v1522_v18 }
 0x132   : > { %1739 = vst [vmem:[#allocation2 + $0x8c] sm:$0x1] %v1738_v12  ;;  %v1487_v25 = vor.u32 %v1485_v4, %v1484_v5  ;;  %v1489_v45 = vrot.slane %v1484_v5, 4  ;;  %v7633_v57 = vrot.slane %v1576_v7, 7  ;;  %2262 = vst [vmem:[#allocation2 + $0x44] sm:$0x1] %v2261_v30  ;;  %v2299_v23 = vsel %vm7514_vm15, %v7236_v63, %v2298_v29 }
 0x133   : > { %vm9377_vm1 = vcmask 60448   ;;  %v1542_v2 = vshrl.u32 %v6303_v37, 16  ;;  %v1545_v34 = vshll.u32 %v6303_v37, 16  ;;  %v6308_v62 = vpack.c.bf16 %v1002_v22, %v1002_v22  ;;  %v2274_v1 = vld [vmem:[#allocation2 + $0x5c] sm:$0x1]  ;;  %v6571_v37 = vpop.f32.mrb[36].mxu1 }
 0x134   : > { %2301 = vst.msk [vmem:[#allocation2 + $0x88] sm:$0xf] %vm9377_vm1, %v7260_v16  ;;  %2300 = vst [vmem:[#allocation2 + $0x84] sm:$0xf] %v2299_v23  ;;  %v1488_v0 = vsel %vm6988_vm4, %v1480_v24, %v1487_v25  ;;  %v1724_v40 = vsel %vm7448_vm13, %v1489_v45, %v1723_v52  ;;  %v1581_v26 = vor.u32 %v1579_v15, %v7633_v57  ;;  %v1582_v55 = vrot.slane %v7633_v57, 4  ;;  %v9378_v61 = vld [vmem:[#allocation11_spill] sm:$0xff] }
 0x135   : > { %1722 = vst.msk [vmem:[#allocation2 + $0x70] sm:$0xf] %vm9376_vm8, %v1488_v0  ;;  %1725 = vst [vmem:[#allocation2 + $0x74] sm:$0x1] %v1724_v40  ;;  %v7647_v63 = vrot.slane %v1542_v2, 7  ;;  %v1584_v16 = vshrl.u32 %v6308_v62, 16  ;;  %v978_v36 = vsel %vm7590_vm5, %v7332_v60, %v7576_v58  ;;  %v2275_v7 = vsel %vm7531_vm0, %v2120_v53, %v2274_v1  ;;  %v2164_v58 = vpop.permute.xlu1 %2163 }
 0x136   : > { %v1587_v4 = vshll.u32 %v6308_v62, 16  ;;  %v2382_v24 = vld [vmem:[%s9230_s4] sm:$0x3]  ;;  %2287 = vst.msk [vmem:[#allocation2 + $0x70] sm:$0xf] %vm9377_vm1, %v9378_v61  ;;  %v1762_v8 = vsel %vm7436_vm6, %v1581_v26, %v1761_v46  ;;  %v1000_v52 = vadd.f32 %v7356_v3, %v978_v36  ;;  %vm9381_vm8 = vcmask 64512  }
 0x137   : > { %v1747_v5 = vld [vmem:[#allocation2 + $0x9c] sm:$0xf]  ;;  %v9379_v60 = vld [vmem:[#allocation16_spill] sm:$0xff]  ;;  %6363 = vmatprep.mubr.msk.bf16.mxu1 %vm9381_vm8, %v2382_v24  ;;  %1763 = vst [vmem:[#allocation2 + $0xb4] sm:$0xf] %v1762_v8  ;;  %v1547_v42 = vor.u32 %v1545_v34, %v7647_v63  ;;  %v1548_v38 = vrot.slane %v7647_v63, 4 }
 0x138   : > { %v1209_v15 = vsel %vm7341_vm10, %v9379_v60, %v7611_v20  ;;  %v1586_v18 = vrot.slane %v1584_v16, 7  ;;  %2276 = vst [vmem:[#allocation2 + $0x5c] sm:$0x1] %v2275_v7  ;;  %v7673_v46 = vpop.f32.mrb[37].mxu1  ;;  %v1765_v22 = vld [vmem:[#allocation2 + $0xbc] sm:$0x1]  ;;  %v6304_v30 = vpack.c.bf16 %v1000_v52, %v1000_v52 }
 0x139   : > { %v1225_v12 = vadd.f32 %v7356_v3, %v1209_v15  ;;  %v9382_v29 = vld [vmem:[#allocation17_spill] sm:$0xff]  ;;  %v9384_v45 = vld [vmem:[#allocation18_spill] sm:$0xff]  ;;  %v9386_v34 = vld [vmem:[#allocation19_spill] sm:$0xff]  ;;  %v7687_v1 = vpop.f32.mrb[38].mxu1  ;;  %v1748_v26 = vsel %vm7436_vm6, %v1547_v42, %v1747_v5 }
 0x13a   : > { %v1207_v20 = vsel %vm7345_vm11, %v9382_v29, %v7616_v27  ;;  %v1210_v2 = vsel %vm7349_vm12, %v9384_v45, %v7618_v56  ;;  %v1208_v53 = vsel %vm7358_vm14, %v9386_v34, %v7627_v59  ;;  %v2284_v0 = vld [vmem:[#allocation2 + $0x6c] sm:$0xf]  ;;  %v7691_v63 = vor.u32 %v1587_v4, %v1586_v18  ;;  %v7693_v36 = vpop.f32.mrb[39].mxu1  ;;  %1749 = vst [vmem:[#allocation2 + $0x9c] sm:$0xf] %v1748_v26  ;;  %v9391_v25 = vld [vmem:[#allocation40_spill] sm:$0xff]  ;;  %vm9396_vm12 = vmmov %vm9377_vm1 }
 0x13b   : > { %v2302_v40 = vld [vmem:[#allocation2 + $0x8c] sm:$0x1]  ;;  %v1591_v27 = vrot.slane %v1586_v18, 4  ;;  %v6285_v16 = vpack.c.bf16 %v1225_v12, %v1225_v12  ;;  %v1550_v8 = vshrl.u32 %v6304_v30, 16  ;;  %v1553_v52 = vshll.u32 %v6304_v30, 16  ;;  %v9393_v45 = vld [vmem:[#allocation7_spill] sm:$0xff] }
 0x13c   : > { %v9388_v24 = vld [vmem:[#allocation5_spill] sm:$0xff]  ;;  %v1223_v60 = vadd.f32 %v7356_v3, %v1207_v20  ;;  %v2288_v15 = vld [vmem:[#allocation2 + $0x74] sm:$0x1]  ;;  %v1226_v18 = vadd.f32 %v7356_v3, %v1210_v2  ;;  %v1224_v12 = vadd.f32 %v7356_v3, %v1208_v53  ;;  %vm9392_vm10 = vnez %v9391_v25  ;;  %v1751_v23 = vld [vmem:[#allocation2 + $0xa4] sm:$0x1]  ;;  %v7713_v53 = vpop.f32.mrb[40].mxu1 }
 0x13d   : > { %v2285_v56 = vsel %vm7514_vm15, %v9388_v24, %v2284_v0  ;;  %v9389_v61 = vld [vmem:[#allocation25_spill] sm:$0xff]  ;;  %v1766_v4 = vsel %vm7448_vm13, %v1591_v27, %v1765_v22  ;;  %v1389_v5 = vshrl.u32 %v6285_v16, 16  ;;  %v1392_v7 = vshll.u32 %v6285_v16, 16  ;;  %v1684_v26 = vld [vmem:[#allocation2 + $0x30] sm:$0xf]  ;;  %v9401_v57 = vld [vmem:[#allocation23_spill] sm:$0xff] }
 0x13e   : > { %v2303_v59 = vsel %vm7531_vm0, %v9389_v61, %v2302_v40  ;;  %2286 = vst [vmem:[#allocation2 + $0x6c] sm:$0xf] %v2285_v56  ;;  %1767 = vst [vmem:[#allocation2 + $0xbc] sm:$0x1] %v1766_v4  ;;  %v1552_v42 = vrot.slane %v1550_v8, 7  ;;  %v9390_v29 = vld [vmem:[#allocation21_spill] sm:$0xff]  ;;  %v2289_v22 = vsel %vm7531_vm0, %v9393_v45, %v2288_v15  ;;  %v6281_v62 = vpack.c.bf16 %v1223_v60, %v1223_v60 }
 0x13f   : > { %2304 = vst [vmem:[#allocation2 + $0x8c] sm:$0x1] %v2303_v59  ;;  %v1213_v30 = vsel %vm9392_vm10, %v9390_v29, %v6571_v37  ;;  %v1391_v34 = vrot.slane %v1389_v5, 7  ;;  %2290 = vst [vmem:[#allocation2 + $0x74] sm:$0x1] %v2289_v22  ;;  %v6286_v2 = vpack.c.bf16 %v1226_v18, %v1226_v18  ;;  %v6282_v27 = vpack.c.bf16 %v1224_v12, %v1224_v12  ;;  %v7715_v59 = vpop.f32.mrb[41].mxu1  ;;  %v2166_v29 = vpop.permute.xlu1 %2165 }
 0x140   : > { %v1229_v20 = vadd.f32 %v7356_v3, %v1213_v30  ;;  %v1555_v0 = vor.u32 %v1553_v52, %v1552_v42  ;;  %v1557_v40 = vrot.slane %v1552_v42, 4  ;;  %v1355_v37 = vshrl.u32 %v6281_v62, 16  ;;  %v2326_v61 = vld [vmem:[#allocation2 + $0xb4] sm:$0xf]  ;;  %v7721_v60 = vpop.f32.mrb[42].mxu1 }
 0x141   : > { %v1394_v16 = vor.u32 %v1392_v7, %v1391_v34  ;;  %v1395_v24 = vrot.slane %v1391_v34, 4  ;;  %v1358_v56 = vshll.u32 %v6281_v62, 16  ;;  %v1397_v52 = vshrl.u32 %v6286_v2, 16  ;;  %v2312_v15 = vld [vmem:[#allocation2 + $0x9c] sm:$0xf]  ;;  %v7726_v25 = vpop.f32.mrb[43].mxu1 }
 0x142   : > { %v1556_v8 = vsel %vm6988_vm4, %v1548_v38, %v1555_v0  ;;  %v1752_v4 = vsel %vm7448_vm13, %v1557_v40, %v1751_v23  ;;  %v1400_v5 = vshll.u32 %v6286_v2, 16  ;;  %vm9394_vm11 = vcmask 27648   ;;  %v9395_v38 = vld [vmem:[#allocation43_spill] sm:$0xff]  ;;  %v9397_v2 = vld [vmem:[#allocation22_spill] sm:$0xff] }
 0x143   : > { %1750 = vst.msk [vmem:[#allocation2 + $0xa0] sm:$0xf] %vm9394_vm11, %v1556_v8  ;;  %1753 = vst [vmem:[#allocation2 + $0xa4] sm:$0x1] %v1752_v4  ;;  %v1685_v7 = vsel %vm7436_vm6, %v1394_v16, %v1684_v26  ;;  %v1357_v42 = vrot.slane %v1355_v37, 7  ;;  %v1363_v18 = vshrl.u32 %v6282_v27, 16  ;;  %v2313_v30 = vsel %vm7514_vm15, %v9395_v38, %v2312_v15 }
 0x144   : > { %v1366_v12 = vshll.u32 %v6282_v27, 16  ;;  %2315 = vst.msk [vmem:[#allocation2 + $0xa0] sm:$0xf] %vm9396_vm12, %v7477_v28  ;;  %1686 = vst [vmem:[#allocation2 + $0x30] sm:$0xf] %v1685_v7  ;;  %v1399_v22 = vrot.slane %v1397_v52, 7  ;;  %v2327_v23 = vsel %vm7514_vm15, %v2164_v58, %v2326_v61  ;;  %v6293_v34 = vpack.c.bf16 %v1229_v20, %v1229_v20 }
 0x145   : > { %v1670_v45 = vld [vmem:[#allocation2 + $0x18] sm:$0xf]  ;;  %2314 = vst [vmem:[#allocation2 + $0x9c] sm:$0xf] %v2313_v30  ;;  %v1360_v62 = vor.u32 %v1358_v56, %v1357_v42  ;;  %v1361_v0 = vrot.slane %v1357_v42, 4  ;;  %v1365_v26 = vrot.slane %v1363_v18, 7  ;;  %vm9398_vm14 = vnez %v9324_v51  ;;  %vm9399_vm1 = vmmov %vm9394_vm11 }
 0x146   : > { %v1688_v40 = vld [vmem:[#allocation2 + $0x38] sm:$0x1]  ;;  %2328 = vst [vmem:[#allocation2 + $0xb4] sm:$0xf] %v2327_v23  ;;  %v1211_v27 = vsel %vm9398_vm14, %v9397_v2, %v7673_v46  ;;  %v1402_v16 = vor.u32 %v1400_v5, %v1399_v22  ;;  %v1404_v28 = vrot.slane %v1399_v22, 4  ;;  %v1457_v8 = vshrl.u32 %v6293_v34, 16  ;;  %vm9400_vm8 = vmmov %vm9399_vm1 }
 0x147   : > { %v1674_v37 = vld [vmem:[#allocation2 + $0x20] sm:$0x1]  ;;  %v1460_v4 = vshll.u32 %v6293_v34, 16  ;;  %v1671_v58 = vsel %vm7436_vm6, %v1360_v62, %v1670_v45  ;;  %v1368_v20 = vor.u32 %v1366_v12, %v1365_v26  ;;  %v1370_v61 = vrot.slane %v1365_v26, 4  ;;  %v7753_v15 = vpop.f32.mrb[44].mxu1  ;;  %v9403_v45 = vld [vmem:[#allocation15_spill] sm:$0xff]  ;;  %vm9404_vm11 = vmmov %vm9396_vm12 }
 0x148   : > { %v1227_v56 = vadd.f32 %v7356_v3, %v1211_v27  ;;  %1672 = vst [vmem:[#allocation2 + $0x18] sm:$0xf] %v1671_v58  ;;  %v1403_v52 = vsel %vm6988_vm4, %v1395_v24, %v1402_v16  ;;  %v1689_v51 = vsel %vm7448_vm13, %v1404_v28, %v1688_v40  ;;  %v7746_v46 = vrot.slane %v1457_v8, 7  ;;  %v1712_v42 = vld [vmem:[#allocation2 + $0x60] sm:$0xf]  ;;  %v7765_v38 = vpop.f32.mrb[45].mxu1  ;;  %vm9405_vm12 = vmmov %vm9399_vm1 }
 0x149   : > { %v1590_v5 = vsel %vm6988_vm4, %v1582_v55, %v7691_v63  ;;  %1687 = vst.msk [vmem:[#allocation2 + $0x34] sm:$0xf] %vm9399_vm1, %v1403_v52  ;;  %1690 = vst [vmem:[#allocation2 + $0x38] sm:$0x1] %v1689_v51  ;;  %v1369_v7 = vsel %vm6988_vm4, %v1361_v0, %v1368_v20  ;;  %v1675_v24 = vsel %vm7448_vm13, %v1370_v61, %v1674_v37  ;;  %vm9402_vm10 = vnez %v9327_v6  ;;  %v2168_v63 = vpop.permute.xlu1 %2167  ;;  %v2330_v12 = vld [vmem:[#allocation2 + $0xbc] sm:$0x1] }
 0x14a   : > { %v6289_v18 = vpack.c.bf16 %v1227_v56, %v1227_v56  ;;  %1764 = vst.msk [vmem:[#allocation2 + $0xb8] sm:$0xf] %vm9400_vm8, %v1590_v5  ;;  %v1214_v55 = vsel %vm9402_vm10, %v9401_v57, %v7687_v1  ;;  %v2316_v30 = vld [vmem:[#allocation2 + $0xa4] sm:$0x1]  ;;  %1676 = vst [vmem:[#allocation2 + $0x20] sm:$0x1] %v1675_v24  ;;  %v1462_v22 = vor.u32 %v1460_v4, %v7746_v46  ;;  %vm9408_vm1 = vnez %v9329_v47 }
 0x14b   : > { %2252 = vst.msk [vmem:[#allocation2 + $0x34] sm:$0xf] %vm9404_vm11, %v9403_v45  ;;  %v1463_v23 = vrot.slane %v7746_v46, 4  ;;  %vm9406_vm14 = vmmov %vm9404_vm11  ;;  %v1230_v6 = vadd.f32 %v7356_v3, %v1214_v55  ;;  %v9407_v1 = vld [vmem:[#allocation24_spill] sm:$0xff]  ;;  %v7778_v62 = vpop.f32.mrb[46].mxu1  ;;  %v2317_v0 = vsel %vm7531_vm0, %v7546_v19, %v2316_v30  ;;  %v9411_v28 = vld [vmem:[#allocation14_spill] sm:$0xff]  ;;  %v2331_v19 = vsel %vm7531_vm0, %v2168_v63, %v2330_v12 }
 0x14c   : > { %1673 = vst.msk [vmem:[#allocation2 + $0x1c] sm:$0xf] %vm9405_vm12, %v1369_v7  ;;  %v1212_v34 = vsel %vm9408_vm1, %v9407_v1, %v7693_v36  ;;  %v2249_v40 = vld [vmem:[#allocation2 + $0x30] sm:$0xf]  ;;  %v9409_v26 = vld [vmem:[#allocation8_spill] sm:$0xff]  ;;  %vm9410_vm8 = vmmov %vm9404_vm11  ;;  %v1423_v2 = vshrl.u32 %v6289_v18, 16  ;;  %v1713_v36 = vsel %vm7436_vm6, %v1462_v22, %v1712_v42  ;;  %vm9413_vm10 = vnez %v9332_v43  ;;  %v2122_v22 = vpop.permute.xlu0 %2121 }
 0x14d   : > { %2329 = vst.msk [vmem:[#allocation2 + $0xb8] sm:$0xf] %vm9406_vm14, %v2166_v29  ;;  %v1426_v27 = vshll.u32 %v6289_v18, 16  ;;  %v1228_v29 = vadd.f32 %v7356_v3, %v1212_v34  ;;  %v7786_v16 = vpop.f32.mrb[47].mxu1  ;;  %2318 = vst [vmem:[#allocation2 + $0xa4] sm:$0x1] %v2317_v0  ;;  %v2250_v47 = vsel %vm7514_vm15, %v9411_v28, %v2249_v40  ;;  %v6294_v37 = vpack.c.bf16 %v1230_v6, %v1230_v6 }
 0x14e   : > { %2238 = vst.msk [vmem:[#allocation2 + $0x1c] sm:$0xf] %vm9410_vm8, %v9409_v26  ;;  %2251 = vst [vmem:[#allocation2 + $0x30] sm:$0xf] %v2250_v47  ;;  %v1425_v8 = vrot.slane %v1423_v2, 7  ;;  %v9412_v58 = vld [vmem:[#allocation26_spill] sm:$0xff]  ;;  %vm9415_vm11 = vnez %v9334_v14 }
 0x14f   : > { %1714 = vst [vmem:[#allocation2 + $0x60] sm:$0xf] %v1713_v36  ;;  %v6290_v4 = vpack.c.bf16 %v1228_v29, %v1228_v29  ;;  %2332 = vst [vmem:[#allocation2 + $0xbc] sm:$0x1] %v2331_v19  ;;  %v1217_v20 = vsel %vm9413_vm10, %v9412_v58, %v7713_v53  ;;  %v9414_v61 = vld [vmem:[#allocation27_spill] sm:$0xff]  ;;  %v1465_v51 = vshrl.u32 %v6294_v37, 16 }
 0x150   : > { %v1215_v56 = vsel %vm9415_vm11, %v9414_v61, %v7715_v59  ;;  %v1698_v52 = vld [vmem:[#allocation2 + $0x48] sm:$0xf]  ;;  %v1468_v5 = vshll.u32 %v6294_v37, 16  ;;  %v1233_v7 = vadd.f32 %v7356_v3, %v1217_v20  ;;  %v2235_v42 = vld [vmem:[#allocation2 + $0x18] sm:$0xf]  ;;  %v1428_v18 = vor.u32 %v1426_v27, %v1425_v8  ;;  %v9416_v12 = vld [vmem:[#allocation6_spill] sm:$0xff] }
 0x151   : > { %v1231_v24 = vadd.f32 %v7356_v3, %v1215_v56  ;;  %v1429_v57 = vrot.slane %v1425_v8, 4  ;;  %v1431_v55 = vshrl.u32 %v6290_v4, 16  ;;  %v1434_v63 = vshll.u32 %v6290_v4, 16  ;;  %v2253_v53 = vld [vmem:[#allocation2 + $0x38] sm:$0x1]  ;;  %v9417_v6 = vld [vmem:[#allocation20_spill] sm:$0xff]  ;;  %vm9422_vm1 = vmmov %vm9410_vm8 }
 0x152   : > { %v2236_v43 = vsel %vm7514_vm15, %v9416_v12, %v2235_v42  ;;  %v1467_v30 = vrot.slane %v1465_v51, 7  ;;  %v1716_v14 = vld [vmem:[#allocation2 + $0x68] sm:$0x1]  ;;  %v6301_v59 = vpack.c.bf16 %v1233_v7, %v1233_v7  ;;  %v2254_v1 = vsel %vm7531_vm0, %v9417_v6, %v2253_v53  ;;  %v2239_v34 = vld [vmem:[#allocation2 + $0x20] sm:$0x1]  ;;  %v9419_v27 = vld [vmem:[#allocation10_spill] sm:$0xff]  ;;  %v2124_v53 = vpop.permute.xlu0 %2123 }
 0x153   : > { %v6297_v45 = vpack.c.bf16 %v1231_v24, %v1231_v24  ;;  %2237 = vst [vmem:[#allocation2 + $0x18] sm:$0xf] %v2236_v43  ;;  %v1699_v0 = vsel %vm7436_vm6, %v1428_v18, %v1698_v52  ;;  %v1433_v40 = vrot.slane %v1431_v55, 7  ;;  %v9418_v26 = vld [vmem:[#allocation28_spill] sm:$0xff]  ;;  %2255 = vst [vmem:[#allocation2 + $0x38] sm:$0x1] %v2254_v1  ;;  %v2240_v29 = vsel %vm7531_vm0, %v9419_v27, %v2239_v34 }
 0x154   : > { %v1218_v2 = vsel %vm7430_vm2, %v9418_v26, %v7721_v60  ;;  %1700 = vst [vmem:[#allocation2 + $0x48] sm:$0xf] %v1699_v0  ;;  %v1470_v28 = vor.u32 %v1468_v5, %v1467_v30  ;;  %v1472_v47 = vrot.slane %v1467_v30, 4  ;;  %v1702_v36 = vld [vmem:[#allocation2 + $0x50] sm:$0x1]  ;;  %v1525_v37 = vshrl.u32 %v6301_v59, 16  ;;  %vm9425_vm10 = vmmov %vm9422_vm1 }
 0x155   : > { %2241 = vst [vmem:[#allocation2 + $0x20] sm:$0x1] %v2240_v29  ;;  %v1436_v19 = vor.u32 %v1434_v63, %v1433_v40  ;;  %v1438_v8 = vrot.slane %v1433_v40, 4  ;;  %v1528_v4 = vshll.u32 %v6301_v59, 16  ;;  %v1740_v58 = vld [vmem:[#allocation2 + $0x90] sm:$0xf]  ;;  %v1234_v56 = vadd.f32 %v7356_v3, %v1218_v2 }
 0x156   : > { %v1491_v20 = vshrl.u32 %v6297_v45, 16  ;;  %v1717_v41 = vsel %vm7448_vm13, %v1472_v47, %v1716_v14  ;;  %v7822_v60 = vrot.slane %v1525_v37, 7  ;;  %v1494_v61 = vshll.u32 %v6297_v45, 16  ;;  %v2277_v52 = vld [vmem:[#allocation2 + $0x60] sm:$0xf]  ;;  %v9420_v42 = vld [vmem:[#allocation29_spill] sm:$0xff] }
 0x157   : > { %1718 = vst [vmem:[#allocation2 + $0x68] sm:$0x1] %v1717_v41  ;;  %v1437_v51 = vsel %vm6988_vm4, %v1429_v57, %v1436_v19  ;;  %v1703_v5 = vsel %vm7448_vm13, %v1438_v8, %v1702_v36  ;;  %v1726_v24 = vld [vmem:[#allocation2 + $0x78] sm:$0xf]  ;;  %v1216_v18 = vsel %vm7481_vm7, %v9420_v42, %v7726_v25  ;;  %vm2606_vm2 = vsmask.f32 3328 }
 0x158   : > { %v7829_v7 = vrot.slane %v1491_v20, 7  ;;  %vm2607_vm12 = vsmask.f32 7440  ;;  %v6017_v55 = vld [vmem:[#allocation2 + $0x70] sm:$0xf]  ;;  %vm9421_vm14 = vcmask 27648   ;;  %v1530_v63 = vor.u32 %v1528_v4, %v7822_v60 }
 0x159   : > { %1701 = vst.msk [vmem:[#allocation2 + $0x4c] sm:$0xf] %vm9421_vm14, %v1437_v51  ;;  %1704 = vst [vmem:[#allocation2 + $0x50] sm:$0x1] %v1703_v5  ;;  %v1531_v57 = vrot.slane %v7822_v60, 4  ;;  %v6302_v12 = vpack.c.bf16 %v1234_v56, %v1234_v56  ;;  %v1232_v43 = vadd.f32 %v7356_v3, %v1216_v18  ;;  %v2278_v14 = vsel %vm7514_vm15, %v2122_v22, %v2277_v52  ;;  %v9426_v26 = vld [vmem:[#allocation42_spill] sm:$0xff] }
 0x15a   : > { %v6016_v30 = vld [vmem:[#allocation2 + $0x6c] sm:$0xf]  ;;  %2266 = vst.msk [vmem:[#allocation2 + $0x4c] sm:$0xf] %vm9422_vm1, %v7457_v31  ;;  %v1496_v54 = vor.u32 %v1494_v61, %v7829_v7  ;;  %v1497_v25 = vrot.slane %v7829_v7, 4  ;;  %v1471_v59 = vsel %vm6988_vm4, %v1463_v23, %v1470_v28  ;;  %v1741_v45 = vsel %vm7436_vm6, %v1530_v63, %v1740_v58  ;;  %vm9423_vm7 = vmmov %vm9421_vm14 }
 0x15b   : > { %v6040_v3 = vld [vmem:[%s9230_s4 + $0x8] sm:$0x3]  ;;  %v1533_v31 = vshrl.u32 %v6302_v12, 16  ;;  %v1536_v6 = vshll.u32 %v6302_v12, 16  ;;  %v6298_v1 = vpack.c.bf16 %v1232_v43, %v1232_v43  ;;  %2279 = vst [vmem:[#allocation2 + $0x60] sm:$0xf] %v2278_v14  ;;  %vm9427_vm11 = vmmov %vm9423_vm7 }
 0x15c   : > { %1715 = vst.msk [vmem:[#allocation2 + $0x64] sm:$0xf] %vm9423_vm7, %v1471_v59  ;;  %v6018_v34 = vld [vmem:[#allocation2 + $0x74] sm:$0x1]  ;;  %vm9424_vm8 = vcmask 64512   ;;  %v1727_v23 = vsel %vm7436_vm6, %v1496_v54, %v1726_v24  ;;  %v3913_v22 = vshrl.u32 %v6016_v30, 16  ;;  %vm9429_vm14 = vmmov %vm9422_vm1 }
 0x15d   : > { %6435 = vmatprep.mubr.msk.bf16.mxu0 %vm9424_vm8, %v6040_v3  ;;  %v2263_v46 = vld [vmem:[#allocation2 + $0x48] sm:$0xf]  ;;  %1742 = vst [vmem:[#allocation2 + $0x90] sm:$0xf] %v1741_v45  ;;  %2280 = vst.msk [vmem:[#allocation2 + $0x64] sm:$0xf] %vm9425_vm10, %v2124_v53 }
 0x15e   : > { %v3916_v0 = vshll.u32 %v6016_v30, 16  ;;  %v3922_v40 = vshll.u32 %v6017_v55, 16  ;;  %v2264_v2 = vsel %vm7514_vm15, %v9426_v26, %v2263_v46  ;;  %1728 = vst [vmem:[#allocation2 + $0x78] sm:$0xf] %v1727_v23  ;;  %v1535_v27 = vrot.slane %v1533_v31, 7  ;;  %v9428_v3 = vld [vmem:[#allocation35_spill] sm:$0xff]  ;;  %vm7876_vm1 = vmor %vm2606_vm2, %vm2607_vm12 }
 0x15f   : > { %v1499_v29 = vshrl.u32 %v6298_v1, 16  ;;  %v1502_v28 = vshll.u32 %v6298_v1, 16  ;;  %v5992_v47 = vld [vmem:[#allocation2 + $0xc] sm:$0xf]  ;;  %2265 = vst [vmem:[#allocation2 + $0x48] sm:$0xf] %v2264_v2  ;;  %v2126_v1 = vpop.permute.xlu0 %2125  ;;  %vm9435_vm2 = vmmov %vm9425_vm10  ;;  %vm9439_vm10 = vnez %v9357_v48 }
 0x160   : > { %v1744_v36 = vld [vmem:[#allocation2 + $0x98] sm:$0x1]  ;;  %v3915_v37 = vrot.slane %v3913_v22, 4  ;;  %v3918_v19 = vrot.slane %v3916_v0, 5  ;;  %v3924_v8 = vrot.slane %v3922_v40, 5  ;;  %v3926_v4 = vshrl.u32 %v6017_v55, 16  ;;  %vm9436_vm12 = vmmov %vm9424_vm8 }
 0x161   : > { %v1538_v58 = vor.u32 %v1536_v6, %v1535_v27  ;;  %v1540_v20 = vrot.slane %v1535_v27, 4  ;;  %v1501_v41 = vrot.slane %v1499_v29, 7  ;;  %v1730_v60 = vld [vmem:[#allocation2 + $0x80] sm:$0x1]  ;;  %v3932_v61 = vshll.u32 %v6018_v34, 16  ;;  %v9432_v46 = vld [vmem:[#allocation30_spill] sm:$0xff] }
 0x162   : > { %v5993_v56 = vld [vmem:[#allocation2 + $0x10] sm:$0xf]  ;;  %v3919_v51 = vor.u32 %v3918_v19, %v3915_v37  ;;  %v3928_v5 = vrot.slane %v3926_v4, 4  ;;  %v3721_v7 = vshrl.u32 %v5992_v47, 16  ;;  %v3724_v24 = vshll.u32 %v5992_v47, 16  ;;  %v9433_v26 = vld [vmem:[#allocation9_spill] sm:$0xff] }
 0x163   : > { %v2267_v52 = vld [vmem:[#allocation2 + $0x50] sm:$0x1]  ;;  %v1539_v18 = vsel %vm6988_vm4, %v1531_v57, %v1538_v58  ;;  %v1745_v55 = vsel %vm7448_vm13, %v1540_v20, %v1744_v36  ;;  %v1504_v63 = vor.u32 %v1502_v28, %v1501_v41  ;;  %v5994_v12 = vld [vmem:[#allocation2 + $0x14] sm:$0x1]  ;;  %v2281_v43 = vld [vmem:[#allocation2 + $0x68] sm:$0x1] }
 0x164   : > { %v2268_v42 = vsel %vm7531_vm0, %v7521_v35, %v2267_v52  ;;  %1743 = vst.msk [vmem:[#allocation2 + $0x94] sm:$0xf] %vm9427_vm11, %v1539_v18  ;;  %1746 = vst [vmem:[#allocation2 + $0x98] sm:$0x1] %v1745_v55  ;;  %v1506_v53 = vrot.slane %v1501_v41, 4  ;;  %v3920_v30 = vrot.slane %v3919_v51, 4  ;;  %v3929_v54 = vor.u32 %v3928_v5, %v3924_v8 }
 0x165   : > { %2269 = vst [vmem:[#allocation2 + $0x50] sm:$0x1] %v2268_v42  ;;  %v3934_v14 = vrot.slane %v3932_v61, 5  ;;  %v2305_v59 = vld [vmem:[#allocation2 + $0x90] sm:$0xf]  ;;  %v1505_v35 = vsel %vm6988_vm4, %v1497_v25, %v1504_v63  ;;  %v3723_v45 = vrot.slane %v3721_v7, 4 }
 0x166   : > { %2308 = vst.msk [vmem:[#allocation2 + $0x94] sm:$0xf] %vm9429_vm14, %v9428_v3  ;;  %v3726_v31 = vrot.slane %v3724_v24, 5  ;;  %v3730_v6 = vshll.u32 %v5993_v56, 16  ;;  %v6724_v34 = vld [vmem:[#allocation2 + $0x60] sm:$0xff]   ;;  %v2306_v23 = vsel %vm7514_vm15, %v9432_v46, %v2305_v59  ;;  %v1731_v25 = vsel %vm7448_vm13, %v1506_v53, %v1730_v60  ;;  %v6726_v36 = vld [vmem:[#allocation2 + $0x6c] sm:$0xff]  }
 0x167   : > { %v2291_v22 = vld [vmem:[#allocation2 + $0x78] sm:$0xf]  ;;  %1729 = vst.msk [vmem:[#allocation2 + $0x7c] sm:$0xf] %vm9423_vm7, %v1505_v35  ;;  %v3925_v0 = vsel %vm7876_vm1, %v3920_v30, %v3924_v8  ;;  %v3930_v40 = vrot.slane %v3929_v54, 4  ;;  %v9434_v27 = vld [vmem:[#allocation12_spill] sm:$0xff]  ;;  %6617 = vmatprep.subr.msk.bf16.mxu1 %vm9436_vm12, %v6724_v34  ;;  %v2282_v8 = vsel %vm7531_vm0, %v2126_v1, %v2281_v43 }
 0x168   : > { %2307 = vst [vmem:[#allocation2 + $0x90] sm:$0xf] %v2306_v23  ;;  %v2292_v2 = vsel %vm7514_vm15, %v9433_v26, %v2291_v22  ;;  %1732 = vst [vmem:[#allocation2 + $0x80] sm:$0x1] %v1731_v25  ;;  %v3727_v29 = vor.u32 %v3726_v31, %v3723_v45  ;;  %v3732_v28 = vrot.slane %v3730_v6, 5  ;;  %v3734_v47 = vshrl.u32 %v5993_v56, 16  ;;  %6348 = vmatpush3.bf16.xpose.msra.mxu1 %v7467_v21 }
 0x169   : > { %2294 = vst.msk [vmem:[#allocation2 + $0x7c] sm:$0xf] %vm9435_vm2, %v9434_v27  ;;  %2293 = vst [vmem:[#allocation2 + $0x78] sm:$0xf] %v2292_v2  ;;  %v3935_v37 = vsel %vm7876_vm1, %v3930_v40, %v3934_v14  ;;  %v3740_v19 = vshll.u32 %v5994_v12, 16  ;;  %v9437_v4 = vld [vmem:[#allocation31_spill] sm:$0xff]  ;;  %6618 = vmatprep.subr.msk.bf16.mxu1 %vm9424_vm8, %v6726_v36 }
 0x16a   : > { %v1221_v58 = vsel %vm7502_vm3, %v9437_v4, %v7753_v15  ;;  %v6727_v20 = vld [vmem:[#allocation2 + $0xc] sm:$0xff]   ;;  %v6049_v41 = vcombine.low %v3925_v0, %v3935_v37  ;;  %v3728_v60 = vrot.slane %v3727_v29, 4  ;;  %v3736_v61 = vrot.slane %v3734_v47, 4  ;;  %2283 = vst [vmem:[#allocation2 + $0x68] sm:$0x1] %v2282_v8  ;;  %v9438_v5 = vld [vmem:[#allocation32_spill] sm:$0xff]  ;;  %vm9442_vm3 = vmmov %vm9424_vm8 }
 0x16b   : > { %v6772_v56 = vld [vmem:[%s9229_s3] ss:$0 sm:$0xff]  ;;  %v3742_v51 = vrot.slane %v3740_v19, 5  ;;  %v1219_v39 = vsel %vm9439_vm10, %v9438_v5, %v7765_v38  ;;  %v9440_v21 = vld [vmem:[#allocation33_spill] sm:$0xff]  ;;  %v9441_v7 = vld [vmem:[#allocation34_spill] sm:$0xff] }
 0x16c   : > { %v1237_v52 = vadd.f32 %v6772_v56, %v1221_v58  ;;  %v1222_v15 = vsel %vm7539_vm9, %v9440_v21, %v7778_v62  ;;  %v1220_v24 = vsel %vm7590_vm5, %v9441_v7, %v7786_v16  ;;  %v6729_v42 = vld [vmem:[#allocation2 + $0x18] sm:$0xff]   ;;  %6649 = vmatprep.subr.msk.bf16.mxu0 %vm9442_vm3, %v6049_v41  ;;  %v3733_v55 = vsel %vm7876_vm1, %v3728_v60, %v3732_v28  ;;  %v9443_v43 = vld [vmem:[#allocation41_spill] sm:$0xff]  ;;  %vm9444_vm9 = vmmov %vm9442_vm3 }
 0x16d   : > { %v2309_v18 = vld [vmem:[#allocation2 + $0x98] sm:$0x1]  ;;  %v3737_v63 = vor.u32 %v3736_v61, %v3732_v28  ;;  %v1235_v38 = vadd.f32 %v6772_v56, %v1219_v39  ;;  %v1238_v62 = vadd.f32 %v6772_v56, %v1222_v15  ;;  %v1236_v53 = vadd.f32 %v6772_v56, %v1220_v24  ;;  %v1768_v3 = vld [vmem:[#allocation2 + $0xc0] sm:$0xf]  ;;  %vm9445_vm5 = vmmov %vm9442_vm3 }
 0x16e   : > { %v6309_v48 = vpack.c.bf16 %v1237_v52, %v1237_v52  ;;  %v7922_v12 = vld [vmem:[#allocation2 + $0x18] sm:$0xf]  ;;  %v2310_v13 = vsel %vm7531_vm0, %v9443_v43, %v2309_v18  ;;  %v2471_v9 = vsel %vm9444_vm9, %v6727_v20, 0  ;;  %v2474_v31 = vsel %vm9445_vm5, %v6729_v42, 0  ;;  %v9446_v1 = vld [vmem:[#allocation13_spill] sm:$0xff]  ;;  %vm9447_vm11 = vmmov %vm9442_vm3  ;;  %v7941_v20 = vpop.permute.xlu1 %2169 }
 0x16f   : > { %2311 = vst [vmem:[#allocation2 + $0x98] sm:$0x1] %v2310_v13  ;;  %v3738_v16 = vrot.slane %v3737_v63, 4  ;;  %v6305_v14 = vpack.c.bf16 %v1235_v38, %v1235_v38  ;;  %v2295_v59 = vld [vmem:[#allocation2 + $0x80] sm:$0x1]  ;;  %v6310_v35 = vpack.c.bf16 %v1238_v62, %v1238_v62  ;;  %v6306_v45 = vpack.c.bf16 %v1236_v53, %v1236_v53  ;;  %vm9448_vm14 = vmmov %vm9442_vm3 }
 0x170   : > { %v1593_v30 = vshrl.u32 %v6309_v48, 16  ;;  %v1596_v54 = vshll.u32 %v6309_v48, 16  ;;  %v3745_v6 = vshrl.u32 %v7922_v12, 16  ;;  %v2296_v34 = vsel %vm7531_vm0, %v9446_v1, %v2295_v59  ;;  %v6728_v25 = vld [vmem:[#allocation2 + $0x78] sm:$0xff]   ;;  %v1754_v26 = vld [vmem:[#allocation2 + $0xa8] sm:$0xf]  ;;  %6350 = vmatpush3.bf16.xpose.msra.mxu1 %v2471_v9 }
 0x171   : > { %v3743_v46 = vsel %vm7876_vm1, %v3738_v16, %v3742_v51  ;;  %v1559_v22 = vshrl.u32 %v6305_v14, 16  ;;  %2297 = vst [vmem:[#allocation2 + $0x80] sm:$0x1] %v2296_v34  ;;  %v1562_v40 = vshll.u32 %v6305_v14, 16  ;;  %v1601_v2 = vshrl.u32 %v6310_v35, 16  ;;  %6619 = vmatprep.subr.msk.bf16.mxu1 %vm9447_vm11, %v6728_v25  ;;  %v6730_v16 = vld [vmem:[#allocation2 + $0x84] sm:$0xff]  }
 0x172   : > { %v7935_v23 = vrot.slane %v1593_v30, 7  ;;  %v6041_v0 = vcombine.low %v3733_v55, %v3743_v46  ;;  %v1604_v27 = vshll.u32 %v6310_v35, 16  ;;  %v6019_v29 = vld [vmem:[#allocation2 + $0x78] sm:$0xf]  ;;  %v1567_v37 = vshrl.u32 %v6306_v45, 16 }
 0x173   : > { %v1561_v36 = vrot.slane %v1559_v22, 7  ;;  %v6020_v19 = vld [vmem:[#allocation2 + $0x7c] sm:$0xf]  ;;  %v1603_v4 = vrot.slane %v1601_v2, 7  ;;  %v1570_v58 = vshll.u32 %v6306_v45, 16  ;;  %v3937_v41 = vshrl.u32 %v6019_v29, 16 }
 0x174   : > { %v1598_v28 = vor.u32 %v1596_v54, %v7935_v23  ;;  %v1599_v47 = vrot.slane %v7935_v23, 4  ;;  %v4158_v8 = vsel %vm9448_vm14, %v6041_v0, 0  ;;  %v1772_v52 = vld [vmem:[#allocation2 + $0xc8] sm:$0x1]  ;;  %v1569_v51 = vrot.slane %v1567_v37, 7 }
 0x175   : > { %6420 = vmatpush3.bf16.xpose.msra.mxu0 %v4158_v8  ;;  %v1564_v61 = vor.u32 %v1562_v40, %v1561_v36  ;;  %v1565_v56 = vrot.slane %v1561_v36, 4  ;;  %v7945_v5 = vor.u32 %v1604_v27, %v1603_v4  ;;  %v1608_v39 = vrot.slane %v1603_v4, 4  ;;  %v1758_v21 = vld [vmem:[#allocation2 + $0xb0] sm:$0x1]  ;;  %v5996_v63 = vld [vmem:[#allocation2 + $0x1c] sm:$0xf] }
 0x176   : > { %v1769_v60 = vsel %vm7436_vm6, %v1598_v28, %v1768_v3  ;;  %v3939_v15 = vrot.slane %v3937_v41, 4  ;;  %v3940_v7 = vshll.u32 %v6019_v29, 16  ;;  %v1572_v42 = vor.u32 %v1570_v58, %v1569_v51  ;;  %v6022_v48 = vld [vmem:[#allocation2 + $0x84] sm:$0xf]  ;;  %v5997_v62 = vld [vmem:[#allocation2 + $0x20] sm:$0x1] }
 0x177   : > { %1770 = vst [vmem:[#allocation2 + $0xc0] sm:$0xf] %v1769_v60  ;;  %v1755_v24 = vsel %vm7436_vm6, %v1564_v61, %v1754_v26  ;;  %v1574_v18 = vrot.slane %v1569_v51, 4  ;;  %v3946_v55 = vshll.u32 %v6020_v19, 16  ;;  %v1773_v38 = vsel %vm7448_vm13, %v1608_v39, %v1772_v52  ;;  %vm9449_vm6 = vmmov %vm9423_vm7  ;;  %v6024_v40 = vld [vmem:[#allocation2 + $0x8c] sm:$0x1] }
 0x178   : > { %1756 = vst [vmem:[#allocation2 + $0xa8] sm:$0xf] %v1755_v24  ;;  %v3942_v43 = vrot.slane %v3940_v7, 5  ;;  %v3950_v13 = vshrl.u32 %v6020_v19, 16  ;;  %v3747_v53 = vrot.slane %v3745_v6, 4  ;;  %v1573_v9 = vsel %vm6988_vm4, %v1565_v56, %v1572_v42  ;;  %6352 = vmatpush3.bf16.xpose.msra.mxu1 %v2474_v31  ;;  %v7960_v6 = vpop.permute.xlu1 %2171  ;;  %vm9450_vm7 = vmmov %vm9435_vm2  ;;  %v6731_v61 = vld [vmem:[#allocation2 + $0x24] sm:$0xff]  }
 0x179   : > { %1774 = vst [vmem:[#allocation2 + $0xc8] sm:$0x1] %v1773_v38  ;;  %v1759_v32 = vsel %vm7448_vm13, %v1574_v18, %v1758_v21  ;;  %v7955_v30 = vld [vmem:[#allocation2 + $0x80] sm:$0x1]  ;;  %v3948_v54 = vrot.slane %v3946_v55, 5  ;;  %v3748_v14 = vshll.u32 %v7922_v12, 16  ;;  %vm9451_vm13 = vmmov %vm9442_vm3 }
 0x17a   : > { %1757 = vst.msk [vmem:[#allocation2 + $0xac] sm:$0xf] %vm9449_vm6, %v1573_v9  ;;  %1760 = vst [vmem:[#allocation2 + $0xb0] sm:$0x1] %v1759_v32  ;;  %v3943_v59 = vor.u32 %v3942_v43, %v3939_v15  ;;  %v3952_v3 = vrot.slane %v3950_v13, 4  ;;  %v3956_v35 = vshll.u32 %v7955_v30, 16  ;;  %6620 = vmatprep.subr.msk.bf16.mxu1 %vm9451_vm13, %v6730_v16 }
 0x17b   : > { %v3754_v45 = vshll.u32 %v5996_v63, 16  ;;  %2322 = vst.msk [vmem:[#allocation2 + $0xac] sm:$0xf] %vm9450_vm7, %v7614_v44  ;;  %v3750_v33 = vrot.slane %v3748_v14, 5  ;;  %v3758_v1 = vshrl.u32 %v5996_v63, 16  ;;  %v3764_v34 = vshll.u32 %v5997_v62, 16  ;;  %vm9453_vm2 = vmmov %vm9442_vm3 }
 0x17c   : > { %v6023_v12 = vld [vmem:[#allocation2 + $0x88] sm:$0xf]  ;;  %v3961_v46 = vshrl.u32 %v6022_v48, 16  ;;  %v3944_v22 = vrot.slane %v3943_v59, 4  ;;  %v3953_v25 = vor.u32 %v3952_v3, %v3948_v54  ;;  %v3958_v31 = vrot.slane %v3956_v35, 5  ;;  %v2174_v39 = vpop.permute.xlu1 %2173  ;;  %v6732_v9 = vld [vmem:[#allocation2 + $0x90] sm:$0xff]   ;;  %vm9454_vm12 = vmmov %vm9449_vm6 }
 0x17d   : > { %v3756_v0 = vrot.slane %v3754_v45, 5  ;;  %v3751_v2 = vor.u32 %v3750_v33, %v3747_v53  ;;  %v3760_v27 = vrot.slane %v3758_v1, 4  ;;  %v3766_v29 = vrot.slane %v3764_v34, 5  ;;  %v5999_v15 = vld [vmem:[#allocation2 + $0x28] sm:$0xf]  ;;  %vm9455_vm8 = vmmov %vm9450_vm7  ;;  %v6733_v1 = vld [vmem:[#allocation2 + $0x30] sm:$0xff]  }
 0x17e   : > { %v2333_v26 = vld [vmem:[#allocation2 + $0xc0] sm:$0xf]  ;;  %v3963_v28 = vrot.slane %v3961_v46, 4  ;;  %v3949_v36 = vsel %vm7876_vm1, %v3944_v22, %v3948_v54  ;;  %v3954_v37 = vrot.slane %v3953_v25, 4  ;;  %v3964_v19 = vshll.u32 %v6022_v48, 16  ;;  %vm9456_vm10 = vmmov %vm9453_vm2 }
 0x17f   : > { %v2334_v44 = vsel %vm7514_vm15, %v7941_v20, %v2333_v26  ;;  %v2319_v8 = vld [vmem:[#allocation2 + $0xa8] sm:$0xf]  ;;  %v3752_v4 = vrot.slane %v3751_v2, 4  ;;  %v3761_v58 = vor.u32 %v3760_v27, %v3756_v0  ;;  %v3970_v41 = vshll.u32 %v6023_v12, 16  ;;  %v5998_v63 = vld [vmem:[#allocation2 + $0x24] sm:$0xf] }
 0x180   : > { %2335 = vst [vmem:[#allocation2 + $0xc0] sm:$0xf] %v2334_v44  ;;  %v3974_v60 = vshrl.u32 %v6023_v12, 16  ;;  %v2320_v56 = vsel %vm7514_vm15, %v7574_v49, %v2319_v8  ;;  %v3959_v52 = vsel %vm7876_vm1, %v3954_v37, %v3958_v31  ;;  %v3966_v20 = vrot.slane %v3964_v19, 5  ;;  %v2337_v21 = vld [vmem:[#allocation2 + $0xc8] sm:$0x1]  ;;  %vm9452_vm15 = vmmov %vm9442_vm3 }
 0x181   : > { %v3980_v51 = vshll.u32 %v6024_v40, 16  ;;  %2321 = vst [vmem:[#allocation2 + $0xa8] sm:$0xf] %v2320_v56  ;;  %v2323_v7 = vld [vmem:[#allocation2 + $0xb0] sm:$0x1]  ;;  %v6050_v24 = vcombine.low %v3949_v36, %v3959_v52  ;;  %v3757_v42 = vsel %vm7876_vm1, %v3752_v4, %v3756_v0  ;;  %v3762_v18 = vrot.slane %v3761_v58, 4 }
 0x182   : > { %v3972_v55 = vrot.slane %v3970_v41, 5  ;;  %v2324_v17 = vsel %vm7531_vm0, %v7653_v11, %v2323_v7  ;;  %v3967_v49 = vor.u32 %v3966_v20, %v3963_v28  ;;  %v3976_v48 = vrot.slane %v3974_v60, 4  ;;  %v6000_v43 = vld [vmem:[#allocation2 + $0x2c] sm:$0x1]  ;;  %v6026_v59 = vld [vmem:[#allocation2 + $0x94] sm:$0xf] }
 0x183   : > { %v3982_v38 = vrot.slane %v3980_v51, 5  ;;  %2325 = vst [vmem:[#allocation2 + $0xb0] sm:$0x1] %v2324_v17  ;;  %6650 = vmatprep.subr.msk.bf16.mxu0 %vm9452_vm15, %v6050_v24  ;;  %v3767_v13 = vsel %vm7876_vm1, %v3762_v18, %v3766_v29  ;;  %v1607_v62 = vsel %vm6988_vm4, %v1599_v47, %v7945_v5  ;;  %v2477_v53 = vsel %vm9453_vm2, %v6731_v61, 0  ;;  %v6025_v5 = vld [vmem:[#allocation2 + $0x90] sm:$0xf]  ;;  %vm9457_vm4 = vmmov %vm9453_vm2 }
 0x184   : > { %v2338_v11 = vsel %vm7531_vm0, %v2174_v39, %v2337_v21  ;;  %v6042_v32 = vcombine.low %v3757_v42, %v3767_v13  ;;  %v3968_v16 = vrot.slane %v3967_v49, 4  ;;  %v3977_v54 = vor.u32 %v3976_v48, %v3972_v55  ;;  %1771 = vst.msk [vmem:[#allocation2 + $0xc4] sm:$0xf] %vm9454_vm12, %v1607_v62  ;;  %6354 = vmatpush3.bf16.xpose.msra.mxu1 %v2477_v53  ;;  %v6027_v22 = vld [vmem:[#allocation2 + $0x98] sm:$0x1]  ;;  %vm9458_vm0 = vmmov %vm9453_vm2  ;;  %v6734_v61 = vld [vmem:[#allocation2 + $0x9c] sm:$0xff]  }
 0x185   : > { %2339 = vst [vmem:[#allocation2 + $0xc8] sm:$0x1] %v2338_v11  ;;  %v3769_v14 = vshrl.u32 %v5998_v63, 16  ;;  %2336 = vst.msk [vmem:[#allocation2 + $0xc4] sm:$0xf] %vm9455_vm8, %v7960_v6  ;;  %6621 = vmatprep.subr.msk.bf16.mxu1 %vm9456_vm10, %v6732_v9  ;;  %v3772_v50 = vshll.u32 %v5998_v63, 16 }
 0x186   : > { %v3778_v23 = vshll.u32 %v5999_v15, 16  ;;  %v3782_v47 = vshrl.u32 %v5999_v15, 16  ;;  %v3788_v10 = vshll.u32 %v6000_v43, 16  ;;  %v4161_v3 = vsel %vm9457_vm4, %v6042_v32, 0  ;;  %v6001_v28 = vld [vmem:[#allocation2 + $0x30] sm:$0xf]  ;;  %vm9459_vm3 = vmmov %vm9458_vm0 }
 0x187   : > { %v3973_v35 = vsel %vm7876_vm1, %v3968_v16, %v3972_v55  ;;  %v3978_v45 = vrot.slane %v3977_v54, 4  ;;  %v3771_v33 = vrot.slane %v3769_v14, 4  ;;  %6422 = vmatpush3.bf16.xpose.msra.mxu0 %v4161_v3  ;;  %v3774_v34 = vrot.slane %v3772_v50, 5  ;;  %v6002_v8 = vld [vmem:[#allocation2 + $0x34] sm:$0xf]  ;;  %vm9460_vm9 = vmmov %vm9458_vm0  ;;  %v6735_v16 = vld [vmem:[#allocation2 + $0x3c] sm:$0xff]  }
 0x188   : > { %v3780_v12 = vrot.slane %v3778_v23, 5  ;;  %v3784_v46 = vrot.slane %v3782_v47, 4  ;;  %v3790_v6 = vrot.slane %v3788_v10, 5  ;;  %v3985_v31 = vshrl.u32 %v6025_v5, 16  ;;  %v6003_v20 = vld [vmem:[#allocation2 + $0x38] sm:$0x1]  ;;  %vm9461_vm5 = vmmov %vm9458_vm0 }
 0x189   : > { %v3983_v25 = vsel %vm7876_vm1, %v3978_v45, %v3982_v38  ;;  %v3988_v0 = vshll.u32 %v6025_v5, 16  ;;  %v3994_v40 = vshll.u32 %v6026_v59, 16  ;;  %v3775_v2 = vor.u32 %v3774_v34, %v3771_v33  ;;  %v6028_v42 = vld [vmem:[#allocation2 + $0x9c] sm:$0xf]  ;;  %v6029_v13 = vld [vmem:[#allocation2 + $0xa0] sm:$0xf]  ;;  %vm9462_vm11 = vmmov %vm9458_vm0 }
 0x18a   : > { %v6051_v26 = vcombine.low %v3973_v35, %v3983_v25  ;;  %v3785_v27 = vor.u32 %v3784_v46, %v3780_v12  ;;  %v3998_v29 = vshrl.u32 %v6026_v59, 16  ;;  %v3987_v44 = vrot.slane %v3985_v31, 4  ;;  %v6030_v9 = vld [vmem:[#allocation2 + $0xa4] sm:$0x1]  ;;  %v6004_v23 = vld [vmem:[#allocation2 + $0x3c] sm:$0xf]  ;;  %vm9463_vm14 = vmmov %vm9458_vm0 }
 0x18b   : > { %v3990_v36 = vrot.slane %v3988_v0, 5  ;;  %v3996_v37 = vrot.slane %v3994_v40, 5  ;;  %v4004_v19 = vshll.u32 %v6027_v22, 16  ;;  %v3776_v4 = vrot.slane %v3775_v2, 4  ;;  %v6005_v34 = vld [vmem:[#allocation2 + $0x40] sm:$0xf]  ;;  %vm9464_vm6 = vmmov %vm9458_vm0 }
 0x18c   : > { %6651 = vmatprep.subr.msk.bf16.mxu0 %vm9458_vm0, %v6051_v26  ;;  %v3786_v58 = vrot.slane %v3785_v27, 4  ;;  %v4000_v41 = vrot.slane %v3998_v29, 4  ;;  %v2480_v60 = vsel %vm9459_vm3, %v6733_v1, 0  ;;  %v3793_v51 = vshrl.u32 %v6001_v28, 16  ;;  %v6736_v22 = vld [vmem:[#allocation2 + $0xa8] sm:$0xff]   ;;  %vm9465_vm7 = vmmov %vm9458_vm0 }
 0x18d   : > { %v3991_v56 = vor.u32 %v3990_v36, %v3987_v44  ;;  %v4006_v52 = vrot.slane %v4004_v19, 5  ;;  %6356 = vmatpush3.bf16.xpose.msra.mxu1 %v2480_v60  ;;  %v3796_v39 = vshll.u32 %v6001_v28, 16  ;;  %v3781_v21 = vsel %vm7876_vm1, %v3776_v4, %v3780_v12  ;;  %v6006_v25 = vld [vmem:[#allocation2 + $0x44] sm:$0x1]  ;;  %v6031_v36 = vld [vmem:[#allocation2 + $0xa8] sm:$0xf]  ;;  %vm9466_vm13 = vmmov %vm9458_vm0 }
 0x18e   : > { %v3791_v15 = vsel %vm7876_vm1, %v3786_v58, %v3790_v6  ;;  %v4001_v7 = vor.u32 %v4000_v41, %v3996_v37  ;;  %6622 = vmatprep.subr.msk.bf16.mxu1 %vm9460_vm9, %v6734_v61  ;;  %v3802_v24 = vshll.u32 %v6002_v8, 16  ;;  %v3795_v63 = vrot.slane %v3793_v51, 4  ;;  %vm9467_vm15 = vmmov %vm9458_vm0 }
 0x18f   : > { %v6043_v18 = vcombine.low %v3781_v21, %v3791_v15  ;;  %v3992_v55 = vrot.slane %v3991_v56, 4  ;;  %v3798_v17 = vrot.slane %v3796_v39, 5  ;;  %v3806_v38 = vshrl.u32 %v6002_v8, 16  ;;  %v6032_v56 = vld [vmem:[#allocation2 + $0xac] sm:$0xf]  ;;  %vm9468_vm2 = vmmov %vm9458_vm0 }
 0x190   : > { %v4002_v49 = vrot.slane %v4001_v7, 4  ;;  %v3804_v48 = vrot.slane %v3802_v24, 5  ;;  %v3812_v43 = vshll.u32 %v6003_v20, 16  ;;  %v4009_v32 = vshrl.u32 %v6028_v42, 16  ;;  %v6737_v21 = vld [vmem:[#allocation2 + $0x48] sm:$0xff]   ;;  %vm9469_vm12 = vmmov %vm9458_vm0 }
 0x191   : > { %v4164_v62 = vsel %vm9461_vm5, %v6043_v18, 0  ;;  %v3997_v53 = vsel %vm7876_vm1, %v3992_v55, %v3996_v37  ;;  %v3799_v11 = vor.u32 %v3798_v17, %v3795_v63  ;;  %v3808_v14 = vrot.slane %v3806_v38, 4  ;;  %vm9470_vm8 = vmmov %vm9458_vm0 }
 0x192   : > { %6424 = vmatpush3.bf16.xpose.msra.mxu0 %v4164_v62  ;;  %v4007_v54 = vsel %vm7876_vm1, %v4002_v49, %v4006_v52  ;;  %v3814_v59 = vrot.slane %v3812_v43, 5  ;;  %v4012_v50 = vshll.u32 %v6028_v42, 16  ;;  %v4011_v5 = vrot.slane %v4009_v32, 4  ;;  %v6007_v49 = vld [vmem:[#allocation2 + $0x48] sm:$0xf]  ;;  %vm9471_vm10 = vmmov %vm9458_vm0 }
 0x193   : > { %v6052_v47 = vcombine.low %v3997_v53, %v4007_v54  ;;  %v3800_v10 = vrot.slane %v3799_v11, 4  ;;  %v4018_v3 = vshll.u32 %v6029_v13, 16  ;;  %v3809_v35 = vor.u32 %v3808_v14, %v3804_v48  ;;  %v6738_v53 = vld [vmem:[#allocation2 + $0xb4] sm:$0xff]   ;;  %v6008_v54 = vld [vmem:[#allocation2 + $0x4c] sm:$0xf]  ;;  %vm9472_vm4 = vmmov %vm9458_vm0 }
 0x194   : > { %v4014_v45 = vrot.slane %v4012_v50, 5  ;;  %v4022_v33 = vshrl.u32 %v6029_v13, 16  ;;  %v4028_v1 = vshll.u32 %v6030_v9, 16  ;;  %v2483_v6 = vsel %vm9463_vm14, %v6735_v16, 0  ;;  %v6033_v13 = vld [vmem:[#allocation2 + $0xb0] sm:$0x1]  ;;  %vm9473_vm3 = vmmov %vm9458_vm0 }
 0x195   : > { %6652 = vmatprep.subr.msk.bf16.mxu0 %vm9462_vm11, %v6052_v47  ;;  %v3805_v12 = vsel %vm7876_vm1, %v3800_v10, %v3804_v48  ;;  %v4020_v46 = vrot.slane %v4018_v3, 5  ;;  %v3817_v31 = vshrl.u32 %v6004_v23, 16  ;;  %v3810_v0 = vrot.slane %v3809_v35, 4  ;;  %6358 = vmatpush3.bf16.xpose.msra.mxu1 %v2483_v6  ;;  %vm9474_vm9 = vmmov %vm9458_vm0 }
 0x196   : > { %v4015_v40 = vor.u32 %v4014_v45, %v4011_v5  ;;  %v4024_v26 = vrot.slane %v4022_v33, 4  ;;  %v4030_v2 = vrot.slane %v4028_v1, 5  ;;  %6623 = vmatprep.subr.msk.bf16.mxu1 %vm9464_vm6, %v6736_v22  ;;  %v3820_v29 = vshll.u32 %v6004_v23, 16  ;;  %v6009_v23 = vld [vmem:[#allocation2 + $0x50] sm:$0x1]  ;;  %vm9477_vm11 = vmmov %vm9458_vm0 }
 0x197   : > { %v3819_v27 = vrot.slane %v3817_v31, 4  ;;  %v3826_v28 = vshll.u32 %v6005_v34, 16  ;;  %v3830_v44 = vshrl.u32 %v6005_v34, 16  ;;  %v3815_v37 = vsel %vm7876_vm1, %v3810_v0, %v3814_v59  ;;  %v6034_v45 = vld [vmem:[#allocation2 + $0xb4] sm:$0xf]  ;;  %vm9478_vm14 = vmmov %vm9458_vm0 }
 0x198   : > { %v4016_v19 = vrot.slane %v4015_v40, 4  ;;  %v4025_v8 = vor.u32 %v4024_v26, %v4020_v46  ;;  %v3836_v4 = vshll.u32 %v6006_v25, 16  ;;  %v6044_v58 = vcombine.low %v3805_v12, %v3815_v37  ;;  %v6035_v31 = vld [vmem:[#allocation2 + $0xb8] sm:$0xf]  ;;  %vm9479_vm6 = vmmov %vm9458_vm0 }
 0x199   : > { %v3822_v41 = vrot.slane %v3820_v29, 5  ;;  %v3828_v60 = vrot.slane %v3826_v28, 5  ;;  %v3832_v61 = vrot.slane %v3830_v44, 4  ;;  %v4033_v39 = vshrl.u32 %v6031_v36, 16  ;;  %v6739_v29 = vld [vmem:[#allocation2 + $0x54] sm:$0xff]  }
 0x19a   : > { %v4021_v52 = vsel %vm7876_vm1, %v4016_v19, %v4020_v46  ;;  %v4026_v20 = vrot.slane %v4025_v8, 4  ;;  %v3838_v51 = vrot.slane %v3836_v4, 5  ;;  %v4167_v15 = vsel %vm9465_vm7, %v6044_v58, 0  ;;  %v2582_v19 = vld [vmem:[#allocation2 + $0x60] sm:$0xf] }
 0x19b   : > { %v3823_v7 = vor.u32 %v3822_v41, %v3819_v27  ;;  %v3833_v24 = vor.u32 %v3832_v61, %v3828_v60  ;;  %v4036_v42 = vshll.u32 %v6031_v36, 16  ;;  %6426 = vmatpush3.bf16.xpose.msra.mxu0 %v4167_v15  ;;  %v4035_v55 = vrot.slane %v4033_v39, 4 }
 0x19c   : > { %v4031_v18 = vsel %vm7876_vm1, %v4026_v20, %v4030_v2  ;;  %v4042_v63 = vshll.u32 %v6032_v56, 16  ;;  %v4046_v17 = vshrl.u32 %v6032_v56, 16  ;;  %v4052_v32 = vshll.u32 %v6033_v13, 16  ;;  %v6036_v2 = vld [vmem:[#allocation2 + $0xbc] sm:$0x1] }
 0x19d   : > { %v6053_v48 = vcombine.low %v4021_v52, %v4031_v18  ;;  %v3824_v38 = vrot.slane %v3823_v7, 4  ;;  %v3834_v43 = vrot.slane %v3833_v24, 4  ;;  %v4038_v62 = vrot.slane %v4036_v42, 5  ;;  %v2583_v20 = vld [vmem:[#allocation2 + $0x64] sm:$0xf] }
 0x19e   : > { %v4044_v11 = vrot.slane %v4042_v63, 5  ;;  %v4048_v9 = vrot.slane %v4046_v17, 4  ;;  %v2486_v16 = vsel %vm9466_vm13, %v6737_v21, 0  ;;  %v3841_v47 = vshrl.u32 %v6007_v49, 16  ;;  %v6010_v7 = vld [vmem:[#allocation2 + $0x54] sm:$0xf] }
 0x19f   : > { %6653 = vmatprep.subr.msk.bf16.mxu0 %vm9467_vm15, %v6053_v48  ;;  %v3829_v14 = vsel %vm7876_vm1, %v3824_v38, %v3828_v60  ;;  %v3839_v59 = vsel %vm7876_vm1, %v3834_v43, %v3838_v51  ;;  %v4039_v50 = vor.u32 %v4038_v62, %v4035_v55  ;;  %6360 = vmatpush3.bf16.xpose.msra.mxu1 %v2486_v16  ;;  %v4054_v3 = vrot.slane %v4052_v32, 5  ;;  %v2584_v63 = vld [vmem:[#allocation2 + $0x68] sm:$0x1]  ;;  %v6011_v43 = vld [vmem:[#allocation2 + $0x58] sm:$0xf]  ;;  %vm9480_vm15 = vmmov %vm9458_vm0 }
 0x1a0   : > { %v6045_v10 = vcombine.low %v3829_v14, %v3839_v59  ;;  %v4049_v5 = vor.u32 %v4048_v9, %v4044_v11  ;;  %6624 = vmatprep.subr.msk.bf16.mxu1 %vm9468_vm2, %v6738_v53  ;;  %v3844_v35 = vshll.u32 %v6007_v49, 16  ;;  %v3843_v1 = vrot.slane %v3841_v47, 4  ;;  %v6012_v9 = vld [vmem:[#allocation2 + $0x5c] sm:$0x1]  ;;  %v6037_v59 = vld [vmem:[#allocation2 + $0xc0] sm:$0xf]  ;;  %vm9481_vm2 = vmmov %vm9458_vm0 }
 0x1a1   : > { %v4040_v33 = vrot.slane %v4039_v50, 4  ;;  %v3850_v34 = vshll.u32 %v6008_v54, 16  ;;  %v3854_v12 = vshrl.u32 %v6008_v54, 16  ;;  %v3860_v25 = vshll.u32 %v6009_v23, 16  ;;  %v5890_v50 = vld [vmem:[%s9230_s4 + $0x2] sm:$0x3] }
 0x1a2   : > { %v4170_v46 = vsel %vm9469_vm12, %v6045_v10, 0  ;;  %v4050_v6 = vrot.slane %v4049_v5, 4  ;;  %v3846_v22 = vrot.slane %v3844_v35, 5  ;;  %v4057_v27 = vshrl.u32 %v6034_v45, 16 }
 0x1a3   : > { %v4045_v0 = vsel %vm7876_vm1, %v4040_v33, %v4044_v11  ;;  %v3852_v40 = vrot.slane %v3850_v34, 5  ;;  %v3856_v26 = vrot.slane %v3854_v12, 4  ;;  %6428 = vmatpush3.bf16.xpose.msra.mxu0 %v4170_v46  ;;  %v3862_v36 = vrot.slane %v3860_v25, 5 }
 0x1a4   : > { %v4055_v28 = vsel %vm7876_vm1, %v4050_v6, %v4054_v3  ;;  %v3847_v44 = vor.u32 %v3846_v22, %v3843_v1  ;;  %v4060_v37 = vshll.u32 %v6034_v45, 16  ;;  %v4059_v58 = vrot.slane %v4057_v27, 4 }
 0x1a5   : > { %v6054_v8 = vcombine.low %v4045_v0, %v4055_v28  ;;  %v3857_v4 = vor.u32 %v3856_v26, %v3852_v40  ;;  %v4066_v41 = vshll.u32 %v6035_v31, 16  ;;  %v4070_v56 = vshrl.u32 %v6035_v31, 16  ;;  %v6038_v0 = vld [vmem:[#allocation2 + $0xc4] sm:$0xf]  ;;  %v368_v28 = vld [vmem:[#allocation2 + $0x8] sm:$0x1] }
 0x1a6   : > { %v3848_v60 = vrot.slane %v3847_v44, 4  ;;  %v4062_v61 = vrot.slane %v4060_v37, 5  ;;  %v4076_v52 = vshll.u32 %v6036_v2, 16  ;;  %v2489_v21 = vsel %vm9471_vm10, %v6739_v29, 0  ;;  %vm9485_vm10 = vmmov %vm9458_vm0 }
 0x1a7   : > { %6654 = vmatprep.subr.msk.bf16.mxu0 %vm9470_vm8, %v6054_v8  ;;  %v3858_v51 = vrot.slane %v3857_v4, 4  ;;  %v4068_v39 = vrot.slane %v4066_v41, 5  ;;  %v2802_v15 = vshrl.u32 %v2582_v19, 16  ;;  %v4072_v18 = vrot.slane %v4070_v56, 4  ;;  %6362 = vmatpush3.bf16.xpose.msra.mxu1 %v2489_v21  ;;  %v2558_v8 = vld [vmem:[#allocation2] sm:$0xf]  ;;  %vm9484_vm8 = vmmov %vm9458_vm0 }
 0x1a8   : > { %v3853_v24 = vsel %vm7876_vm1, %v3848_v60, %v3852_v40  ;;  %v4063_v42 = vor.u32 %v4062_v61, %v4059_v58  ;;  %v4078_v55 = vrot.slane %v4076_v52, 5  ;;  %v2805_v48 = vshll.u32 %v2582_v19, 16  ;;  %v6773_v40 = vld [vmem:[%s9230_s4] sm:$0x3]  ;;  %v2559_v4 = vld [vmem:[#allocation2 + $0x4] sm:$0xf] }
 0x1a9   : > { %v3863_v17 = vsel %vm7876_vm1, %v3858_v51, %v3862_v36  ;;  %v2804_v49 = vrot.slane %v2802_v15, 4  ;;  %v2811_v38 = vshll.u32 %v2583_v20, 16  ;;  %v4073_v53 = vor.u32 %v4072_v18, %v4068_v39  ;;  %v2585_v21 = vld [vmem:[#allocation2 + $0x6c] sm:$0xf] }
 0x1aa   : > { %v6046_v13 = vcombine.low %v3853_v24, %v3863_v17  ;;  %v4064_v62 = vrot.slane %v4063_v42, 4  ;;  %v2815_v11 = vshrl.u32 %v2583_v20, 16  ;;  %v2807_v32 = vrot.slane %v2805_v48, 5  ;;  %v6039_v20 = vld [vmem:[#allocation2 + $0xc8] sm:$0x1]  ;;  %v9475_v42 = vld [vmem:[#allocation4_spill] sm:$0xff] }
 0x1ab   : > { %v2813_v16 = vrot.slane %v2811_v38, 5  ;;  %v2821_v54 = vshll.u32 %v2584_v63, 16  ;;  %v3865_v14 = vshrl.u32 %v6010_v7, 16  ;;  %v4074_v10 = vrot.slane %v4073_v53, 4  ;;  %v2586_v48 = vld [vmem:[#allocation2 + $0x70] sm:$0xf] }
 0x1ac   : > { %v4173_v23 = vsel %vm9472_vm4, %v6046_v13, 0  ;;  %v4069_v47 = vsel %vm7876_vm1, %v4064_v62, %v4068_v39  ;;  %v2817_v5 = vrot.slane %v2815_v11, 4  ;;  %v2808_v3 = vor.u32 %v2807_v32, %v2804_v49  ;;  %vm9486_vm4 = vmmov %vm9458_vm0 }
 0x1ad   : > { %6430 = vmatpush3.bf16.xpose.msra.mxu0 %v4173_v23  ;;  %v2823_v35 = vrot.slane %v2821_v54, 5  ;;  %v3867_v45 = vrot.slane %v3865_v14, 4  ;;  %v3868_v33 = vshll.u32 %v6010_v7, 16  ;;  %v4079_v1 = vsel %vm7876_vm1, %v4074_v10, %v4078_v55 }
 0x1ae   : > { %v2818_v34 = vor.u32 %v2817_v5, %v2813_v16  ;;  %v3874_v12 = vshll.u32 %v6011_v43, 16  ;;  %v3878_v46 = vshrl.u32 %v6011_v43, 16  ;;  %v6055_v6 = vcombine.low %v4069_v47, %v4079_v1  ;;  %6364 = vmatmul.mubr.msk.bf16.vlgmr.msra.gmra.mrb[48].mxu1 %vm9458_vm0, %v6773_v40 }
 0x1af   : > { %v2809_v22 = vrot.slane %v2808_v3, 4  ;;  %v3870_v25 = vrot.slane %v3868_v33, 5  ;;  %v3884_v31 = vshll.u32 %v6012_v9, 16  ;;  %v4081_v29 = vshrl.u32 %v6037_v59, 16  ;;  %6381 = vmatprep.mubr.msk.bf16.mxu1 %vm9473_vm3, %v5890_v50  ;;  %v6013_v3 = vld [vmem:[#allocation2 + $0x60] sm:$0xf]  ;;  %vm9487_vm3 = vmmov %vm9458_vm0 }
 0x1b0   : > { %v2819_v26 = vrot.slane %v2818_v34, 4  ;;  %v3876_v2 = vrot.slane %v3874_v12, 5  ;;  %v3880_v27 = vrot.slane %v3878_v46, 4  ;;  %6655 = vmatprep.subr.msk.bf16.mxu0 %vm9474_vm9, %v6055_v6  ;;  %v4084_v19 = vshll.u32 %v6037_v59, 16  ;;  %v2587_v59 = vld [vmem:[#allocation2 + $0x74] sm:$0x1]  ;;  %vm9488_vm9 = vmmov %vm9458_vm0 }
 0x1b1   : > { %v2814_v44 = vsel %vm7876_vm1, %v2809_v22, %v2813_v16  ;;  %v3871_v36 = vor.u32 %v3870_v25, %v3867_v45  ;;  %v3886_v37 = vrot.slane %v3884_v31, 5  ;;  %v4083_v60 = vrot.slane %v4081_v29, 4  ;;  %v6014_v34 = vld [vmem:[#allocation2 + $0x64] sm:$0xf]  ;;  %v6015_v25 = vld [vmem:[#allocation2 + $0x68] sm:$0x1] }
 0x1b2   : > { %v2824_v58 = vsel %vm7876_vm1, %v2819_v26, %v2823_v35  ;;  %v3881_v41 = vor.u32 %v3880_v27, %v3876_v2  ;;  %v4090_v61 = vshll.u32 %v6038_v0, 16  ;;  %v4086_v51 = vrot.slane %v4084_v19, 5 }
 0x1b3   : > { %v5899_v56 = vcombine.low %v2814_v44, %v2824_v58  ;;  %v3872_v52 = vrot.slane %v3871_v36, 4  ;;  %v4094_v39 = vshrl.u32 %v6038_v0, 16  ;;  %v4100_v24 = vshll.u32 %v6039_v20, 16 }
 0x1b4   : > { %v3882_v15 = vrot.slane %v3881_v41, 4  ;;  %v4092_v7 = vrot.slane %v4090_v61, 5  ;;  %vm9476_vm5 = vnez %v9475_v42  ;;  %v4087_v63 = vor.u32 %v4086_v51, %v4083_v60  ;;  %v6066_v51 = vld [vmem:[#allocation2 + $0x6c] sm:$0xe] }
 0x1b5   : > { %v369_v18 = vsel %vm9476_vm5, 0, %v368_v28  ;;  %6625 = vmatprep.subr.msk.bf16.mxu1 %vm9477_vm11, %v5899_v56  ;;  %v3877_v55 = vsel %vm7876_vm1, %v3872_v52, %v3876_v2  ;;  %v4096_v17 = vrot.slane %v4094_v39, 4  ;;  %v2610_v49 = vshrl.u32 %v2558_v8, 16  ;;  %vm9489_vm11 = vmmov %vm9458_vm0 }
 0x1b6   : > { %370 = vst [vmem:[#allocation2 + $0x8] sm:$0x1] %v369_v18  ;;  %v3887_v38 = vsel %vm7876_vm1, %v3882_v15, %v3886_v37  ;;  %v4102_v43 = vrot.slane %v4100_v24, 5  ;;  %v2613_v13 = vshll.u32 %v2558_v8, 16  ;;  %v2619_v62 = vshll.u32 %v2559_v4, 16 }
 0x1b7   : > { %v6047_v53 = vcombine.low %v3877_v55, %v3887_v38  ;;  %v4088_v11 = vrot.slane %v4087_v63, 4  ;;  %v4097_v9 = vor.u32 %v4096_v17, %v4092_v7  ;;  %v2612_v32 = vrot.slane %v2610_v49, 4  ;;  %v2561_v24 = vld [vmem:[#allocation2 + $0xc] sm:$0xf]  ;;  %v8079_v49 = vld [vmem:[#allocation2 + $0x10] sm:$0xf] }
 0x1b8   : > { %v2615_v16 = vrot.slane %v2613_v13, 5  ;;  %v2621_v54 = vrot.slane %v2619_v62, 5  ;;  %v2623_v14 = vshrl.u32 %v2559_v4, 16  ;;  %v2826_v50 = vshrl.u32 %v2585_v21, 16 }
 0x1b9   : > { %v4176_v23 = vsel %vm9478_vm14, %v6047_v53, 0  ;;  %v4093_v47 = vsel %vm7876_vm1, %v4088_v11, %v4092_v7  ;;  %v4098_v10 = vrot.slane %v4097_v9, 4  ;;  %v2829_v5 = vshll.u32 %v2585_v21, 16  ;;  %v2588_v9 = vld [vmem:[#allocation2 + $0x78] sm:$0xf]  ;;  %vm9490_vm14 = vmmov %vm9458_vm0 }
 0x1ba   : > { %6432 = vmatpush3.bf16.xpose.msra.mxu0 %v4176_v23  ;;  %v2616_v35 = vor.u32 %v2615_v16, %v2612_v32  ;;  %v2625_v45 = vrot.slane %v2623_v14, 4  ;;  %v2828_v33 = vrot.slane %v2826_v50, 4  ;;  %v2835_v1 = vshll.u32 %v2586_v48, 16  ;;  %v6774_v32 = vld [vmem:[#allocation2 + $0x70] sm:$0xf] }
 0x1bb   : > { %v4103_v12 = vsel %vm7876_vm1, %v4098_v10, %v4102_v43  ;;  %v2831_v46 = vrot.slane %v2829_v5, 5  ;;  %v2839_v6 = vshrl.u32 %v2586_v48, 16  ;;  %v2845_v22 = vshll.u32 %v2587_v59, 16  ;;  %v8083_v43 = vld [vmem:[#allocation2 + $0x14] sm:$0x1] }
 0x1bc   : > { %v6056_v31 = vcombine.low %v4093_v47, %v4103_v12  ;;  %v2617_v40 = vrot.slane %v2616_v35, 4  ;;  %v2626_v26 = vor.u32 %v2625_v45, %v2621_v54  ;;  %v2837_v2 = vrot.slane %v2835_v1, 5  ;;  %v8097_v35 = vld [vmem:[#allocation2 + $0x7c] sm:$0xf]  ;;  %v8101_v12 = vld [vmem:[#allocation2 + $0x80] sm:$0x1] }
 0x1bd   : > { %v2560_v0 = vld [vmem:[#allocation2 + $0x8] sm:$0x1]  ;;  %v2832_v29 = vor.u32 %v2831_v46, %v2828_v33  ;;  %v2841_v28 = vrot.slane %v2839_v6, 4  ;;  %v2847_v44 = vrot.slane %v2845_v22, 5  ;;  %v3889_v19 = vshrl.u32 %v6013_v3, 16 }
 0x1be   : > { %v2629_v27 = vshll.u32 %v2560_v0, 16  ;;  %6656 = vmatprep.subr.msk.bf16.mxu0 %vm9479_vm6, %v6056_v31  ;;  %v2622_v36 = vsel %vm7876_vm1, %v2617_v40, %v2621_v54  ;;  %v2627_v37 = vrot.slane %v2626_v26, 4  ;;  %v3892_v8 = vshll.u32 %v6013_v3, 16  ;;  %v6775_v54 = vld [vmem:[#allocation2 + $0x74] sm:$0x1]  ;;  %vm9491_vm6 = vmmov %vm9458_vm0 }
 0x1bf   : > { %v2833_v58 = vrot.slane %v2832_v29, 4  ;;  %v2842_v41 = vor.u32 %v2841_v28, %v2837_v2  ;;  %v3898_v60 = vshll.u32 %v6014_v34, 16  ;;  %v3891_v61 = vrot.slane %v3889_v19, 4  ;;  %v6058_v31 = vld [vmem:[#allocation2 + $0xc] sm:$0xe] }
 0x1c0   : > { %v2631_v4 = vrot.slane %v2629_v27, 5  ;;  %v3894_v56 = vrot.slane %v3892_v8, 5  ;;  %v3902_v52 = vshrl.u32 %v6014_v34, 16  ;;  %v3908_v20 = vshll.u32 %v6015_v25, 16 }
 0x1c1   : > { %v2838_v21 = vsel %vm7876_vm1, %v2833_v58, %v2837_v2  ;;  %v2843_v15 = vrot.slane %v2842_v41, 4  ;;  %v3900_v7 = vrot.slane %v3898_v60, 5  ;;  %vm3201_vm7 = vcmask 1042432  }
 0x1c2   : > { %v2632_v39 = vsel %vm7876_vm1, %v2627_v37, %v2631_v4  ;;  %v3895_v55 = vor.u32 %v3894_v56, %v3891_v61  ;;  %v3904_v63 = vrot.slane %v3902_v52, 4  ;;  %v3910_v17 = vrot.slane %v3908_v20, 5  ;;  %v6067_v4 = vld [vmem:[#allocation2 + $0x78] sm:$0xe] }
 0x1c3   : > { %v5891_v18 = vcombine.low %v2622_v36, %v2632_v39  ;;  %v2848_v48 = vsel %vm7876_vm1, %v2843_v15, %v2847_v44  ;;  %vm3202_vm13 = vcmask 1046532   ;;  %v6082_v38 = vrot.slane %v6066_v51, 9  ;;  %v2564_v56 = vld [vmem:[#allocation2 + $0x18] sm:$0xf]  ;;  %v6776_v39 = vld [vmem:[#allocation2 + $0x10] sm:$0xf] }
 0x1c4   : > { %v5900_v62 = vcombine.low %v2838_v21, %v2848_v48  ;;  %v3896_v53 = vrot.slane %v3895_v55, 4  ;;  %v3905_v11 = vor.u32 %v3904_v63, %v3900_v7  ;;  %v4370_v16 = vrot.slane %v6774_v32, 5  ;;  %vm8091_vm12 = vmor %vm3201_vm7, %vm3202_vm13  ;;  %v8117_v55 = vld [vmem:[#allocation2 + $0x1c] sm:$0xf] }
 0x1c5   : > { %v3047_v13 = vsel %vm9480_vm15, %v5891_v18, 0  ;;  %v4373_v14 = vrot.slane %v6775_v54, 5  ;;  %v2634_v59 = vshrl.u32 %v2561_v24, 16  ;;  %v2637_v50 = vshll.u32 %v2561_v24, 16  ;;  %v6778_v32 = vld [vmem:[#allocation2 + $0x7c] sm:$0xf]  ;;  %vm9492_vm7 = vmmov %vm9458_vm0 }
 0x1c6   : > { %6366 = vmatpush3.bf16.xpose.msra.mxu1 %v3047_v13  ;;  %v3901_v23 = vsel %vm7876_vm1, %v3896_v53, %v3900_v7  ;;  %v3906_v47 = vrot.slane %v3905_v11, 4  ;;  %v2643_v5 = vshll.u32 %v8079_v49, 16  ;;  %v2647_v3 = vshrl.u32 %v8079_v49, 16  ;;  %v8126_v54 = vld [vmem:[%s9230_s4 + $0xa] sm:$0x3]  ;;  %vm9493_vm13 = vmmov %vm9458_vm0 }
 0x1c7   : > { %6626 = vmatprep.subr.msk.bf16.mxu1 %vm9481_vm2, %v5900_v62  ;;  %v4371_v45 = vsel %vm8091_vm12, %v6082_v38, %v4370_v16  ;;  %v4372_v33 = vrot.slane %v4370_v16, 4  ;;  %v2636_v1 = vrot.slane %v2634_v59, 4  ;;  %v2639_v34 = vrot.slane %v2637_v50, 5  ;;  %v6777_v38 = vld [vmem:[#allocation2 + $0x14] sm:$0x1]  ;;  %vm9494_vm15 = vmmov %vm9458_vm0 }
 0x1c8   : > { %v3911_v46 = vsel %vm7876_vm1, %v3906_v47, %v3910_v17  ;;  %v2645_v6 = vrot.slane %v2643_v5, 5  ;;  %v2649_v22 = vrot.slane %v2647_v3, 4  ;;  %v2653_v25 = vshll.u32 %v8083_v43, 16  ;;  %v8121_v62 = vld [vmem:[#allocation2 + $0x20] sm:$0x1]  ;;  %vm9495_vm2 = vmmov %vm9458_vm0 }
 0x1c9   : > { %v6048_v0 = vcombine.low %v3901_v23, %v3911_v46  ;;  %v4374_v40 = vsel %vm8091_vm12, %v4372_v33, %v4373_v14  ;;  %v2640_v26 = vor.u32 %v2639_v34, %v2636_v1  ;;  %v2850_v2 = vshrl.u32 %v2588_v9, 16  ;;  %v2591_v33 = vld [vmem:[#allocation2 + $0x84] sm:$0xf]  ;;  %v6779_v1 = vld [vmem:[%s9230_s4 + $0x8] sm:$0x3] }
 0x1ca   : > { %v6099_v27 = vcombine.low %v4371_v45, %v4374_v40  ;;  %v2650_v29 = vor.u32 %v2649_v22, %v2645_v6  ;;  %v2655_v28 = vrot.slane %v2653_v25, 5  ;;  %v2853_v44 = vshll.u32 %v2588_v9, 16  ;;  %v8141_v22 = vld [vmem:[#allocation2 + $0x88] sm:$0xf] }
 0x1cb   : > { %v4179_v36 = vsel %vm9484_vm8, %v6048_v0, 0  ;;  %v2641_v37 = vrot.slane %v2640_v26, 4  ;;  %v2852_v19 = vrot.slane %v2850_v2, 4  ;;  %v2859_v8 = vshll.u32 %v8097_v35, 16  ;;  %v8148_v26 = vld [vmem:[#allocation2 + $0x8c] sm:$0x1]  ;;  %vm9496_vm8 = vmmov %vm9458_vm0 }
 0x1cc   : > { %6434 = vmatpush3.bf16.xpose.msra.mxu0 %v4179_v36  ;;  %v2651_v58 = vrot.slane %v2650_v29, 4  ;;  %v2855_v41 = vrot.slane %v2853_v44, 5  ;;  %v2863_v60 = vshrl.u32 %v8097_v35, 16  ;;  %v2869_v61 = vshll.u32 %v8101_v12, 16  ;;  %v6059_v44 = vld [vmem:[#allocation2 + $0x18] sm:$0xe] }
 0x1cd   : > { %6657 = vmatprep.subr.msk.bf16.mxu0 %vm9485_vm10, %v6099_v27  ;;  %v2646_v52 = vsel %vm7876_vm1, %v2641_v37, %v2645_v6  ;;  %v2861_v20 = vrot.slane %v2859_v8, 5  ;;  %v6074_v51 = vrot.slane %v6058_v31, 9  ;;  %v4314_v21 = vrot.slane %v6776_v39, 5  ;;  %vm9497_vm10 = vmmov %vm9458_vm0 }
 0x1ce   : > { %v2656_v15 = vsel %vm7876_vm1, %v2651_v58, %v2655_v28  ;;  %v2856_v7 = vor.u32 %v2855_v41, %v2852_v19  ;;  %v2865_v24 = vrot.slane %v2863_v60, 4  ;;  %v2871_v18 = vrot.slane %v2869_v61, 5 }
 0x1cf   : > { %v5892_v63 = vcombine.low %v2646_v52, %v2656_v15  ;;  %v4315_v17 = vsel %vm8091_vm12, %v6074_v51, %v4314_v21  ;;  %v4316_v48 = vrot.slane %v4314_v21, 4  ;;  %v4317_v13 = vrot.slane %v6777_v38, 5  ;;  %v6068_v51 = vld [vmem:[#allocation2 + $0x84] sm:$0xe] }
 0x1d0   : > { %v2857_v53 = vrot.slane %v2856_v7, 4  ;;  %v2866_v11 = vor.u32 %v2865_v24, %v2861_v20  ;;  %v6083_v9 = vrot.slane %v6067_v4, 9  ;;  %v4377_v16 = vrot.slane %v6778_v32, 5  ;;  %v2567_v32 = vld [vmem:[#allocation2 + $0x24] sm:$0xf] }
 0x1d1   : > { %v3050_v14 = vsel %vm9486_vm4, %v5892_v63, 0  ;;  %v4318_v59 = vsel %vm8091_vm12, %v4316_v48, %v4317_v13  ;;  %v4380_v50 = vrot.slane %v7955_v30, 5  ;;  %v2658_v23 = vshrl.u32 %v2564_v56, 16  ;;  %v6780_v63 = vld [vmem:[#allocation2 + $0x1c] sm:$0xf]  ;;  %vm9498_vm4 = vmmov %vm9458_vm0 }
 0x1d2   : > { %6368 = vmatpush3.bf16.xpose.msra.mxu1 %v3050_v14  ;;  %v2862_v47 = vsel %vm7876_vm1, %v2857_v53, %v2861_v20  ;;  %v2867_v5 = vrot.slane %v2866_v11, 4  ;;  %v6091_v3 = vcombine.low %v4315_v17, %v4318_v59  ;;  %v4378_v45 = vsel %vm8091_vm12, %v6083_v9, %v4377_v16  ;;  %v6781_v48 = vld [vmem:[#allocation2 + $0x20] sm:$0x1] }
 0x1d3   : > { %6436 = vmatmul.mubr.msk.bf16.vlgmr.msra.gmra.mrb[16].mxu0 %vm9458_vm0, %v6779_v1  ;;  %v4379_v34 = vrot.slane %v4377_v16, 4  ;;  %v2660_v46 = vrot.slane %v2658_v23, 4  ;;  %v2661_v30 = vshll.u32 %v2564_v56, 16  ;;  %v2667_v6 = vshll.u32 %v8117_v55, 16 }
 0x1d4   : > { %v2872_v25 = vsel %vm7876_vm1, %v2867_v5, %v2871_v18  ;;  %v4478_v31 = vsel %vm9487_vm3, %v6091_v3, 0  ;;  %v2671_v0 = vshrl.u32 %v8117_v55, 16  ;;  %v2677_v40 = vshll.u32 %v8121_v62, 16  ;;  %6453 = vmatprep.mubr.msk.bf16.mxu0 %vm9488_vm9, %v8126_v54  ;;  %vm9499_vm3 = vmmov %vm9458_vm0 }
 0x1d5   : > { %v5901_v2 = vcombine.low %v2862_v47, %v2872_v25  ;;  %6438 = vmatpush3.bf16.xpose.msra.mxu0 %v4478_v31  ;;  %v4381_v27 = vsel %vm8091_vm12, %v4379_v34, %v4380_v50  ;;  %v2663_v29 = vrot.slane %v2661_v30, 5  ;;  %v2669_v28 = vrot.slane %v2667_v6, 5  ;;  %v6782_v50 = vld [vmem:[#allocation2 + $0x88] sm:$0xf]  ;;  %v8167_v34 = vld [vmem:[#allocation2 + $0x2c] sm:$0x1]  ;;  %vm9500_vm9 = vmmov %vm9458_vm0 }
 0x1d6   : > { %v6100_v36 = vcombine.low %v4378_v45, %v4381_v27  ;;  %v2673_v37 = vrot.slane %v2671_v0, 4  ;;  %v2679_v19 = vrot.slane %v2677_v40, 5  ;;  %v2874_v8 = vshrl.u32 %v2591_v33, 16  ;;  %v8165_v47 = vld [vmem:[#allocation2 + $0x28] sm:$0xf] }
 0x1d7   : > { %6627 = vmatprep.subr.msk.bf16.mxu1 %vm9489_vm11, %v5901_v2  ;;  %v2664_v4 = vor.u32 %v2663_v29, %v2660_v46  ;;  %v2877_v58 = vshll.u32 %v2591_v33, 16  ;;  %v2883_v41 = vshll.u32 %v8141_v22, 16  ;;  %v2887_v60 = vshrl.u32 %v8141_v22, 16  ;;  %v6783_v33 = vld [vmem:[#allocation2 + $0x8c] sm:$0x1]  ;;  %vm9501_vm11 = vmmov %vm9458_vm0 }
 0x1d8   : > { %6658 = vmatprep.subr.msk.bf16.mxu0 %vm9490_vm14, %v6100_v36  ;;  %v2674_v61 = vor.u32 %v2673_v37, %v2669_v28  ;;  %v2876_v56 = vrot.slane %v2874_v8, 4  ;;  %v2893_v52 = vshll.u32 %v8148_v26, 16  ;;  %v6075_v20 = vrot.slane %v6059_v44, 9  ;;  %v2594_v46 = vld [vmem:[#allocation2 + $0x90] sm:$0xf]  ;;  %vm9502_vm14 = vmmov %vm9458_vm0 }
 0x1d9   : > { %v2665_v39 = vrot.slane %v2664_v4, 4  ;;  %v2879_v21 = vrot.slane %v2877_v58, 5  ;;  %v2885_v15 = vrot.slane %v2883_v41, 5  ;;  %v2889_v7 = vrot.slane %v2887_v60, 4  ;;  %v8173_v0 = vld [vmem:[#allocation2 + $0x94] sm:$0xf] }
 0x1da   : > { %v2675_v24 = vrot.slane %v2674_v61, 4  ;;  %v2895_v18 = vrot.slane %v2893_v52, 5  ;;  %v4321_v17 = vrot.slane %v6780_v63, 5  ;;  %v4324_v38 = vrot.slane %v6781_v48, 5 }
 0x1db   : > { %v2670_v13 = vsel %vm7876_vm1, %v2665_v39, %v2669_v28  ;;  %v2880_v53 = vor.u32 %v2879_v21, %v2876_v56  ;;  %v2890_v11 = vor.u32 %v2889_v7, %v2885_v15  ;;  %v6084_v9 = vrot.slane %v6068_v51, 9 }
 0x1dc   : > { %v2680_v16 = vsel %vm7876_vm1, %v2675_v24, %v2679_v19  ;;  %v4322_v14 = vsel %vm8091_vm12, %v6075_v20, %v4321_v17  ;;  %v4323_v59 = vrot.slane %v4321_v17, 4  ;;  %v4384_v23 = vrot.slane %v6782_v50, 5  ;;  %v8182_v19 = vld [vmem:[#allocation2 + $0x98] sm:$0x1] }
 0x1dd   : > { %v5893_v5 = vcombine.low %v2670_v13, %v2680_v16  ;;  %v2881_v3 = vrot.slane %v2880_v53, 4  ;;  %v2891_v45 = vrot.slane %v2890_v11, 4  ;;  %v4387_v1 = vrot.slane %v6783_v33, 5 }
 0x1de   : > { %v4325_v30 = vsel %vm8091_vm12, %v4323_v59, %v4324_v38  ;;  %v4385_v6 = vsel %vm8091_vm12, %v6084_v9, %v4384_v23  ;;  %v4386_v25 = vrot.slane %v4384_v23, 4  ;;  %v2682_v31 = vshrl.u32 %v2567_v32, 16 }
 0x1df   : > { %v3053_v40 = vsel %vm9491_vm6, %v5893_v5, 0  ;;  %v2886_v2 = vsel %vm7876_vm1, %v2881_v3, %v2885_v15  ;;  %v2896_v27 = vsel %vm7876_vm1, %v2891_v45, %v2895_v18  ;;  %v6092_v29 = vcombine.low %v4322_v14, %v4325_v30  ;;  %v6060_v15 = vld [vmem:[#allocation2 + $0x24] sm:$0xe]  ;;  %v6069_v14 = vld [vmem:[#allocation2 + $0x90] sm:$0xe]  ;;  %vm9503_vm6 = vmmov %vm9458_vm0 }
 0x1e0   : > { %6370 = vmatpush3.bf16.xpose.msra.mxu1 %v3053_v40  ;;  %v5902_v28 = vcombine.low %v2886_v2, %v2896_v27  ;;  %v4388_v44 = vsel %vm8091_vm12, %v4386_v25, %v4387_v1  ;;  %v2684_v36 = vrot.slane %v2682_v31, 4  ;;  %v2685_v37 = vshll.u32 %v2567_v32, 16  ;;  %v6784_v32 = vld [vmem:[#allocation2 + $0x28] sm:$0xf]  ;;  %v6785_v5 = vld [vmem:[#allocation2 + $0x2c] sm:$0x1] }
 0x1e1   : > { %v4481_v8 = vsel %vm9492_vm7, %v6092_v29, 0  ;;  %v6101_v4 = vcombine.low %v4385_v6, %v4388_v44  ;;  %v2691_v58 = vshll.u32 %v8165_v47, 16  ;;  %v2695_v41 = vshrl.u32 %v8165_v47, 16  ;;  %v2570_v30 = vld [vmem:[#allocation2 + $0x30] sm:$0xf]  ;;  %vm9504_vm7 = vmmov %vm9458_vm0 }
 0x1e2   : > { %6628 = vmatprep.subr.msk.bf16.mxu1 %vm9493_vm13, %v5902_v28  ;;  %6440 = vmatpush3.bf16.xpose.msra.mxu0 %v4481_v8  ;;  %v2687_v60 = vrot.slane %v2685_v37, 5  ;;  %v2701_v61 = vshll.u32 %v8167_v34, 16  ;;  %v2898_v56 = vshrl.u32 %v2594_v46, 16  ;;  %v2901_v52 = vshll.u32 %v2594_v46, 16  ;;  %v6786_v40 = vld [vmem:[#allocation2 + $0x94] sm:$0xf]  ;;  %vm9505_vm13 = vmmov %vm9458_vm0 }
 0x1e3   : > { %6659 = vmatprep.subr.msk.bf16.mxu0 %vm9494_vm15, %v6101_v4  ;;  %v2693_v20 = vrot.slane %v2691_v58, 5  ;;  %v2697_v51 = vrot.slane %v2695_v41, 4  ;;  %v2907_v39 = vshll.u32 %v8173_v0, 16  ;;  %v2911_v21 = vshrl.u32 %v8173_v0, 16  ;;  %v8199_v27 = vld [vmem:[#allocation2 + $0x34] sm:$0xf]  ;;  %vm9506_vm15 = vmmov %vm9458_vm0 }
 0x1e4   : > { %v2688_v7 = vor.u32 %v2687_v60, %v2684_v36  ;;  %v2703_v24 = vrot.slane %v2701_v61, 5  ;;  %v2900_v18 = vrot.slane %v2898_v56, 4  ;;  %v2903_v63 = vrot.slane %v2901_v52, 5  ;;  %v6787_v36 = vld [vmem:[#allocation2 + $0x98] sm:$0x1] }
 0x1e5   : > { %v2698_v17 = vor.u32 %v2697_v51, %v2693_v20  ;;  %v2909_v48 = vrot.slane %v2907_v39, 5  ;;  %v2913_v38 = vrot.slane %v2911_v21, 4  ;;  %v2917_v13 = vshll.u32 %v8182_v19, 16  ;;  %v8205_v8 = vld [vmem:[#allocation2 + $0x38] sm:$0x1] }
 0x1e6   : > { %v2689_v53 = vrot.slane %v2688_v7, 4  ;;  %v2904_v11 = vor.u32 %v2903_v63, %v2900_v18  ;;  %v6076_v9 = vrot.slane %v6060_v15, 9  ;;  %v4328_v16 = vrot.slane %v6784_v32, 5  ;;  %v2597_v4 = vld [vmem:[#allocation2 + $0x9c] sm:$0xf] }
 0x1e7   : > { %v2699_v59 = vrot.slane %v2698_v17, 4  ;;  %v2914_v50 = vor.u32 %v2913_v38, %v2909_v48  ;;  %v2919_v23 = vrot.slane %v2917_v13, 5  ;;  %v4331_v3 = vrot.slane %v6785_v5, 5  ;;  %v8211_v56 = vld [vmem:[#allocation2 + $0xa0] sm:$0xf] }
 0x1e8   : > { %v2694_v45 = vsel %vm7876_vm1, %v2689_v53, %v2693_v20  ;;  %v2905_v33 = vrot.slane %v2904_v11, 4  ;;  %v4329_v1 = vsel %vm8091_vm12, %v6076_v9, %v4328_v16  ;;  %v4330_v46 = vrot.slane %v4328_v16, 4  ;;  %v8214_v21 = vld [vmem:[#allocation2 + $0xa4] sm:$0x1]  ;;  %v6061_v13 = vld [vmem:[#allocation2 + $0x30] sm:$0xe] }
 0x1e9   : > { %v2704_v6 = vsel %vm7876_vm1, %v2699_v59, %v2703_v24  ;;  %v2915_v25 = vrot.slane %v2914_v50, 4  ;;  %v6085_v31 = vrot.slane %v6069_v14, 9  ;;  %v4391_v2 = vrot.slane %v6786_v40, 5 }
 0x1ea   : > { %v5894_v29 = vcombine.low %v2694_v45, %v2704_v6  ;;  %v2910_v28 = vsel %vm7876_vm1, %v2905_v33, %v2909_v48  ;;  %v4332_v44 = vsel %vm8091_vm12, %v4330_v46, %v4331_v3  ;;  %v4394_v37 = vrot.slane %v6787_v36, 5  ;;  %v6789_v36 = vld [vmem:[#allocation2 + $0x38] sm:$0x1] }
 0x1eb   : > { %v2920_v58 = vsel %vm7876_vm1, %v2915_v25, %v2919_v23  ;;  %v6093_v41 = vcombine.low %v4329_v1, %v4332_v44  ;;  %v4392_v60 = vsel %vm8091_vm12, %v6085_v31, %v4391_v2  ;;  %v4393_v61 = vrot.slane %v4391_v2, 4  ;;  %v6070_v23 = vld [vmem:[#allocation2 + $0x9c] sm:$0xe]  ;;  %v6788_v2 = vld [vmem:[#allocation2 + $0x34] sm:$0xf] }
 0x1ec   : > { %v3056_v52 = vsel %vm9495_vm2, %v5894_v29, 0  ;;  %v5903_v20 = vcombine.low %v2910_v28, %v2920_v58  ;;  %v2706_v51 = vshrl.u32 %v2570_v30, 16  ;;  %v2709_v39 = vshll.u32 %v2570_v30, 16  ;;  %v2573_v58 = vld [vmem:[#allocation2 + $0x3c] sm:$0xf]  ;;  %vm9507_vm2 = vmmov %vm9458_vm0 }
 0x1ed   : > { %6372 = vmatpush3.bf16.xpose.msra.mxu1 %v3056_v52  ;;  %v4484_v15 = vsel %vm9496_vm8, %v6093_v41, 0  ;;  %v4395_v7 = vsel %vm8091_vm12, %v4393_v61, %v4394_v37  ;;  %v2715_v24 = vshll.u32 %v8199_v27, 16  ;;  %v2719_v18 = vshrl.u32 %v8199_v27, 16  ;;  %vm9508_vm8 = vmmov %vm9458_vm0 }
 0x1ee   : > { %6629 = vmatprep.subr.msk.bf16.mxu1 %vm9497_vm10, %v5903_v20  ;;  %6442 = vmatpush3.bf16.xpose.msra.mxu0 %v4484_v15  ;;  %v6102_v63 = vcombine.low %v4392_v60, %v4395_v7  ;;  %v2708_v17 = vrot.slane %v2706_v51, 4  ;;  %v2711_v48 = vrot.slane %v2709_v39, 5  ;;  %v2725_v38 = vshll.u32 %v8205_v8, 16  ;;  %v8233_v20 = vld [vmem:[#allocation2 + $0x40] sm:$0xf]  ;;  %vm9509_vm10 = vmmov %vm9458_vm0 }
 0x1ef   : > { %v2717_v53 = vrot.slane %v2715_v24, 5  ;;  %v2721_v11 = vrot.slane %v2719_v18, 4  ;;  %v2922_v9 = vshrl.u32 %v2597_v4, 16  ;;  %v2925_v32 = vshll.u32 %v2597_v4, 16  ;;  %v6790_v15 = vld [vmem:[#allocation2 + $0xa0] sm:$0xf] }
 0x1f0   : > { %6660 = vmatprep.subr.msk.bf16.mxu0 %vm9498_vm4, %v6102_v63  ;;  %v2712_v16 = vor.u32 %v2711_v48, %v2708_v17  ;;  %v2727_v14 = vrot.slane %v2725_v38, 5  ;;  %v2931_v59 = vshll.u32 %v8211_v56, 16  ;;  %v2935_v50 = vshrl.u32 %v8211_v56, 16  ;;  %v6791_v24 = vld [vmem:[#allocation2 + $0xa4] sm:$0x1]  ;;  %vm9510_vm4 = vmmov %vm9458_vm0 }
 0x1f1   : > { %v2722_v5 = vor.u32 %v2721_v11, %v2717_v53  ;;  %v2924_v3 = vrot.slane %v2922_v9, 4  ;;  %v2927_v45 = vrot.slane %v2925_v32, 5  ;;  %v2941_v33 = vshll.u32 %v8214_v21, 16  ;;  %v8239_v48 = vld [vmem:[#allocation2 + $0x44] sm:$0x1] }
 0x1f2   : > { %v2713_v1 = vrot.slane %v2712_v16, 4  ;;  %v2933_v46 = vrot.slane %v2931_v59, 5  ;;  %v2937_v30 = vrot.slane %v2935_v50, 4  ;;  %v6077_v6 = vrot.slane %v6061_v13, 9  ;;  %v2600_v16 = vld [vmem:[#allocation2 + $0xa8] sm:$0xf] }
 0x1f3   : > { %v2723_v25 = vrot.slane %v2722_v5, 4  ;;  %v2928_v31 = vor.u32 %v2927_v45, %v2924_v3  ;;  %v2943_v40 = vrot.slane %v2941_v33, 5  ;;  %v4335_v29 = vrot.slane %v6788_v2, 5 }
 0x1f4   : > { %v2718_v28 = vsel %vm7876_vm1, %v2713_v1, %v2717_v53  ;;  %v2938_v44 = vor.u32 %v2937_v30, %v2933_v46  ;;  %v4338_v37 = vrot.slane %v6789_v36, 5  ;;  %v6086_v4 = vrot.slane %v6070_v23, 9  ;;  %v8250_v1 = vld [vmem:[#allocation2 + $0xac] sm:$0xf]  ;;  %v8255_v36 = vld [vmem:[#allocation2 + $0xb0] sm:$0x1] }
 0x1f5   : > { %v2728_v41 = vsel %vm7876_vm1, %v2723_v25, %v2727_v14  ;;  %v2929_v60 = vrot.slane %v2928_v31, 4  ;;  %v4336_v61 = vsel %vm8091_vm12, %v6077_v6, %v4335_v29  ;;  %v4337_v52 = vrot.slane %v4335_v29, 4  ;;  %v6062_v31 = vld [vmem:[#allocation2 + $0x3c] sm:$0xe] }
 0x1f6   : > { %v5895_v51 = vcombine.low %v2718_v28, %v2728_v41  ;;  %v2939_v39 = vrot.slane %v2938_v44, 4  ;;  %v4398_v7 = vrot.slane %v6790_v15, 5  ;;  %v4401_v18 = vrot.slane %v6791_v24, 5  ;;  %v6792_v24 = vld [vmem:[#allocation2 + $0x40] sm:$0xf] }
 0x1f7   : > { %v2934_v63 = vsel %vm7876_vm1, %v2929_v60, %v2933_v46  ;;  %v4339_v17 = vsel %vm8091_vm12, %v4337_v52, %v4338_v37  ;;  %v2730_v38 = vshrl.u32 %v2573_v58, 16  ;;  %v2733_v13 = vshll.u32 %v2573_v58, 16 }
 0x1f8   : > { %v3059_v53 = vsel %vm9458_vm0, %v5895_v51, 0  ;;  %v2944_v11 = vsel %vm7876_vm1, %v2939_v39, %v2943_v40  ;;  %v6094_v9 = vcombine.low %v4336_v61, %v4339_v17  ;;  %v4399_v32 = vsel %vm8091_vm12, %v6086_v4, %v4398_v7  ;;  %v6071_v51 = vld [vmem:[#allocation2 + $0xa8] sm:$0xe] }
 0x1f9   : > { %6374 = vmatpush3.bf16.xpose.msra.mxu1 %v3059_v53  ;;  %v5904_v14 = vcombine.low %v2934_v63, %v2944_v11  ;;  %v4400_v59 = vrot.slane %v4398_v7, 4  ;;  %v2732_v50 = vrot.slane %v2730_v38, 4  ;;  %v2735_v23 = vrot.slane %v2733_v13, 5  ;;  %v6793_v13 = vld [vmem:[#allocation2 + $0x44] sm:$0x1] }
 0x1fa   : > { %v4487_v5 = vsel %vm9499_vm3, %v6094_v9, 0  ;;  %v2739_v3 = vshll.u32 %v8233_v20, 16  ;;  %v2743_v45 = vshrl.u32 %v8233_v20, 16  ;;  %v2749_v33 = vshll.u32 %v8239_v48, 16  ;;  %v2576_v11 = vld [vmem:[#allocation2 + $0x48] sm:$0xf]  ;;  %vm9511_vm3 = vmmov %vm9458_vm0 }
 0x1fb   : > { %6630 = vmatprep.subr.msk.bf16.mxu1 %vm9500_vm9, %v5904_v14  ;;  %6444 = vmatpush3.bf16.xpose.msra.mxu0 %v4487_v5  ;;  %v4402_v46 = vsel %vm8091_vm12, %v4400_v59, %v4401_v18  ;;  %v2736_v30 = vor.u32 %v2735_v23, %v2732_v50  ;;  %v2946_v6 = vshrl.u32 %v2600_v16, 16  ;;  %v2949_v25 = vshll.u32 %v2600_v16, 16  ;;  %v6794_v23 = vld [vmem:[#allocation2 + $0xac] sm:$0xf]  ;;  %vm9512_vm9 = vmmov %vm9458_vm0 }
 0x1fc   : > { %v6103_v40 = vcombine.low %v4399_v32, %v4402_v46  ;;  %v2741_v2 = vrot.slane %v2739_v3, 5  ;;  %v2745_v29 = vrot.slane %v2743_v45, 4  ;;  %v2751_v28 = vrot.slane %v2749_v33, 5  ;;  %v6795_v3 = vld [vmem:[#allocation2 + $0xb0] sm:$0x1] }
 0x1fd   : > { %v2737_v44 = vrot.slane %v2736_v30, 4  ;;  %v2948_v37 = vrot.slane %v2946_v6, 4  ;;  %v2951_v4 = vrot.slane %v2949_v25, 5  ;;  %v2955_v58 = vshll.u32 %v8250_v1, 16  ;;  %v8267_v33 = vld [vmem:[#allocation2 + $0x4c] sm:$0xf] }
 0x1fe   : > { %6661 = vmatprep.subr.msk.bf16.mxu0 %vm9501_vm11, %v6103_v40  ;;  %v2746_v41 = vor.u32 %v2745_v29, %v2741_v2  ;;  %v2959_v60 = vshrl.u32 %v8250_v1, 16  ;;  %v2965_v61 = vshll.u32 %v8255_v36, 16  ;;  %v6078_v52 = vrot.slane %v6062_v31, 9  ;;  %vm9513_vm11 = vmmov %vm9458_vm0 }
 0x1ff   : > { %v2742_v39 = vsel %vm7876_vm1, %v2737_v44, %v2741_v2  ;;  %v2952_v15 = vor.u32 %v2951_v4, %v2948_v37  ;;  %v2957_v7 = vrot.slane %v2955_v58, 5  ;;  %v4342_v18 = vrot.slane %v6792_v24, 5 }
 0x200   : > { %v2747_v63 = vrot.slane %v2746_v41, 4  ;;  %v2961_v17 = vrot.slane %v2959_v60, 4  ;;  %v2967_v38 = vrot.slane %v2965_v61, 5  ;;  %v4345_v53 = vrot.slane %v6793_v13, 5  ;;  %v2603_v41 = vld [vmem:[#allocation2 + $0xb4] sm:$0xf] }
 0x201   : > { %v2953_v9 = vrot.slane %v2952_v15, 4  ;;  %v4343_v32 = vsel %vm8091_vm12, %v6078_v52, %v4342_v18  ;;  %v4344_v16 = vrot.slane %v4342_v18, 4  ;;  %v6087_v14 = vrot.slane %v6071_v51, 9  ;;  %v8287_v15 = vld [vmem:[#allocation2 + $0xbc] sm:$0x1] }
 0x202   : > { %v2752_v59 = vsel %vm7876_vm1, %v2747_v63, %v2751_v28  ;;  %v2962_v50 = vor.u32 %v2961_v17, %v2957_v7  ;;  %v4405_v5 = vrot.slane %v6794_v23, 5  ;;  %v4408_v45 = vrot.slane %v6795_v3, 5  ;;  %v8275_v28 = vld [vmem:[#allocation2 + $0x50] sm:$0x1]  ;;  %v6072_v3 = vld [vmem:[#allocation2 + $0xb4] sm:$0xe] }
 0x203   : > { %v5896_v46 = vcombine.low %v2742_v39, %v2752_v59  ;;  %v2958_v30 = vsel %vm7876_vm1, %v2953_v9, %v2957_v7  ;;  %v4346_v6 = vsel %vm8091_vm12, %v4344_v16, %v4345_v53  ;;  %v2754_v25 = vshrl.u32 %v2576_v11, 16  ;;  %v8285_v39 = vld [vmem:[#allocation2 + $0xb8] sm:$0xf] }
 0x204   : > { %v2963_v31 = vrot.slane %v2962_v50, 4  ;;  %v6095_v40 = vcombine.low %v4343_v32, %v4346_v6  ;;  %v4406_v2 = vsel %vm8091_vm12, %v6087_v14, %v4405_v5  ;;  %v4407_v29 = vrot.slane %v4405_v5, 4  ;;  %v6063_v14 = vld [vmem:[#allocation2 + $0x48] sm:$0xe] }
 0x205   : > { %v3062_v44 = vsel %vm9502_vm14, %v5896_v46, 0  ;;  %v2756_v37 = vrot.slane %v2754_v25, 4  ;;  %v2757_v4 = vshll.u32 %v2576_v11, 16  ;;  %v2763_v58 = vshll.u32 %v8267_v33, 16  ;;  %vm9514_vm14 = vmmov %vm9458_vm0 }
 0x206   : > { %6376 = vmatpush3.bf16.xpose.msra.mxu1 %v3062_v44  ;;  %v2968_v60 = vsel %vm7876_vm1, %v2963_v31, %v2967_v38  ;;  %v4490_v61 = vsel %vm9503_vm6, %v6095_v40, 0  ;;  %v4409_v52 = vsel %vm8091_vm12, %v4407_v29, %v4408_v45  ;;  %v2767_v51 = vshrl.u32 %v8267_v33, 16  ;;  %vm9515_vm6 = vmmov %vm9458_vm0 }
 0x207   : > { %v5905_v7 = vcombine.low %v2958_v30, %v2968_v60  ;;  %6446 = vmatpush3.bf16.xpose.msra.mxu0 %v4490_v61  ;;  %v6104_v24 = vcombine.low %v4406_v2, %v4409_v52  ;;  %v2759_v18 = vrot.slane %v2757_v4, 5  ;;  %v2765_v63 = vrot.slane %v2763_v58, 5  ;;  %v6796_v2 = vld [vmem:[#allocation2 + $0x4c] sm:$0xf]  ;;  %v6797_v4 = vld [vmem:[#allocation2 + $0x50] sm:$0x1] }
 0x208   : > { %v2769_v17 = vrot.slane %v2767_v51, 4  ;;  %v2773_v13 = vshll.u32 %v8275_v28, 16  ;;  %v2970_v38 = vshrl.u32 %v2603_v41, 16  ;;  %v2973_v53 = vshll.u32 %v2603_v41, 16  ;;  %v2579_v60 = vld [vmem:[#allocation2 + $0x54] sm:$0xf] }
 0x209   : > { %6631 = vmatprep.subr.msk.bf16.mxu1 %vm9504_vm7, %v5905_v7  ;;  %6662 = vmatprep.subr.msk.bf16.mxu0 %vm9505_vm13, %v6104_v24  ;;  %v2760_v11 = vor.u32 %v2759_v18, %v2756_v37  ;;  %v2979_v9 = vshll.u32 %v8285_v39, 16  ;;  %v2983_v32 = vshrl.u32 %v8285_v39, 16  ;;  %v2989_v16 = vshll.u32 %v8287_v15, 16  ;;  %vm9516_vm7 = vmmov %vm9458_vm0 }
 0x20a   : > { %v2770_v59 = vor.u32 %v2769_v17, %v2765_v63  ;;  %v2775_v50 = vrot.slane %v2773_v13, 5  ;;  %v2972_v23 = vrot.slane %v2970_v38, 4  ;;  %v2975_v5 = vrot.slane %v2973_v53, 5  ;;  %v6798_v17 = vld [vmem:[#allocation2 + $0xb8] sm:$0xf]  ;;  %vm9517_vm13 = vmmov %vm9458_vm0 }
 0x20b   : > { %v2761_v45 = vrot.slane %v2760_v11, 4  ;;  %v2981_v46 = vrot.slane %v2979_v9, 5  ;;  %v2985_v30 = vrot.slane %v2983_v32, 4  ;;  %v2991_v6 = vrot.slane %v2989_v16, 5  ;;  %v6799_v38 = vld [vmem:[#allocation2 + $0xbc] sm:$0x1] }
 0x20c   : > { %v2771_v25 = vrot.slane %v2770_v59, 4  ;;  %v2976_v31 = vor.u32 %v2975_v5, %v2972_v23  ;;  %v6079_v40 = vrot.slane %v6063_v14, 9  ;;  %v4349_v29 = vrot.slane %v6796_v2, 5  ;;  %v8305_v9 = vld [vmem:[#allocation2 + $0x58] sm:$0xf] }
 0x20d   : > { %v2766_v44 = vsel %vm7876_vm1, %v2761_v45, %v2765_v63  ;;  %v2986_v37 = vor.u32 %v2985_v30, %v2981_v46  ;;  %v4352_v58 = vrot.slane %v6797_v4, 5  ;;  %v6088_v41 = vrot.slane %v6072_v3, 9  ;;  %v8307_v32 = vld [vmem:[#allocation2 + $0x5c] sm:$0x1]  ;;  %v6064_v4 = vld [vmem:[#allocation2 + $0x54] sm:$0xe] }
 0x20e   : > { %v2776_v61 = vsel %vm7876_vm1, %v2771_v25, %v2775_v50  ;;  %v2977_v52 = vrot.slane %v2976_v31, 4  ;;  %v4350_v51 = vsel %vm8091_vm12, %v6079_v40, %v4349_v29  ;;  %v4351_v7 = vrot.slane %v4349_v29, 4 }
 0x20f   : > { %v5897_v24 = vcombine.low %v2766_v44, %v2776_v61  ;;  %v2987_v18 = vrot.slane %v2986_v37, 4  ;;  %v4412_v13 = vrot.slane %v6798_v17, 5  ;;  %v4415_v53 = vrot.slane %v6799_v38, 5  ;;  %v6800_v44 = vld [vmem:[#allocation2 + $0x64] sm:$0xf] }
 0x210   : > { %v2982_v63 = vsel %vm7876_vm1, %v2977_v52, %v2981_v46  ;;  %v4353_v11 = vsel %vm8091_vm12, %v4351_v7, %v4352_v58  ;;  %v2778_v16 = vshrl.u32 %v2579_v60, 16  ;;  %v2781_v14 = vshll.u32 %v2579_v60, 16  ;;  %v3145_v52 = vld [vmem:[#allocation2 + $0x60] sm:$0xe]  ;;  %v6801_v17 = vld [vmem:[#allocation2 + $0x68] sm:$0x1] }
 0x211   : > { %v3065_v59 = vsel %vm9506_vm15, %v5897_v24, 0  ;;  %v2992_v50 = vsel %vm7876_vm1, %v2987_v18, %v2991_v6  ;;  %v6096_v23 = vcombine.low %v4350_v51, %v4353_v11  ;;  %v4414_v3 = vrot.slane %v4412_v13, 4  ;;  %v6073_v51 = vld [vmem:[#allocation2 + $0xc0] sm:$0xe]  ;;  %v6803_v11 = vld [vmem:[#allocation2 + $0x5c] sm:$0x1]  ;;  %vm9518_vm15 = vmmov %vm9458_vm0 }
 0x212   : > { %6378 = vmatpush3.bf16.xpose.msra.mxu1 %v3065_v59  ;;  %v5906_v5 = vcombine.low %v2982_v63, %v2992_v50  ;;  %v2780_v45 = vrot.slane %v2778_v16, 4  ;;  %v2783_v46 = vrot.slane %v2781_v14, 5  ;;  %v2787_v25 = vshll.u32 %v8305_v9, 16  ;;  %v6802_v63 = vld [vmem:[#allocation2 + $0x58] sm:$0xf] }
 0x213   : > { %v4493_v30 = vsel %vm9507_vm2, %v6096_v23, 0  ;;  %v2791_v31 = vshrl.u32 %v8305_v9, 16  ;;  %v2797_v40 = vshll.u32 %v8307_v32, 16  ;;  %v4413_v6 = vsel %vm8091_vm12, %v6088_v41, %v4412_v13  ;;  %v3137_v14 = vld [vmem:[#allocation2] sm:$0xe]  ;;  %vm9519_vm2 = vmmov %vm9458_vm0 }
 0x214   : > { %6632 = vmatprep.subr.msk.bf16.mxu1 %vm9508_vm8, %v5906_v5  ;;  %6448 = vmatpush3.bf16.xpose.msra.mxu0 %v4493_v30  ;;  %v4416_v2 = vsel %vm8091_vm12, %v4414_v3, %v4415_v53  ;;  %v2784_v29 = vor.u32 %v2783_v46, %v2780_v45  ;;  %v3262_v37 = vrot.slane %v6800_v44, 5  ;;  %v2789_v60 = vrot.slane %v2787_v25, 5  ;;  %v6804_v5 = vld [vmem:[#allocation2 + $0xc4] sm:$0xf]  ;;  %vm9520_vm8 = vmmov %vm9458_vm0 }
 0x215   : > { %v6105_v58 = vcombine.low %v4413_v6, %v4416_v2  ;;  %v2793_v61 = vrot.slane %v2791_v31, 4  ;;  %v2799_v24 = vrot.slane %v2797_v40, 5  ;;  %v3265_v38 = vrot.slane %v6801_v17, 5  ;;  %v6805_v6 = vld [vmem:[#allocation2 + $0xc8] sm:$0x1] }
 0x216   : > { %v2785_v7 = vrot.slane %v2784_v29, 4  ;;  %v3264_v18 = vrot.slane %v3262_v37, 4  ;;  %v6080_v13 = vrot.slane %v6064_v4, 9  ;;  %v4356_v53 = vrot.slane %v6802_v63, 5  ;;  %v3146_v63 = vld [vmem:[#allocation2 + $0x6c] sm:$0xe] }
 0x217   : > { %6663 = vmatprep.subr.msk.bf16.mxu0 %vm9509_vm10, %v6105_v58  ;;  %v2794_v41 = vor.u32 %v2793_v61, %v2789_v60  ;;  %v4359_v16 = vrot.slane %v6803_v11, 5  ;;  %v5916_v50 = vrot.slane %v3145_v52, 9  ;;  %v6089_v23 = vrot.slane %v6073_v51, 9  ;;  %v6806_v58 = vld [vmem:[#allocation2 + $0x4] sm:$0xf]  ;;  %vm9521_vm10 = vmmov %vm9458_vm0 }
 0x218   : > { %v2790_v59 = vsel %vm7876_vm1, %v2785_v7, %v2789_v60  ;;  %v4419_v3 = vrot.slane %v6804_v5, 5  ;;  %v3266_v46 = vsel %vm8091_vm12, %v3264_v18, %v3265_v38  ;;  %v4357_v30 = vsel %vm8091_vm12, %v6080_v13, %v4356_v53  ;;  %v6807_v61 = vld [vmem:[#allocation2 + $0x8] sm:$0x1]  ;;  %v6065_v38 = vld [vmem:[#allocation2 + $0x60] sm:$0xe] }
 0x219   : > { %v2795_v45 = vrot.slane %v2794_v41, 4  ;;  %v4358_v25 = vrot.slane %v4356_v53, 4  ;;  %v4422_v2 = vrot.slane %v6805_v6, 5  ;;  %v5908_v29 = vrot.slane %v3137_v14, 9  ;;  %v6808_v53 = vld [vmem:[#allocation2 + $0x70] sm:$0xf] }
 0x21a   : > { %v4420_v31 = vsel %vm8091_vm12, %v6089_v23, %v4419_v3  ;;  %v4421_v40 = vrot.slane %v4419_v3, 4  ;;  %v3206_v60 = vrot.slane %v6806_v58, 5  ;;  %v3209_v52 = vrot.slane %v6807_v61, 5  ;;  %v6809_v23 = vld [vmem:[#allocation2 + $0x74] sm:$0x1] }
 0x21b   : > { %v2800_v44 = vsel %vm7876_vm1, %v2795_v45, %v2799_v24  ;;  %v4360_v4 = vsel %vm8091_vm12, %v4358_v25, %v4359_v16  ;;  %v3263_v7 = vsel %vm8091_vm12, %v5916_v50, %v3262_v37  ;;  %v3269_v11 = vrot.slane %v6808_v53, 5  ;;  %v6810_v45 = vld [vmem:[#allocation2 + $0x64] sm:$0xf] }
 0x21c   : > { %v5898_v51 = vcombine.low %v2790_v59, %v2800_v44  ;;  %v6097_v18 = vcombine.low %v4357_v30, %v4360_v4  ;;  %v4423_v17 = vsel %vm8091_vm12, %v4421_v40, %v4422_v2  ;;  %v5933_v41 = vcombine.low %v3263_v7, %v3266_v46  ;;  %v6811_v40 = vld [vmem:[#allocation2 + $0x68] sm:$0x1] }
 0x21d   : > { %v3207_v24 = vsel %vm8091_vm12, %v5908_v29, %v3206_v60  ;;  %v3208_v13 = vrot.slane %v3206_v60, 4  ;;  %v6106_v59 = vcombine.low %v4420_v31, %v4423_v17  ;;  %v3272_v37 = vrot.slane %v6809_v23, 5  ;;  %v3138_v31 = vld [vmem:[#allocation2 + $0xc] sm:$0xe]  ;;  %v3139_v17 = vld [vmem:[#allocation2 + $0x18] sm:$0xe] }
 0x21e   : > { %v3068_v16 = vsel %vm9510_vm4, %v5898_v51, 0  ;;  %v4496_v14 = vsel %vm9458_vm0, %v6097_v18, 0  ;;  %v3271_v5 = vrot.slane %v3269_v11, 4  ;;  %v6081_v3 = vrot.slane %v6065_v38, 9  ;;  %v3147_v51 = vld [vmem:[#allocation2 + $0x78] sm:$0xe]  ;;  %vm9522_vm4 = vmmov %vm9458_vm0 }
 0x21f   : > { %6380 = vmatpush3.bf16.xpose.msra.mxu1 %v3068_v16  ;;  %6450 = vmatpush3.bf16.xpose.msra.mxu0 %v4496_v14  ;;  %v3210_v50 = vsel %vm8091_vm12, %v3208_v13, %v3209_v52  ;;  %v4363_v46 = vrot.slane %v6810_v45, 5  ;;  %v5917_v25 = vrot.slane %v3146_v63, 9  ;;  %v4366_v6 = vrot.slane %v6811_v40, 5  ;;  %v6741_v63 = vld [vmem:[#allocation2 + $0x18] sm:$0xff]   ;;  %v3148_v16 = vld [vmem:[#allocation2 + $0x84] sm:$0xe] }
 0x220   : > { %6633 = vmatprep.subr.msk.bf16.mxu1 %vm9511_vm3, %v5933_v41  ;;  %6664 = vmatprep.subr.msk.bf16.mxu0 %vm9512_vm9, %v6106_v59  ;;  %v5925_v30 = vcombine.low %v3207_v24, %v3210_v50  ;;  %v3213_v2 = vrot.slane %v8079_v49, 5  ;;  %v3216_v44 = vrot.slane %v8083_v43, 5  ;;  %v3273_v4 = vsel %vm8091_vm12, %v3271_v5, %v3272_v37  ;;  %v6740_v41 = vld [vmem:[#allocation2 + $0x78] sm:$0xff]   ;;  %v3140_v45 = vld [vmem:[#allocation2 + $0x24] sm:$0xe]  ;;  %vm9523_vm3 = vmmov %vm9458_vm0 }
 0x221   : > { %v4365_v29 = vrot.slane %v4363_v46, 4  ;;  %v4364_v60 = vsel %vm8091_vm12, %v6081_v3, %v4363_v46  ;;  %v5909_v52 = vrot.slane %v3138_v31, 9  ;;  %v3276_v7 = vrot.slane %v8097_v35, 5  ;;  %v6812_v35 = vld [vmem:[%s9230_s4 + $0x2] sm:$0x3]  ;;  %v6743_v40 = vld [vmem:[#allocation2 + $0x24] sm:$0xff]   ;;  %vm9524_vm9 = vmmov %vm9458_vm0 }
 0x222   : > { %v3215_v58 = vrot.slane %v3213_v2, 4  ;;  %v3370_v18 = vsel %vm9513_vm11, %v5925_v30, 0  ;;  %v3270_v49 = vsel %vm8091_vm12, %v5917_v25, %v3269_v11  ;;  %v3279_v13 = vrot.slane %v8101_v12, 5  ;;  %v8372_v12 = vld [vmem:[%s9230_s4 + $0x4] sm:$0x3]  ;;  %vm9525_vm11 = vmmov %vm9458_vm0 }
 0x223   : > { %v4367_v61 = vsel %vm8091_vm12, %v4365_v29, %v4366_v6  ;;  %v5934_v38 = vcombine.low %v3270_v49, %v3273_v4  ;;  %v3220_v53 = vrot.slane %v8117_v55, 5  ;;  %v5918_v14 = vrot.slane %v3147_v51, 9  ;;  %v3141_v6 = vld [vmem:[#allocation2 + $0x30] sm:$0xe] }
 0x224   : > { %v6098_v43 = vcombine.low %v4364_v60, %v4367_v61  ;;  %v3217_v24 = vsel %vm8091_vm12, %v3215_v58, %v3216_v44  ;;  %v3223_v59 = vrot.slane %v8121_v62, 5  ;;  %v3283_v23 = vrot.slane %v8141_v22, 5  ;;  %v3150_v58 = vld [vmem:[#allocation2 + $0x9c] sm:$0xe] }
 0x225   : > { %v3214_v55 = vsel %vm8091_vm12, %v5909_v52, %v3213_v2  ;;  %v3278_v37 = vrot.slane %v3276_v7, 4  ;;  %v5910_v50 = vrot.slane %v3139_v17, 9  ;;  %v3222_v5 = vrot.slane %v3220_v53, 4  ;;  %v3142_v17 = vld [vmem:[#allocation2 + $0x3c] sm:$0xe] }
 0x226   : > { %6382 = vmatmul.mubr.msk.bf16.vlgmr.msra.gmra.mrb[48].mxu1 %vm9514_vm14, %v6812_v35  ;;  %v4499_v11 = vsel %vm9515_vm6, %v6098_v43, 0  ;;  %v5926_v62 = vcombine.low %v3214_v55, %v3217_v24  ;;  %v3285_v3 = vrot.slane %v3283_v23, 4  ;;  %v3286_v22 = vrot.slane %v8148_v26, 5  ;;  %v3143_v55 = vld [vmem:[#allocation2 + $0x48] sm:$0xe]  ;;  %vm9526_vm14 = vmmov %vm9458_vm0 }
 0x227   : > { %6384 = vmatpush3.bf16.xpose.msra.mxu1 %v3370_v18  ;;  %6452 = vmatpush3.bf16.xpose.msra.mxu0 %v4499_v11  ;;  %v3280_v46 = vsel %vm8091_vm12, %v3278_v37, %v3279_v13  ;;  %v3224_v30 = vsel %vm8091_vm12, %v3222_v5, %v3223_v59  ;;  %v5919_v25 = vrot.slane %v3148_v16, 9  ;;  %v3277_v31 = vsel %vm8091_vm12, %v5918_v14, %v3276_v7  ;;  %v3151_v16 = vld [vmem:[#allocation2 + $0xa8] sm:$0xe]  ;;  %vm9527_vm6 = vmmov %vm9458_vm0 }
 0x228   : > { %6634 = vmatprep.subr.msk.bf16.mxu1 %vm9516_vm7, %v5934_v38  ;;  %6665 = vmatprep.subr.msk.bf16.mxu0 %vm9517_vm13, %v6740_v41  ;;  %v4690_v2 = vsel %vm9519_vm2, %v6741_v63, 0  ;;  %v3221_v26 = vsel %vm8091_vm12, %v5910_v50, %v3220_v53  ;;  %v8392_v29 = vsel %vm8091_vm12, %v3285_v3, %v3286_v22  ;;  %v5911_v44 = vrot.slane %v3140_v45, 9  ;;  %v8409_v63 = vld [vmem:[%s9230_s4 + $0xc] sm:$0x3]  ;;  %v3152_v45 = vld [vmem:[#allocation2 + $0xb4] sm:$0xe]  ;;  %vm9530_vm13 = vmmov %vm9458_vm0 }
 0x229   : > { %6399 = vmatprep.mubr.msk.bf16.mxu1 %vm9518_vm15, %v8372_v12  ;;  %v3227_v4 = vrot.slane %v8165_v47, 5  ;;  %v3373_v60 = vsel %vm9520_vm8, %v5926_v62, 0  ;;  %v5935_v61 = vcombine.low %v3277_v31, %v3280_v46  ;;  %v5927_v52 = vcombine.low %v3221_v26, %v3224_v30  ;;  %v6742_v47 = vld [vmem:[#allocation2 + $0x84] sm:$0xff]   ;;  %vm9531_vm15 = vmmov %vm9458_vm0 }
 0x22a   : > { %v5912_v51 = vrot.slane %v3141_v6, 9  ;;  %v3284_v7 = vsel %vm8091_vm12, %v5919_v25, %v3283_v23  ;;  %v4693_v18 = vsel %vm9521_vm10, %v6743_v40, 0  ;;  %v3230_v49 = vrot.slane %v8167_v34, 5  ;;  %v3149_v40 = vld [vmem:[#allocation2 + $0x90] sm:$0xe]  ;;  %vm9532_vm2 = vmmov %vm9458_vm0 }
 0x22b   : > { %v3234_v43 = vrot.slane %v8199_v27, 5  ;;  %v5936_v38 = vcombine.low %v3284_v7, %v8392_v29  ;;  %v3237_v41 = vrot.slane %v8205_v8, 5  ;;  %v5921_v24 = vrot.slane %v3150_v58, 9  ;;  %vm9533_vm8 = vmmov %vm9458_vm0 }
 0x22c   : > { %v3297_v13 = vrot.slane %v8211_v56, 5  ;;  %v8413_v34 = vsel %vm8091_vm12, %v5911_v44, %v3227_v4  ;;  %v3300_v53 = vrot.slane %v8214_v21, 5  ;;  %v3376_v8 = vsel %vm9524_vm9, %v5927_v52, 0  ;;  %vm9534_vm10 = vmmov %vm9458_vm0 }
 0x22d   : > { %v3236_v27 = vrot.slane %v3234_v43, 4  ;;  %v3290_v56 = vrot.slane %v8173_v0, 5  ;;  %v8422_v35 = vsel %vm8091_vm12, %v5912_v51, %v3234_v43  ;;  %v5913_v59 = vrot.slane %v3142_v17, 9  ;;  %v363_v43 = vld [vmem:[#allocation2 + $0xcc] sm:$0x1]  ;;  %v6745_v17 = vld [vmem:[#allocation2 + $0x30] sm:$0xff]   ;;  %vm9537_vm9 = vmmov %vm9458_vm0 }
 0x22e   : > { %6454 = vmatmul.mubr.msk.bf16.vlgmr.msra.gmra.mrb[16].mxu0 %vm9522_vm4, %v8126_v54  ;;  %v3229_v54 = vrot.slane %v3227_v4, 4  ;;  %v3299_v11 = vrot.slane %v3297_v13, 4  ;;  %v8430_v21 = vsel %vm8091_vm12, %v5921_v24, %v3297_v13  ;;  %v3241_v23 = vrot.slane %v8233_v20, 5  ;;  %v3144_v4 = vld [vmem:[#allocation2 + $0x54] sm:$0xe]  ;;  %vm9535_vm4 = vmmov %vm9458_vm0 }
 0x22f   : > { %6386 = vmatpush3.bf16.xpose.msra.mxu1 %v3373_v60  ;;  %6456 = vmatpush3.bf16.xpose.msra.mxu0 %v4690_v2  ;;  %v8426_v14 = vsel %vm8091_vm12, %v3236_v27, %v3237_v41  ;;  %v3244_v50 = vrot.slane %v8239_v48, 5  ;;  %v5922_v5 = vrot.slane %v3151_v16, 9  ;;  %v3293_v62 = vrot.slane %v8182_v19, 5  ;;  %v6744_v2 = vld [vmem:[#allocation2 + $0x90] sm:$0xff]  }
 0x230   : > { %6635 = vmatprep.subr.msk.bf16.mxu1 %vm9458_vm0, %v5935_v61  ;;  %6666 = vmatprep.subr.msk.bf16.mxu0 %vm9523_vm3, %v6742_v47  ;;  %v5929_v0 = vcombine.low %v8422_v35, %v8426_v14  ;;  %v8439_v37 = vsel %vm8091_vm12, %v3299_v11, %v3300_v53  ;;  %v3243_v20 = vrot.slane %v3241_v23, 4  ;;  %v3304_v22 = vrot.slane %v8250_v1, 5  ;;  %v6158_v53 = vld [vmem:[#allocation2 + $0x18] sm:$0xf]  ;;  %vm9536_vm3 = vmmov %vm9458_vm0  ;;  %v8544_v35 = vld [vmem:[#allocation2 + $0x28] sm:$0xf] }
 0x231   : > { %6471 = vmatprep.mubr.msk.bf16.mxu0 %vm9525_vm11, %v8409_v63  ;;  %v5938_v3 = vcombine.low %v8430_v21, %v8439_v37  ;;  %v3231_v46 = vsel %vm8091_vm12, %v3229_v54, %v3230_v49  ;;  %v8450_v30 = vsel %vm8091_vm12, %v5913_v59, %v3241_v23  ;;  %v3307_v25 = vrot.slane %v8255_v36, 5  ;;  %v9528_v54 = vld [vmem:[#allocation3_spill] sm:$0xff]  ;;  %vm9538_vm11 = vmmov %vm9458_vm0  ;;  %v8546_v14 = vld [vmem:[#allocation2 + $0x80] sm:$0x1] }
 0x232   : > { %v5914_v48 = vrot.slane %v3143_v55, 9  ;;  %v8455_v19 = vsel %vm8091_vm12, %v3243_v20, %v3244_v50  ;;  %v8459_v6 = vsel %vm8091_vm12, %v5922_v5, %v3304_v22  ;;  %v3306_v1 = vrot.slane %v3304_v22, 4  ;;  %v6182_v5 = vld [vmem:[#allocation2 + $0x78] sm:$0xf]  ;;  %v8518_v20 = vld [vmem:[#allocation2 + $0x1c] sm:$0xf] }
 0x233   : > { %v3248_v31 = vrot.slane %v8267_v33, 5  ;;  %v5930_v26 = vcombine.low %v8450_v30, %v8455_v19  ;;  %v3251_v29 = vrot.slane %v8275_v28, 5  ;;  %v5923_v36 = vrot.slane %v3152_v45, 9  ;;  %v6749_v45 = vld [vmem:[#allocation2 + $0x48] sm:$0xff]  }
 0x234   : > { %v3311_v44 = vrot.slane %v8285_v39, 5  ;;  %v3292_v58 = vrot.slane %v3290_v56, 4  ;;  %v8468_v60 = vsel %vm8091_vm12, %v3306_v1, %v3307_v25  ;;  %v3314_v33 = vrot.slane %v8287_v15, 5 }
 0x235   : > { %v3250_v61 = vrot.slane %v3248_v31, 4  ;;  %v5928_v28 = vcombine.low %v8413_v34, %v3231_v46  ;;  %v5920_v52 = vrot.slane %v3149_v40, 9  ;;  %v5939_v39 = vcombine.low %v8459_v6, %v8468_v60  ;;  %v6751_v46 = vld [vmem:[#allocation2 + $0x54] sm:$0xff]  }
 0x236   : > { %v3313_v51 = vrot.slane %v3311_v44, 4  ;;  %v8478_v7 = vsel %vm8091_vm12, %v5914_v48, %v3248_v31  ;;  %v5915_v15 = vrot.slane %v3144_v4, 9  ;;  %v3255_v49 = vrot.slane %v8305_v9, 5  ;;  %v6754_v48 = vld [vmem:[#allocation2 + $0x60] sm:$0xff]  }
 0x237   : > { %6388 = vmatpush3.bf16.xpose.msra.mxu1 %v3376_v8  ;;  %6458 = vmatpush3.bf16.xpose.msra.mxu0 %v4693_v18  ;;  %v8482_v18 = vsel %vm8091_vm12, %v3250_v61, %v3251_v29  ;;  %v3258_v24 = vrot.slane %v8307_v32, 5  ;;  %v3294_v13 = vsel %vm8091_vm12, %v3292_v58, %v3293_v62  ;;  %vm9529_vm7 = vnez %v9528_v54  ;;  %v6746_v8 = vld [vmem:[#allocation2 + $0x9c] sm:$0xff]   ;;  %v6185_v4 = vld [vmem:[#allocation2 + $0x84] sm:$0xf]  ;;  %v6758_v61 = vld [vmem:[#allocation2 + $0x6c] sm:$0xff]  }
 0x238   : > { %6636 = vmatprep.subr.msk.bf16.mxu1 %vm9526_vm14, %v5936_v38  ;;  %6667 = vmatprep.subr.msk.bf16.mxu0 %vm9527_vm6, %v6744_v2  ;;  %v5931_v47 = vcombine.low %v8478_v7, %v8482_v18  ;;  %v8489_v38 = vsel %vm8091_vm12, %v5923_v36, %v3311_v44  ;;  %v8493_v41 = vsel %vm8091_vm12, %v3313_v51, %v3314_v33  ;;  %v3257_v34 = vrot.slane %v3255_v49, 4  ;;  %v6747_v62 = vld [vmem:[#allocation2 + $0x3c] sm:$0xff]   ;;  %v6755_v2 = vld [vmem:[#allocation2 + $0xc] sm:$0xff]   ;;  %v6161_v51 = vld [vmem:[#allocation2 + $0x24] sm:$0xf] }
 0x239   : > { %v5940_v9 = vcombine.low %v8489_v38, %v8493_v41  ;;  %v364_v27 = vsel %vm9529_vm7, 0, %v363_v43  ;;  %v3291_v16 = vsel %vm8091_vm12, %v5920_v52, %v3290_v56  ;;  %v8506_v11 = vsel %vm8091_vm12, %v5915_v15, %v3255_v49  ;;  %v8516_v56 = vld [vmem:[#allocation2 + $0x7c] sm:$0xf]  ;;  %v6186_v52 = vld [vmem:[#allocation2 + $0x88] sm:$0xf]  ;;  %vm9539_vm14 = vmmov %vm9458_vm0 }
 0x23a   : > { %v8510_v32 = vsel %vm8091_vm12, %v3257_v34, %v3258_v24  ;;  %365 = vst [vmem:[#allocation2 + $0xcc] sm:$0x1] %v364_v27  ;;  %v3379_v59 = vsel %vm9530_vm13, %v5928_v28, 0  ;;  %v5937_v23 = vcombine.low %v3291_v16, %v3294_v13  ;;  %v4696_v55 = vsel %vm9531_vm15, %v6745_v17, 0  ;;  %v6748_v18 = vld [vmem:[#allocation2 + $0xa8] sm:$0xff]   ;;  %vm9540_vm6 = vmmov %vm9458_vm0 }
 0x23b   : > { %v5932_v50 = vcombine.low %v8506_v11, %v8510_v32  ;;  %v4829_v22 = vshrl.u32 %v6158_v53, 16  ;;  %v4832_v25 = vshll.u32 %v6158_v53, 16  ;;  %v5021_v40 = vshrl.u32 %v6182_v5, 16  ;;  %v8556_v53 = vld [vmem:[#allocation2 + $0x20] sm:$0x1]  ;;  %vm9542_vm7 = vmmov %vm9458_vm0 }
 0x23c   : > { %v5024_v1 = vshll.u32 %v6182_v5, 16  ;;  %v5030_v31 = vshll.u32 %v8516_v56, 16  ;;  %v5034_v29 = vshrl.u32 %v8516_v56, 16  ;;  %v4838_v36 = vshll.u32 %v8518_v20, 16  ;;  %9541 = vst [vmem:[#allocation11_spill] sm:$0xff] %v8556_v53  ;;  %vm9543_vm13 = vmmov %vm9458_vm0 }
 0x23d   : > { %v4842_v44 = vshrl.u32 %v8518_v20, 16  ;;  %v4699_v58 = vsel %vm9534_vm10, %v6747_v62, 0  ;;  %v4831_v33 = vrot.slane %v4829_v22, 4  ;;  %v4834_v28 = vrot.slane %v4832_v25, 5  ;;  %vm9544_vm15 = vmmov %vm9458_vm0 }
 0x23e   : > { %v3382_v7 = vsel %vm9535_vm4, %v5929_v0, 0  ;;  %v3385_v15 = vsel %vm9458_vm0, %v5930_v26, 0  ;;  %v4702_v49 = vsel %vm9536_vm3, %v6749_v45, 0  ;;  %v8537_v43 = vsel %vm9537_vm9, %v6751_v46, 0  ;;  %vm9548_vm10 = vmmov %vm9458_vm0 }
 0x23f   : > { %6390 = vmatpush3.bf16.xpose.msra.mxu1 %v3379_v59  ;;  %6460 = vmatpush3.bf16.xpose.msra.mxu0 %v4696_v55  ;;  %v8540_v17 = vsel %vm9538_vm11, %v6754_v48, 0  ;;  %v5023_v24 = vrot.slane %v5021_v40, 4  ;;  %v5026_v13 = vrot.slane %v5024_v1, 5  ;;  %v8542_v34 = vrot.slane %v5030_v31, 5  ;;  %v6759_v59 = vld [vmem:[#allocation2 + $0x18] sm:$0xff]   ;;  %vm9549_vm4 = vmmov %vm9458_vm0 }
 0x240   : > { %6637 = vmatprep.subr.msk.bf16.mxu1 %vm9532_vm2, %v5937_v23  ;;  %6668 = vmatprep.subr.msk.bf16.mxu0 %vm9533_vm8, %v6746_v8  ;;  %v5036_v0 = vrot.slane %v5034_v29, 4  ;;  %v8548_v30 = vrot.slane %v4838_v36, 5  ;;  %v4844_v19 = vrot.slane %v4842_v44, 4  ;;  %v5045_v26 = vshrl.u32 %v6185_v4, 16  ;;  %v6188_v48 = vld [vmem:[#allocation2 + $0x90] sm:$0xf]  ;;  %vm9546_vm2 = vmmov %vm9458_vm0 }
 0x241   : > { %v8551_v54 = vsel %vm9539_vm14, %v5931_v47, 0  ;;  %v8554_v27 = vsel %vm9540_vm6, %v6755_v2, 0  ;;  %v4835_v16 = vor.u32 %v4834_v28, %v4831_v33  ;;  %v5048_v8 = vshll.u32 %v6185_v4, 16  ;;  %v8571_v40 = vld [vmem:[#allocation2 + $0x8c] sm:$0x1]  ;;  %vm9547_vm8 = vmmov %vm9458_vm0 }
 0x242   : > { %v5054_v23 = vshll.u32 %v6186_v52, 16  ;;  %v5058_v55 = vshrl.u32 %v6186_v52, 16  ;;  %v4853_v5 = vshrl.u32 %v6161_v51, 16  ;;  %v4856_v47 = vshll.u32 %v6161_v51, 16  ;;  %9545 = vst [vmem:[#allocation16_spill] sm:$0xff] %v8571_v40  ;;  %vm9550_vm3 = vmmov %vm9458_vm0 }
 0x243   : > { %v8564_v62 = vsel %vm9544_vm15, %v6758_v61, 0  ;;  %v5027_v22 = vor.u32 %v5026_v13, %v5023_v24  ;;  %v5040_v45 = vshll.u32 %v8546_v14, 16  ;;  %v4862_v46 = vshll.u32 %v8544_v35, 16  ;;  %v8579_v61 = vld [vmem:[#allocation2 + $0x2c] sm:$0x1]  ;;  %vm9551_vm9 = vmmov %vm9458_vm0 }
 0x244   : > { %v5037_v25 = vor.u32 %v5036_v0, %v8542_v34  ;;  %v4845_v21 = vor.u32 %v4844_v19, %v8548_v30  ;;  %v4848_v37 = vshll.u32 %v8556_v53, 16  ;;  %v5050_v1 = vrot.slane %v5048_v8, 5  ;;  %v8583_v52 = vld [vmem:[#allocation2 + $0x94] sm:$0xf]  ;;  %vm9552_vm11 = vmmov %vm9458_vm0 }
 0x245   : > { %v4855_v31 = vrot.slane %v4853_v5, 4  ;;  %v4858_v2 = vrot.slane %v4856_v47, 5  ;;  %v4866_v29 = vshrl.u32 %v8544_v35, 16  ;;  %v8575_v36 = vsel %vm9546_vm2, %v6759_v59, 0  ;;  %v6164_v5 = vld [vmem:[#allocation2 + $0x30] sm:$0xf]  ;;  %vm9553_vm14 = vmmov %vm9458_vm0 }
 0x246   : > { %v4836_v44 = vrot.slane %v4835_v16, 4  ;;  %v8577_v4 = vrot.slane %v5054_v23, 5  ;;  %v8581_v33 = vrot.slane %v4862_v46, 5  ;;  %v5069_v51 = vshrl.u32 %v6188_v48, 16  ;;  %vm9554_vm6 = vmmov %vm9458_vm0 }
 0x247   : > { %6392 = vmatpush3.bf16.xpose.msra.mxu1 %v3382_v7  ;;  %6462 = vmatpush3.bf16.xpose.msra.mxu0 %v4699_v58  ;;  %v5060_v58 = vrot.slane %v5058_v55, 4  ;;  %v4868_v28 = vrot.slane %v4866_v29, 4  ;;  %v5072_v7 = vshll.u32 %v6188_v48, 16  ;;  %v5028_v24 = vrot.slane %v5027_v22, 4  ;;  %vm9558_vm15 = vmmov %vm9458_vm0 }
 0x248   : > { %6638 = vmatprep.subr.msk.bf16.mxu1 %vm9542_vm7, %v5938_v3  ;;  %6669 = vmatprep.subr.msk.bf16.mxu0 %vm9543_vm13, %v6748_v18  ;;  %v5047_v3 = vrot.slane %v5045_v26, 4  ;;  %v6750_v18 = vld [vmem:[#allocation2 + $0xb4] sm:$0xff]   ;;  %v5038_v13 = vrot.slane %v5037_v25, 4  ;;  %v5042_v0 = vrot.slane %v5040_v45, 5  ;;  %v4850_v19 = vrot.slane %v4848_v37, 5  ;;  %v6761_v25 = vld [vmem:[#allocation2 + $0x24] sm:$0xff]   ;;  %vm9555_vm7 = vmmov %vm9458_vm0 }
 0x249   : > { %v4846_v26 = vrot.slane %v4845_v21, 4  ;;  %v5064_v8 = vshll.u32 %v8571_v40, 16  ;;  %v4859_v59 = vor.u32 %v4858_v2, %v4855_v31  ;;  %v4841_v23 = vsel %vm7876_vm1, %v4836_v44, %v8548_v30  ;;  %vm9556_vm13 = vmmov %vm9458_vm0 }
 0x24a   : > { %v5051_v16 = vor.u32 %v5050_v1, %v5047_v3  ;;  %v5061_v55 = vor.u32 %v5060_v58, %v8577_v4  ;;  %v4869_v47 = vor.u32 %v4868_v28, %v8581_v33  ;;  %v5071_v22 = vrot.slane %v5069_v51, 4  ;;  %v8612_v3 = vld [vmem:[#allocation2 + $0x34] sm:$0xf]  ;;  %v6191_v58 = vld [vmem:[#allocation2 + $0x9c] sm:$0xf]  ;;  %v6752_v28 = vld [vmem:[#allocation2 + $0xc0] sm:$0xff]  }
 0x24b   : > { %v5074_v45 = vrot.slane %v5072_v7, 5  ;;  %v5082_v6 = vshrl.u32 %v8583_v52, 16  ;;  %v8603_v60 = vsel %vm9549_vm4, %v5932_v50, 0  ;;  %v5043_v30 = vsel %vm7876_vm1, %v5038_v13, %v5042_v0  ;;  %vm9561_vm2 = vmmov %vm9458_vm0 }
 0x24c   : > { %v4851_v46 = vsel %vm7876_vm1, %v4846_v26, %v4850_v19  ;;  %v5052_v21 = vrot.slane %v5051_v16, 4  ;;  %v4860_v37 = vrot.slane %v4859_v59, 4  ;;  %v4877_v48 = vshrl.u32 %v6164_v5, 16  ;;  %vm9564_vm4 = vmmov %vm9458_vm0 }
 0x24d   : > { %v4880_v11 = vshll.u32 %v6164_v5, 16  ;;  %v6207_v32 = vcombine.low %v4841_v23, %v4851_v46  ;;  %v5062_v50 = vrot.slane %v5061_v55, 4  ;;  %v5066_v1 = vrot.slane %v5064_v8, 5  ;;  %v6167_v8 = vld [vmem:[#allocation2 + $0x3c] sm:$0xf] }
 0x24e   : > { %v4870_v2 = vrot.slane %v4869_v47, 4  ;;  %v5075_v29 = vor.u32 %v5074_v45, %v5071_v22  ;;  %v5084_v44 = vrot.slane %v5082_v6, 4  ;;  %v8619_v7 = vsel %vm9458_vm0, %v6761_v25, 0  ;;  %v8653_v5 = vld [vmem:[#allocation2 + $0x38] sm:$0x1]  ;;  %v6757_v25 = vld [vmem:[#allocation2 + $0xcc] sm:$0xff]  }
 0x24f   : > { %6394 = vmatpush3.bf16.xpose.msra.mxu1 %v3385_v15  ;;  %6464 = vmatpush3.bf16.xpose.msra.mxu0 %v4702_v49  ;;  %v4872_v15 = vshll.u32 %v8579_v61, 16  ;;  %v5078_v49 = vshll.u32 %v8583_v52, 16  ;;  %v4890_v13 = vshrl.u32 %v8612_v3, 16  ;;  %v5057_v0 = vsel %vm7876_vm1, %v5052_v21, %v8577_v4  ;;  %v8643_v4 = vld [vmem:[#allocation2 + $0xa0] sm:$0xf] }
 0x250   : > { %6639 = vmatprep.subr.msk.bf16.mxu1 %vm9547_vm8, %v5939_v39  ;;  %6670 = vmatprep.subr.msk.bf16.mxu0 %vm9548_vm10, %v6750_v18  ;;  %v5033_v39 = vsel %vm7876_vm1, %v5028_v24, %v8542_v34  ;;  %v8621_v18 = vld [vmem:[#allocation2 + $0x98] sm:$0x1]  ;;  %v4886_v24 = vshll.u32 %v8612_v3, 16  ;;  %v4865_v19 = vsel %vm7876_vm1, %v4860_v37, %v8581_v33  ;;  %v4879_v26 = vrot.slane %v4877_v48, 4  ;;  %vm9562_vm8 = vmmov %vm9458_vm0 }
 0x251   : > { %v4874_v31 = vrot.slane %v4872_v15, 5  ;;  %v8614_v34 = vrot.slane %v5078_v49, 5  ;;  %v8616_v51 = vcombine.low %v5033_v39, %v5043_v30  ;;  %v4882_v16 = vrot.slane %v4880_v11, 5  ;;  %v6763_v49 = vld [vmem:[#allocation2 + $0x30] sm:$0xff]   ;;  %vm9563_vm10 = vmmov %vm9458_vm0 }
 0x252   : > { %v5093_v59 = vshrl.u32 %v6191_v58, 16  ;;  %v5096_v33 = vshll.u32 %v6191_v58, 16  ;;  %v8647_v55 = vrot.slane %v5075_v29, 4  ;;  %v5088_v41 = vshll.u32 %v8621_v18, 16  ;;  %v8672_v58 = vld [vmem:[#allocation2 + $0xa4] sm:$0x1] }
 0x253   : > { %v4875_v23 = vsel %vm7876_vm1, %v4870_v2, %v4874_v31  ;;  %v5085_v38 = vor.u32 %v5084_v44, %v8614_v34  ;;  %v8655_v47 = vrot.slane %v4886_v24, 5  ;;  %v4892_v22 = vrot.slane %v4890_v13, 4  ;;  %v6753_v2 = vld [vmem:[#allocation2 + $0x6c] sm:$0xff]   ;;  %v6194_v13 = vld [vmem:[#allocation2 + $0xa8] sm:$0xf] }
 0x254   : > { %v6208_v15 = vcombine.low %v4865_v19, %v4875_v23  ;;  %v4901_v45 = vshrl.u32 %v6167_v8, 16  ;;  %v4883_v6 = vor.u32 %v4882_v16, %v4879_v26  ;;  %v5102_v39 = vshll.u32 %v8643_v4, 16 }
 0x255   : > { %v5106_v30 = vshrl.u32 %v8643_v4, 16  ;;  %v4904_v46 = vshll.u32 %v6167_v8, 16  ;;  %v5095_v21 = vrot.slane %v5093_v59, 4  ;;  %v5098_v37 = vrot.slane %v5096_v33, 5  ;;  %v8682_v8 = vld [vmem:[#allocation2 + $0xac] sm:$0xf] }
 0x256   : > { %v4896_v31 = vshll.u32 %v8653_v5, 16  ;;  %v8669_v29 = vsel %vm9553_vm14, %v6763_v49, 0  ;;  %v4893_v44 = vor.u32 %v4892_v22, %v8655_v47  ;;  %v4884_v19 = vrot.slane %v4883_v6, 4  ;;  %v6170_v33 = vld [vmem:[#allocation2 + $0x48] sm:$0xf]  ;;  %vm9573_vm14 = vmmov %vm9458_vm0 }
 0x257   : > { %6396 = vmatpush3.bf16.xpose.msra.mxu1 %v8551_v54  ;;  %6466 = vmatpush3.bf16.xpose.msra.mxu0 %v8537_v43  ;;  %v8639_v43 = vsel %vm9552_vm11, %v6207_v32, 0  ;;  %v5067_v54 = vsel %vm7876_vm1, %v5062_v50, %v5066_v1  ;;  %v8663_v50 = vrot.slane %v5085_v38, 4  ;;  %v8665_v1 = vrot.slane %v5088_v41, 5  ;;  %v8699_v6 = vld [vmem:[#allocation2 + $0x4c] sm:$0xf]  ;;  %vm9572_vm11 = vmmov %vm9458_vm0 }
 0x258   : > { %6640 = vmatprep.subr.msk.bf16.mxu1 %vm9550_vm3, %v5940_v9  ;;  %6671 = vmatprep.subr.msk.bf16.mxu0 %vm9551_vm9, %v6752_v28  ;;  %v8651_v9 = vld [vmem:[#allocation2 + $0x40] sm:$0xf]  ;;  %v8661_v32 = vcombine.low %v5057_v0, %v5067_v54  ;;  %v4903_v28 = vrot.slane %v4901_v45, 4  ;;  %v4906_v24 = vrot.slane %v4904_v46, 5  ;;  %v5081_v0 = vsel %vm7876_vm1, %v8647_v55, %v8614_v34  ;;  %v8695_v55 = vld [vmem:[#allocation2 + $0x44] sm:$0x1]  ;;  %vm9570_vm3 = vmmov %vm9458_vm0 }
 0x259   : > { %v4910_v48 = vshll.u32 %v8651_v9, 16  ;;  %v4914_v11 = vshrl.u32 %v8651_v9, 16  ;;  %v8680_v26 = vrot.slane %v5102_v39, 5  ;;  %v5108_v16 = vrot.slane %v5106_v30, 4  ;;  %9557 = vst [vmem:[#allocation36_spill] sm:$0xff] %v8699_v6  ;;  %vm9571_vm9 = vmmov %vm9458_vm0 }
 0x25a   : > { %v8687_v54 = vsel %vm9556_vm13, %v6208_v15, 0  ;;  %v5091_v34 = vsel %vm7876_vm1, %v8663_v50, %v8665_v1  ;;  %v4898_v23 = vrot.slane %v4896_v31, 5  ;;  %v5117_v38 = vshrl.u32 %v6194_v13, 16  ;;  %v6765_v50 = vld [vmem:[#allocation2 + $0x3c] sm:$0xff]   ;;  %vm9579_vm13 = vmmov %vm9458_vm0 }
 0x25b   : > { %v4916_v59 = vrot.slane %v4914_v11, 4  ;;  %v5120_v41 = vshll.u32 %v6194_v13, 16  ;;  %v4894_v49 = vrot.slane %v4893_v44, 4  ;;  %v4907_v22 = vor.u32 %v4906_v24, %v4903_v28 }
 0x25c   : > { %v5126_v15 = vshll.u32 %v8682_v8, 16  ;;  %v5130_v45 = vshrl.u32 %v8682_v8, 16  ;;  %v4889_v39 = vsel %vm7876_vm1, %v4884_v19, %v8655_v47  ;;  %v5109_v30 = vor.u32 %v5108_v16, %v8680_v26  ;;  %v6756_v47 = vld [vmem:[#allocation2 + $0x78] sm:$0xff]   ;;  %v8719_v16 = vld [vmem:[%s9230_s4 + $0x6] sm:$0x3] }
 0x25d   : > { %v5112_v46 = vshll.u32 %v8672_v58, 16  ;;  %v4928_v11 = vshll.u32 %v6170_v33, 16  ;;  %v5119_v1 = vrot.slane %v5117_v38, 4  ;;  %v5122_v31 = vrot.slane %v5120_v41, 5  ;;  %9559 = vst [vmem:[#allocation17_spill] sm:$0xff] %v8719_v16 }
 0x25e   : > { %v4938_v44 = vshrl.u32 %v8699_v6, 16  ;;  %v4899_v28 = vsel %vm7876_vm1, %v4894_v49, %v4898_v23  ;;  %v4908_v24 = vrot.slane %v4907_v22, 4  ;;  %v8714_v13 = vrot.slane %v5126_v15, 5  ;;  %v6197_v15 = vld [vmem:[#allocation2 + $0xb4] sm:$0xf] }
 0x25f   : > { %6398 = vmatpush3.bf16.xpose.msra.mxu1 %v8603_v60  ;;  %6468 = vmatpush3.bf16.xpose.msra.mxu0 %v8540_v17  ;;  %v5099_v60 = vor.u32 %v5098_v37, %v5095_v21  ;;  %v8689_v17 = vrot.slane %v4910_v48, 5  ;;  %v4920_v48 = vshll.u32 %v8695_v55, 16  ;;  %v5132_v19 = vrot.slane %v5130_v45, 4 }
 0x260   : > { %6641 = vmatprep.subr.msk.bf16.mxu1 %vm9554_vm6, %v6753_v2  ;;  %6672 = vmatprep.subr.msk.bf16.mxu0 %vm9555_vm7, %v6757_v25  ;;  %v4925_v25 = vshrl.u32 %v6170_v33, 16  ;;  %v4934_v2 = vshll.u32 %v8699_v6, 16  ;;  %v4930_v38 = vrot.slane %v4928_v11, 5  ;;  %v6209_v23 = vcombine.low %v4889_v39, %v4899_v28  ;;  %vm9574_vm6 = vmmov %vm9458_vm0 }
 0x261   : > { %v5100_v21 = vrot.slane %v5099_v60, 4  ;;  %v4917_v37 = vor.u32 %v4916_v59, %v8689_v17  ;;  %v5110_v60 = vrot.slane %v5109_v30, 4  ;;  %v5114_v59 = vrot.slane %v5112_v46, 5  ;;  %vm9575_vm7 = vmmov %vm9458_vm0 }
 0x262   : > { %v4927_v33 = vrot.slane %v4925_v25, 4  ;;  %v4922_v49 = vrot.slane %v4920_v48, 5  ;;  %v8732_v45 = vrot.slane %v4934_v2, 5  ;;  %v4940_v30 = vrot.slane %v4938_v44, 4  ;;  %v8749_v48 = vld [vmem:[#allocation2 + $0xb8] sm:$0xf] }
 0x263   : > { %v4918_v41 = vrot.slane %v4917_v37, 4  ;;  %v8736_v46 = vcombine.low %v5081_v0, %v5091_v34  ;;  %v4913_v39 = vsel %vm7876_vm1, %v4908_v24, %v8689_v17  ;;  %v5133_v25 = vor.u32 %v5132_v19, %v8714_v13  ;;  %v8745_v37 = vld [vmem:[#allocation2 + $0x50] sm:$0x1]  ;;  %9566 = vst [vmem:[#allocation38_spill] sm:$0xff] %v8749_v48  ;;  %v6173_v34 = vld [vmem:[#allocation2 + $0x54] sm:$0xf] }
 0x264   : > { %9565 = vst [vmem:[#allocation18_spill] sm:$0xff] %v8745_v37  ;;  %v5141_v11 = vshrl.u32 %v6197_v15, 16  ;;  %v5144_v0 = vshll.u32 %v6197_v15, 16  ;;  %v6767_v44 = vld [vmem:[#allocation2 + $0x48] sm:$0xff]   ;;  %v4941_v19 = vor.u32 %v4940_v30, %v8732_v45 }
 0x265   : > { %v4923_v17 = vsel %vm7876_vm1, %v4918_v41, %v4922_v49  ;;  %v4949_v41 = vshrl.u32 %v6173_v34, 16  ;;  %v4952_v49 = vshll.u32 %v6173_v34, 16  ;;  %v8794_v30 = vsel %vm9573_vm14, %v6767_v44, 0  ;;  %v8830_v34 = vld [vmem:[#allocation2 + $0x64] sm:$0xf]  ;;  %vm9592_vm14 = vmmov %vm9458_vm0 }
 0x266   : > { %6400 = vmatmul.mubr.msk.bf16.vlgmr.msra.gmra.mrb[48].mxu1 %vm9558_vm15, %v8372_v12  ;;  %v8723_v12 = vld [vmem:[#allocation2 + $0xb0] sm:$0x1]  ;;  %v6210_v28 = vcombine.low %v4913_v39, %v4923_v17  ;;  %9578 = vst [vmem:[#allocation40_spill] sm:$0xff] %v8830_v34  ;;  %vm9580_vm15 = vmmov %vm9458_vm0 }
 0x267   : > { %6402 = vmatpush3.bf16.xpose.msra.mxu1 %v8554_v27  ;;  %6470 = vmatpush3.bf16.xpose.msra.mxu0 %v8564_v62  ;;  %9560 = vst [vmem:[#allocation37_spill] sm:$0xff] %v8723_v12  ;;  %v5136_v22 = vshll.u32 %v8723_v12, 16  ;;  %v5105_v27 = vsel %vm7876_vm1, %v5100_v21, %v8680_v26  ;;  %v5123_v62 = vor.u32 %v5122_v31, %v5119_v1  ;;  %v6760_v1 = vld [vmem:[#allocation2 + $0x84] sm:$0xff]   ;;  %v4951_v17 = vrot.slane %v4949_v41, 4 }
 0x268   : > { %6642 = vmatprep.subr.msk.bf16.mxu1 %vm9561_vm2, %v6756_v47  ;;  %6673 = vmatprep.subr.msk.bf16.mxu0 %vm9562_vm8, %v8616_v51  ;;  %v8739_v51 = vsel %vm9564_vm4, %v6765_v50, 0  ;;  %v5115_v26 = vsel %vm7876_vm1, %v5110_v60, %v5114_v59  ;;  %v4931_v21 = vor.u32 %v4930_v38, %v4927_v33  ;;  %v8752_v50 = vsel %vm9458_vm0, %v6209_v23, 0  ;;  %v8760_v47 = vld [vmem:[#allocation2 + $0xbc] sm:$0x1]  ;;  %v8766_v59 = vld [vmem:[#allocation2 + $0x58] sm:$0xf]  ;;  %vm9583_vm2 = vmmov %vm9458_vm0 }
 0x269   : > { %6417 = vmatprep.mubr.msk.bf16.mxu1 %vm9563_vm10, %v8719_v16  ;;  %v8754_v31 = vcombine.low %v5105_v27, %v5115_v26  ;;  %v8758_v2 = vrot.slane %v5136_v22, 5  ;;  %9567 = vst [vmem:[#allocation19_spill] sm:$0xff] %v8760_v47  ;;  %v8762_v24 = vrot.slane %v5123_v62, 4  ;;  %v4944_v60 = vshll.u32 %v8745_v37, 16  ;;  %9568 = vst [vmem:[#allocation39_spill] sm:$0xff] %v8766_v59 }
 0x26a   : > { %v8771_v33 = vld [vmem:[%s9230_s4 + $0xe] sm:$0x3]  ;;  %v8775_v38 = vrot.slane %v5133_v25, 4  ;;  %v5150_v23 = vshll.u32 %v8749_v48, 16  ;;  %v2341_v22 = vld [vmem:[%s9231_s5] sm:$0xf]  ;;  %vm9586_vm8 = vmmov %vm9458_vm0 }
 0x26b   : > { %9569 = vst [vmem:[#allocation5_spill] sm:$0xff] %v8771_v33  ;;  %v8783_v15 = vrot.slane %v4931_v21, 4  ;;  %v8785_v27 = vrot.slane %v5141_v11, 4  ;;  %v8787_v62 = vrot.slane %v5144_v0, 5  ;;  %v4962_v39 = vshrl.u32 %v8766_v59, 16  ;;  %2344 = vperm.xlu0 %6715, %v2341_v22   ;;  %vm9587_vm10 = vmmov %vm9458_vm0 }
 0x26c   : > { %v6200_v25 = vld [vmem:[#allocation2 + $0xc0] sm:$0xf]  ;;  %v8800_v26 = vsel %vm9574_vm6, %v6210_v28, 0  ;;  %v8806_v11 = vrot.slane %v4941_v19, 4  ;;  %v4954_v44 = vrot.slane %v4952_v49, 5  ;;  %vm9588_vm4 = vmmov %vm9458_vm0 }
 0x26d   : > { %v6176_v0 = vld [vmem:[#allocation2 + $0x60] sm:$0xf]  ;;  %v8818_v28 = vld [vmem:[#allocation2 + $0xc4] sm:$0xf]  ;;  %v4937_v19 = vsel %vm7876_vm1, %v8783_v15, %v8732_v45  ;;  %v8828_v21 = vld [vmem:[#allocation2 + $0x5c] sm:$0x1] }
 0x26e   : > { %6472 = vmatmul.mubr.msk.bf16.vlgmr.msra.gmra.mrb[16].mxu0 %vm9570_vm3, %v8409_v63  ;;  %v5154_v63 = vshrl.u32 %v8749_v48, 16  ;;  %9576 = vst [vmem:[#allocation25_spill] sm:$0xff] %v8818_v28  ;;  %9577 = vst [vmem:[#allocation21_spill] sm:$0xff] %v8828_v21  ;;  %v4964_v49 = vrot.slane %v4962_v39, 4  ;;  %v5168_v40 = vshll.u32 %v6200_v25, 16  ;;  %v5174_v15 = vshll.u32 %v8818_v28, 16 }
 0x26f   : > { %6404 = vmatpush3.bf16.xpose.msra.mxu1 %v8575_v36  ;;  %6474 = vmatpush3.bf16.xpose.msra.mxu0 %v8639_v43  ;;  %v5160_v36 = vshll.u32 %v8760_v47, 16  ;;  %v4958_v43 = vshll.u32 %v8766_v59, 16  ;;  %v4955_v16 = vor.u32 %v4954_v44, %v4951_v17  ;;  %v4968_v53 = vshll.u32 %v8828_v21, 16  ;;  %v419_v59 = vld [vmem:[#allocation2 + $0xd4] sm:$0x1]  ;;  %vm9589_vm3 = vmmov %vm9458_vm0 }
 0x270   : > { %6643 = vmatprep.subr.msk.bf16.mxu1 %vm9571_vm9, %v6760_v1  ;;  %6674 = vmatprep.subr.msk.bf16.mxu0 %vm9572_vm11, %v8661_v32  ;;  %v8808_v32 = vrot.slane %v4944_v60, 5  ;;  %v8816_v1 = vrot.slane %v5150_v23, 5  ;;  %v5147_v60 = vor.u32 %v8787_v62, %v8785_v27  ;;  %v8826_v22 = vrot.slane %v5154_v63, 4  ;;  %v6762_v63 = vld [vmem:[#allocation2 + $0x90] sm:$0xff]   ;;  %v8853_v44 = vld [vmem:[#allocation2 + $0x68] sm:$0x1]  ;;  %vm9590_vm9 = vmmov %vm9458_vm0 }
 0x271   : > { %6489 = vmatprep.mubr.msk.bf16.mxu0 %vm9575_vm7, %v8771_v33  ;;  %v5165_v33 = vshrl.u32 %v6200_v25, 16  ;;  %v8832_v23 = vrot.slane %v5160_v36, 5  ;;  %v8834_v41 = vrot.slane %v4958_v43, 5  ;;  %v5178_v27 = vshrl.u32 %v8818_v28, 16  ;;  %v6203_v28 = vld [vmem:[#allocation2 + $0xcc] sm:$0xf]  ;;  %vm9591_vm11 = vmmov %vm9458_vm0 }
 0x272   : > { %v4947_v45 = vsel %vm7876_vm1, %v8806_v11, %v8808_v32  ;;  %v4973_v62 = vshrl.u32 %v6176_v0, 16  ;;  %v4976_v36 = vshll.u32 %v6176_v0, 16  ;;  %v4982_v43 = vshll.u32 %v8830_v34, 16  ;;  %v8861_v48 = vld [vmem:[#allocation2 + $0xc8] sm:$0x1]  ;;  %vm9593_vm6 = vmmov %vm9458_vm0 }
 0x273   : > { %v5157_v39 = vor.u32 %v8826_v22, %v8816_v1  ;;  %v5167_v25 = vrot.slane %v5165_v33, 4  ;;  %v4986_v32 = vshrl.u32 %v8830_v34, 16  ;;  %v4965_v0 = vor.u32 %v4964_v49, %v8834_v41  ;;  %v8859_v34 = vld [vmem:[#allocation2 + $0xd0] sm:$0xf]  ;;  %9581 = vst [vmem:[#allocation7_spill] sm:$0xff] %v8861_v48  ;;  %vm9599_vm7 = vmmov %vm9458_vm0 }
 0x274   : > { %v4975_v11 = vrot.slane %v4973_v62, 4  ;;  %v5170_v17 = vrot.slane %v5168_v40, 5  ;;  %v8855_v21 = vrot.slane %v5174_v15, 5  ;;  %v5180_v22 = vrot.slane %v5178_v27, 4  ;;  %v6179_v27 = vld [vmem:[#allocation2 + $0x6c] sm:$0xf] }
 0x275   : > { %v4988_v33 = vrot.slane %v4986_v32, 4  ;;  %v420_v62 = vsel %vm9476_vm5, 0, %v419_v59  ;;  %v4970_v47 = vrot.slane %v4968_v53, 5  ;;  %v5189_v40 = vshrl.u32 %v6203_v28, 16  ;;  %vm9582_vm5 = vmmov %vm9458_vm0 }
 0x276   : > { %421 = vst [vmem:[#allocation2 + $0xd4] sm:$0x1] %v420_v62  ;;  %v5184_v49 = vshll.u32 %v8861_v48, 16  ;;  %v4992_v15 = vshll.u32 %v8853_v44, 16  ;;  %v4966_v32 = vrot.slane %v4965_v0, 4  ;;  %v5171_v37 = vor.u32 %v5170_v17, %v5167_v25  ;;  %v6769_v25 = vld [vmem:[#allocation2 + $0x54] sm:$0xff]  }
 0x277   : > { %6406 = vmatpush3.bf16.xpose.msra.mxu1 %v8619_v7  ;;  %6476 = vmatpush3.bf16.xpose.msra.mxu0 %v8687_v54  ;;  %v4978_v7 = vrot.slane %v4976_v36, 5  ;;  %v4984_v54 = vrot.slane %v4982_v43, 5  ;;  %v5192_v43 = vshll.u32 %v6203_v28, 16  ;;  %v5198_v42 = vshll.u32 %v8859_v34, 16 }
 0x278   : > { %6644 = vmatprep.subr.msk.bf16.mxu1 %vm9579_vm13, %v6762_v63  ;;  %6675 = vmatprep.subr.msk.bf16.mxu0 %vm9580_vm15, %v8736_v46  ;;  %v4956_v63 = vrot.slane %v4955_v16, 4  ;;  %v5202_v59 = vshrl.u32 %v8859_v34, 16  ;;  %v5181_v53 = vor.u32 %v5180_v22, %v8855_v21  ;;  %v5191_v6 = vrot.slane %v5189_v40, 4  ;;  %v8884_v40 = vld [vmem:[#allocation2 + $0x74] sm:$0x1]  ;;  %vm9600_vm13 = vmmov %vm9458_vm0 }
 0x279   : > { %v4979_v46 = vor.u32 %v4978_v7, %v4975_v11  ;;  %v4989_v36 = vor.u32 %v4988_v33, %v4984_v54  ;;  %v5194_v11 = vrot.slane %v5192_v43, 5  ;;  %v6764_v7 = vld [vmem:[#allocation2 + $0x9c] sm:$0xff]   ;;  %v6211_v62 = vcombine.low %v4937_v19, %v4947_v45  ;;  %vm9606_vm15 = vmmov %vm9458_vm0 }
 0x27a   : > { %v5148_v12 = vrot.slane %v5147_v60, 4  ;;  %v4997_v48 = vshrl.u32 %v6179_v27, 16  ;;  %v5000_v33 = vshll.u32 %v6179_v27, 16  ;;  %v5158_v28 = vrot.slane %v5157_v39, 4 }
 0x27b   : > { %v4980_v16 = vrot.slane %v4979_v46, 4  ;;  %v4961_v0 = vsel %vm7876_vm1, %v4956_v63, %v8834_v41  ;;  %v4990_v17 = vrot.slane %v4989_v36, 4  ;;  %v4994_v22 = vrot.slane %v4992_v15, 5  ;;  %v8873_v46 = vld [vmem:[#allocation2 + $0x70] sm:$0xf] }
 0x27c   : > { %v5186_v19 = vrot.slane %v5184_v49, 5  ;;  %v5204_v60 = vrot.slane %v5202_v59, 4  ;;  %v5172_v45 = vrot.slane %v5171_v37, 4  ;;  %v5182_v39 = vrot.slane %v5181_v53, 4  ;;  %v6771_v49 = vld [vmem:[#allocation2 + $0x60] sm:$0xff]  }
 0x27d   : > { %v4985_v41 = vsel %vm7876_vm1, %v4980_v16, %v4984_v54  ;;  %v5195_v63 = vor.u32 %v5194_v11, %v5191_v6  ;;  %v4999_v36 = vrot.slane %v4997_v48, 4  ;;  %v5002_v15 = vrot.slane %v5000_v33, 5  ;;  %v8918_v11 = vld [vmem:[#allocation2 + $0x78] sm:$0xe] }
 0x27e   : > { %v5006_v43 = vshll.u32 %v8873_v46, 16  ;;  %v9585_v37 = vsel %vm7876_vm1, %v8762_v24, %v8714_v13  ;;  %v8899_v6 = vsel %vm9586_vm8, %v6769_v25, 0  ;;  %v4995_v27 = vsel %vm7876_vm1, %v4990_v17, %v4994_v22  ;;  %v6225_v25 = vld [vmem:[#allocation2 + $0x24] sm:$0xe]  ;;  %vm9614_vm8 = vmmov %vm9458_vm0 }
 0x27f   : > { %6408 = vmatpush3.bf16.xpose.msra.mxu1 %v8669_v29  ;;  %6478 = vmatpush3.bf16.xpose.msra.mxu0 %v8752_v50  ;;  %v4971_v29 = vsel %vm7876_vm1, %v4966_v32, %v4970_v47  ;;  %v8880_v50 = vrot.slane %v5198_v42, 5  ;;  %v9584_v47 = vsel %vm7876_vm1, %v8775_v38, %v8758_v2  ;;  %v5278_v32 = vsel %vm9587_vm10, %v6211_v62, 0  ;;  %v8907_v42 = vld [vmem:[#allocation2 + $0xd4] sm:$0x1]  ;;  %vm9615_vm10 = vmmov %vm9458_vm0 }
 0x280   : > { %6645 = vmatprep.subr.msk.bf16.mxu1 %vm9582_vm5, %v6764_v7  ;;  %6676 = vmatprep.subr.msk.bf16.mxu0 %vm9583_vm2, %v8754_v31  ;;  %v5010_v31 = vshrl.u32 %v8873_v46, 16  ;;  %v6219_v54 = vcombine.low %v9585_v37, %v9584_v47  ;;  %v6212_v48 = vcombine.low %v4961_v0, %v4971_v29  ;;  %v5153_v2 = vsel %vm7876_vm1, %v5148_v12, %v8816_v1  ;;  %v6766_v7 = vld [vmem:[#allocation2 + $0xa8] sm:$0xff]   ;;  %vm9610_vm5 = vmmov %vm9458_vm0 }
 0x281   : > { %v6213_v38 = vcombine.low %v4985_v41, %v4995_v27  ;;  %v5205_v13 = vor.u32 %v5204_v60, %v8880_v50  ;;  %v5177_v24 = vsel %vm7876_vm1, %v5172_v45, %v8855_v21  ;;  %v5187_v59 = vsel %vm7876_vm1, %v5182_v39, %v5186_v19  ;;  %v6234_v39 = vld [vmem:[#allocation2 + $0x90] sm:$0xe]  ;;  %vm9612_vm2 = vmmov %vm9458_vm0 }
 0x282   : > { %v8915_v53 = vrot.slane %v5195_v63, 4  ;;  %v5016_v16 = vshll.u32 %v8884_v40, 16  ;;  %v5163_v12 = vsel %vm7876_vm1, %v5158_v28, %v8832_v23  ;;  %v5003_v1 = vor.u32 %v5002_v15, %v4999_v36 }
 0x283   : > { %v8923_v62 = vrot.slane %v5006_v43, 5  ;;  %v5012_v33 = vrot.slane %v5010_v31, 4  ;;  %v6220_v21 = vcombine.low %v5153_v2, %v5163_v12  ;;  %v8928_v0 = vsel %vm9588_vm4, %v6212_v48, 0  ;;  %v6226_v43 = vld [vmem:[#allocation2 + $0x30] sm:$0xe]  ;;  %vm9616_vm4 = vmmov %vm9458_vm0 }
 0x284   : > { %v8931_v17 = vsel %vm9458_vm0, %v6771_v49, 0  ;;  %v5208_v22 = vshll.u32 %v8907_v42, 16  ;;  %v8936_v23 = vcombine.low %v5177_v24, %v5187_v59  ;;  %v8939_v28 = vsel %vm9591_vm11, %v6213_v38, 0  ;;  %v6235_v48 = vld [vmem:[#allocation2 + $0x9c] sm:$0xe]  ;;  %vm9620_vm11 = vmmov %vm9458_vm0 }
 0x285   : > { %v5201_v29 = vsel %vm7876_vm1, %v8915_v53, %v8880_v50  ;;  %v8948_v19 = vrot.slane %v5016_v16, 5  ;;  %v6241_v60 = vrot.slane %v6225_v25, 9  ;;  %v5429_v45 = vrot.slane %v8544_v35, 5  ;;  %v6227_v59 = vld [vmem:[#allocation2 + $0x3c] sm:$0xe]  ;;  %v6768_v16 = vld [vmem:[#allocation2 + $0xb4] sm:$0xff]  }
 0x286   : > { %v8951_v41 = vrot.slane %v5003_v1, 4  ;;  %v5013_v63 = vor.u32 %v5012_v33, %v8923_v62  ;;  %v5478_v36 = vrot.slane %v8516_v56, 5  ;;  %v5432_v15 = vrot.slane %v8579_v61, 5 }
 0x287   : > { %6410 = vmatpush3.bf16.xpose.msra.mxu1 %v8739_v51  ;;  %6480 = vmatpush3.bf16.xpose.msra.mxu0 %v8800_v26  ;;  %v8941_v51 = vrot.slane %v5205_v13, 4  ;;  %v6248_v26 = vrot.slane %v8918_v11, 9  ;;  %v8956_v31 = vrot.slane %v5208_v22, 5  ;;  %v5481_v47 = vrot.slane %v8546_v14, 5 }
 0x288   : > { %6646 = vmatprep.subr.msk.bf16.mxu1 %vm9589_vm3, %v6766_v7  ;;  %6677 = vmatprep.subr.msk.bf16.mxu0 %vm9590_vm9, %v6219_v54  ;;  %v5422_v37 = vrot.slane %v8518_v20, 5  ;;  %v5431_v54 = vrot.slane %v5429_v45, 4  ;;  %v8962_v35 = vsel %vm8091_vm12, %v6241_v60, %v5429_v45  ;;  %v6250_v49 = vrot.slane %v6234_v39, 9  ;;  %v6236_v60 = vld [vmem:[#allocation2 + $0xa8] sm:$0xe]  ;;  %vm9617_vm3 = vmmov %vm9458_vm0 }
 0x289   : > { %v5492_v27 = vrot.slane %v8583_v52, 5  ;;  %v5495_v2 = vrot.slane %v8621_v18, 5  ;;  %v6242_v38 = vrot.slane %v6226_v43, 9  ;;  %v5436_v13 = vrot.slane %v8612_v3, 5  ;;  %v6228_v39 = vld [vmem:[#allocation2 + $0x48] sm:$0xe]  ;;  %vm9619_vm9 = vmmov %vm9458_vm0 }
 0x28a   : > { %v8968_v61 = vsel %vm8091_vm12, %v5431_v54, %v5432_v15  ;;  %v5439_v24 = vrot.slane %v8653_v5, 5  ;;  %v5009_v7 = vsel %vm7876_vm1, %v8951_v41, %v8923_v62  ;;  %v6251_v12 = vrot.slane %v6235_v48, 9 }
 0x28b   : > { %v6258_v52 = vcombine.low %v8962_v35, %v8968_v61  ;;  %v5494_v18 = vrot.slane %v5492_v27, 4  ;;  %v8979_v1 = vrot.slane %v5013_v63, 4  ;;  %v5438_v3 = vrot.slane %v5436_v13, 4 }
 0x28c   : > { %v5499_v5 = vrot.slane %v8643_v4, 5  ;;  %v5502_v33 = vrot.slane %v8672_v58, 5  ;;  %v8987_v25 = vsel %vm8091_vm12, %v6250_v49, %v5492_v27  ;;  %v8998_v58 = vsel %vm8091_vm12, %v6242_v38, %v5436_v13  ;;  %v9594_v27 = vld [vmem:[#allocation37_spill] sm:$0xff]  ;;  %v6237_v38 = vld [vmem:[#allocation2 + $0xb4] sm:$0xe] }
 0x28d   : > { %v8991_v22 = vsel %vm8091_vm12, %v5494_v18, %v5495_v2  ;;  %v5446_v43 = vrot.slane %v8695_v55, 5  ;;  %v6252_v48 = vrot.slane %v6236_v60, 9  ;;  %v5506_v49 = vrot.slane %v8682_v8, 5  ;;  %v9596_v60 = vld [vmem:[#allocation18_spill] sm:$0xff]  ;;  %v6239_v18 = vld [vmem:[#allocation2 + $0xcc] sm:$0xe] }
 0x28e   : > { %v6267_v4 = vcombine.low %v8987_v25, %v8991_v22  ;;  %v5501_v45 = vrot.slane %v5499_v5, 4  ;;  %v5509_v2 = vrot.slane %v9594_v27, 5  ;;  %v5467_v53 = vrot.slane %v8853_v44, 5 }
 0x28f   : > { %6412 = vmatpush3.bf16.xpose.msra.mxu1 %v8794_v30  ;;  %6482 = vmatpush3.bf16.xpose.msra.mxu0 %v5278_v32  ;;  %v6243_v30 = vrot.slane %v6227_v59, 9  ;;  %v5443_v32 = vrot.slane %v8651_v9, 5  ;;  %v9008_v9 = vsel %vm8091_vm12, %v6251_v12, %v5499_v5  ;;  %v6244_v59 = vrot.slane %v6228_v39, 9  ;;  %v6238_v39 = vld [vmem:[#allocation2 + $0xc0] sm:$0xe] }
 0x290   : > { %6647 = vmatprep.subr.msk.bf16.mxu1 %vm9592_vm14, %v6768_v16  ;;  %6678 = vmatprep.subr.msk.bf16.mxu0 %vm9593_vm6, %v6220_v21  ;;  %v9002_v21 = vsel %vm8091_vm12, %v5438_v3, %v5439_v24  ;;  %v9013_v54 = vsel %vm8091_vm12, %v5501_v45, %v5502_v33  ;;  %v6770_v16 = vld [vmem:[#allocation2 + $0xc0] sm:$0xff]   ;;  %v9031_v8 = vsel %vm8091_vm12, %v6252_v48, %v5506_v49  ;;  %v5508_v12 = vrot.slane %v5506_v49, 4  ;;  %v6229_v33 = vld [vmem:[#allocation2 + $0x54] sm:$0xe]  ;;  %vm9622_vm14 = vmmov %vm9458_vm0 }
 0x291   : > { %v6259_v63 = vcombine.low %v8998_v58, %v9002_v21  ;;  %v5445_v15 = vrot.slane %v5443_v32, 4  ;;  %v6268_v13 = vcombine.low %v9008_v9, %v9013_v54  ;;  %v9021_v24 = vsel %vm8091_vm12, %v6243_v30, %v5443_v32  ;;  %v9595_v3 = vld [vmem:[#allocation36_spill] sm:$0xff]  ;;  %v9597_v45 = vld [vmem:[#allocation38_spill] sm:$0xff]  ;;  %vm9624_vm6 = vmmov %vm9458_vm0 }
 0x292   : > { %v5450_v5 = vrot.slane %v9595_v3, 5  ;;  %v5453_v30 = vrot.slane %v9596_v60, 5  ;;  %v6253_v32 = vrot.slane %v6237_v38, 9  ;;  %v5513_v27 = vrot.slane %v9597_v45, 5  ;;  %v6230_v45 = vld [vmem:[#allocation2 + $0x60] sm:$0xe] }
 0x293   : > { %v9025_v55 = vsel %vm8091_vm12, %v5445_v15, %v5446_v43  ;;  %v9598_v15 = vld [vmem:[#allocation19_spill] sm:$0xff]  ;;  %v5211_v48 = vsel %vm7876_vm1, %v8941_v51, %v8956_v31  ;;  %v9045_v49 = vsel %vm8091_vm12, %v5508_v12, %v5509_v2  ;;  %v6245_v31 = vrot.slane %v6229_v33, 9 }
 0x294   : > { %v5516_v43 = vrot.slane %v9598_v15, 5  ;;  %v9049_v38 = vsel %vm8091_vm12, %v6244_v59, %v5450_v5  ;;  %v5452_v3 = vrot.slane %v5450_v5, 4  ;;  %v5515_v51 = vrot.slane %v5513_v27, 4  ;;  %v9601_v59 = vld [vmem:[#allocation39_spill] sm:$0xff]  ;;  %v9602_v5 = vld [vmem:[#allocation21_spill] sm:$0xff] }
 0x295   : > { %v5457_v12 = vrot.slane %v9601_v59, 5  ;;  %v6254_v60 = vrot.slane %v6238_v39, 9  ;;  %v9604_v33 = vld [vmem:[#allocation7_spill] sm:$0xff]  ;;  %v5479_v14 = vsel %vm8091_vm12, %v6248_v26, %v5478_v36  ;;  %v5424_v41 = vrot.slane %v5422_v37, 4 }
 0x296   : > { %v9062_v2 = vsel %vm8091_vm12, %v5452_v3, %v5453_v30  ;;  %v9070_v15 = vsel %vm8091_vm12, %v5515_v51, %v5516_v43  ;;  %v6222_v30 = vcombine.low %v5201_v29, %v5211_v48  ;;  %v6255_v29 = vrot.slane %v6239_v18, 9 }
 0x297   : > { %6414 = vmatpush3.bf16.xpose.msra.mxu1 %v8899_v6  ;;  %6484 = vmatpush3.bf16.xpose.msra.mxu0 %v8928_v0  ;;  %v9058_v0 = vsel %vm8091_vm12, %v6253_v32, %v5513_v27  ;;  %v9603_v32 = vld [vmem:[#allocation25_spill] sm:$0xff]  ;;  %v5523_v6 = vrot.slane %v9604_v33, 5  ;;  %v9083_v3 = vsel %vm8091_vm12, %v6245_v31, %v5457_v12  ;;  %v5459_v43 = vrot.slane %v5457_v12, 4 }
 0x298   : > { %6648 = vmatprep.subr.msk.bf16.mxu1 %vm9599_vm7, %v6770_v16  ;;  %6679 = vmatprep.subr.msk.bf16.mxu0 %vm9600_vm13, %v8936_v23  ;;  %v5460_v16 = vrot.slane %v9602_v5, 5  ;;  %v6261_v23 = vcombine.low %v9049_v38, %v9062_v2  ;;  %v5520_v27 = vrot.slane %v9603_v32, 5  ;;  %v6270_v39 = vcombine.low %v9058_v0, %v9070_v15  ;;  %v9605_v32 = vld [vmem:[#allocation40_spill] sm:$0xff]  ;;  %v6231_v31 = vld [vmem:[#allocation2 + $0x6c] sm:$0xe]  ;;  %vm9625_vm7 = vmmov %vm9458_vm0 }
 0x299   : > { %v6246_v5 = vrot.slane %v6230_v45, 9  ;;  %v5464_v33 = vrot.slane %v9605_v32, 5  ;;  %v5527_v48 = vrot.slane %v8859_v34, 5  ;;  %v5480_v12 = vrot.slane %v5478_v36, 4  ;;  %v6224_v32 = vld [vmem:[#allocation2 + $0x18] sm:$0xe]  ;;  %vm9626_vm13 = vmmov %vm9458_vm0 }
 0x29a   : > { %v9087_v51 = vsel %vm8091_vm12, %v6254_v60, %v5520_v27  ;;  %v5522_v59 = vrot.slane %v5520_v27, 4  ;;  %v9092_v50 = vsel %vm8091_vm12, %v5459_v43, %v5460_v16  ;;  %v5530_v16 = vrot.slane %v8907_v42, 5 }
 0x29b   : > { %v6262_v60 = vcombine.low %v9083_v3, %v9092_v50  ;;  %v5466_v27 = vrot.slane %v5464_v33, 4  ;;  %v9110_v34 = vsel %vm8091_vm12, %v6255_v29, %v5527_v48  ;;  %v5529_v18 = vrot.slane %v5527_v48, 4  ;;  %v6813_v29 = vld [vmem:[#allocation2 + $0x88] sm:$0xf] }
 0x29c   : > { %v9102_v45 = vsel %vm8091_vm12, %v5522_v59, %v5523_v6  ;;  %v5465_v6 = vsel %vm8091_vm12, %v6246_v5, %v5464_v33  ;;  %v6247_v43 = vrot.slane %v6231_v31, 9  ;;  %v5485_v48 = vrot.slane %v6813_v29, 5 }
 0x29d   : > { %v6271_v44 = vcombine.low %v9087_v51, %v9102_v45  ;;  %v5019_v51 = vsel %vm7876_vm1, %v8979_v1, %v8948_v19  ;;  %v5531_v42 = vsel %vm8091_vm12, %v5529_v18, %v5530_v16  ;;  %v5482_v19 = vsel %vm8091_vm12, %v5480_v12, %v5481_v47  ;;  %v9607_v1 = vld [vmem:[#allocation11_spill] sm:$0xff]  ;;  %vm9609_vm1 = vmmov %vm9458_vm0  ;;  %v6233_v45 = vld [vmem:[#allocation2 + $0x84] sm:$0xe] }
 0x29e   : > { %v6214_v5 = vcombine.low %v5009_v7, %v5019_v51  ;;  %v6240_v62 = vrot.slane %v6224_v32, 9  ;;  %v9608_v7 = vld [vmem:[#allocation17_spill] sm:$0xff]  ;;  %v6265_v12 = vcombine.low %v5479_v14, %v5482_v19  ;;  %v5487_v11 = vrot.slane %v5485_v48, 4 }
 0x29f   : > { %6416 = vmatpush3.bf16.xpose.msra.mxu1 %v8931_v17  ;;  %6486 = vmatpush3.bf16.xpose.msra.mxu0 %v8939_v28  ;;  %v5468_v17 = vsel %vm8091_vm12, %v5466_v27, %v5467_v53  ;;  %v5471_v28 = vrot.slane %v8873_v46, 5  ;;  %v6272_v46 = vcombine.low %v9110_v34, %v5531_v42  ;;  %v5425_v53 = vrot.slane %v9607_v1, 5  ;;  %v9611_v27 = vld [vmem:[#allocation16_spill] sm:$0xff] }
 0x2a0   : > { %6680 = vmatprep.subr.msk.bf16.mxu0 %vm9606_vm15, %v6222_v30  ;;  %v6263_v59 = vcombine.low %v5465_v6, %v5468_v17  ;;  %v5474_v30 = vrot.slane %v8884_v40, 5  ;;  %v5287_v31 = vsel %vm9610_vm5, %v6214_v5, 0  ;;  %v5488_v34 = vrot.slane %v9611_v27, 5  ;;  %v6256_v6 = vld [vmem:[%s9230_s4 + $0x10] sm:$0x3]  ;;  %vm9627_vm15 = vmmov %vm9458_vm0 }
 0x2a1   : > { %v5473_v33 = vrot.slane %v5471_v28, 4  ;;  %v5472_v57 = vsel %vm8091_vm12, %v6247_v43, %v5471_v28  ;;  %v5426_v56 = vsel %vm8091_vm12, %v5424_v41, %v5425_v53  ;;  %v5423_v26 = vsel %vm8091_vm12, %v6240_v62, %v5422_v37  ;;  %v9613_v43 = vld [vmem:[#allocation5_spill] sm:$0xff]  ;;  %vm9629_vm5 = vmmov %vm9458_vm0 }
 0x2a2   : > { %v6249_v36 = vrot.slane %v6233_v45, 9  ;;  %v6257_v18 = vcombine.low %v5423_v26, %v5426_v56  ;;  %v5489_v16 = vsel %vm8091_vm12, %v5487_v11, %v5488_v34  ;;  %v5589_v37 = vsel %vm9617_vm3, %v6258_v52, 0 }
 0x2a3   : > { %v5475_v40 = vsel %vm8091_vm12, %v5473_v33, %v5474_v30  ;;  %v5592_v10 = vsel %vm9619_vm9, %v6259_v63, 0  ;;  %v9621_v35 = vcombine.low %v9021_v24, %v9025_v55  ;;  %v9623_v52 = vcombine.low %v9031_v8, %v9045_v49 }
 0x2a4   : > { %v6264_v47 = vcombine.low %v5472_v57, %v5475_v40  ;;  %v5486_v17 = vsel %vm8091_vm12, %v6249_v36, %v5485_v48  ;;  %v5586_v20 = vsel %vm9615_vm10, %v6257_v18, 0  ;;  %vm9618_vm12 = vmmov %vm9458_vm0  ;;  %v5598_v25 = vsel %vm9625_vm7, %v6261_v23, 0 }
 0x2a5   : > { %v6266_v28 = vcombine.low %v5486_v17, %v5489_v16  ;;  %v5595_v61 = vsel %vm9622_vm14, %v9621_v35, 0  ;;  %v5601_v22 = vsel %vm9627_vm15, %v6262_v60, 0  ;;  %vm9632_vm10 = vmmov %vm9458_vm0 }
 0x2a6   : > { %6418 = vmatmul.mubr.msk.bf16.vlgmr.msra.gmra.mrb[48].mxu1 %vm9609_vm1, %v9608_v7  ;;  %vm9628_vm1 = vmmov %vm9458_vm0 }
 0x2a7   : > { %6488 = vmatpush3.bf16.xpose.msra.mxu0 %v5287_v31 }
 0x2a8   : > { %6681 = vmatprep.subr.msk.bf16.mxu0 %vm9612_vm2, %v6265_v12  ;;  %vm9630_vm2 = vmmov %vm9458_vm0 }
 0x2ae   : > { %6490 = vmatmul.mubr.msk.bf16.vlgmr.msra.gmra.mrb[16].mxu0 %vm9614_vm8, %v9613_v43  ;;  %vm9631_vm8 = vmmov %vm9458_vm0 }
 0x2af   : > { %6492 = vmatpush3.bf16.xpose.msra.mxu0 %v5586_v20  ;;  %6507 = vmatprep.mubr.msk.bf16.mxu0 %vm9616_vm4, %v6256_v6  ;;  %v5607_v58 = vsel %vm9631_vm8, %v6264_v47, 0 }
 0x2b0   : > { %6682 = vmatprep.subr.msk.bf16.mxu0 %vm9458_vm0, %v6266_v28 }
 0x2b7   : > { %6494 = vmatpush3.bf16.xpose.msra.mxu0 %v5589_v37 }
 0x2b8   : > { %6683 = vmatprep.subr.msk.bf16.mxu0 %vm9618_vm12, %v6267_v4  ;;  %v5604_v4 = vsel %vm9629_vm5, %v6263_v59, 0 }
 0x2bf   : > { %6496 = vmatpush3.bf16.xpose.msra.mxu0 %v5592_v10 }
 0x2c0   : > { %6684 = vmatprep.subr.msk.bf16.mxu0 %vm9620_vm11, %v6268_v13 }
 0x2c7   : > { %6498 = vmatpush3.bf16.xpose.msra.mxu0 %v5595_v61 }
 0x2c8   : > { %6685 = vmatprep.subr.msk.bf16.mxu0 %vm9624_vm6, %v9623_v52 }
 0x2cf   : > { %6500 = vmatpush3.bf16.xpose.msra.mxu0 %v5598_v25 }
 0x2d0   : > { %6686 = vmatprep.subr.msk.bf16.mxu0 %vm9626_vm13, %v6270_v39 }
 0x2d7   : > { %6502 = vmatpush3.bf16.xpose.msra.mxu0 %v5601_v22 }
 0x2d8   : > { %6687 = vmatprep.subr.msk.bf16.mxu0 %vm9628_vm1, %v6271_v44 }
 0x2df   : > { %6504 = vmatpush3.bf16.xpose.msra.mxu0 %v5604_v4 }
 0x2e0   : > { %6688 = vmatprep.subr.msk.bf16.mxu0 %vm9630_vm2, %v6272_v46 }
 0x2e7   : > { %6506 = vmatpush3.bf16.xpose.msra.mxu0 %v5607_v58 }
 0x2ea   : > { %v2345_v13 = vpop.permute.xlu0 %2344 }
 0x2ee   : > { %6508 = vmatmul.mubr.msk.bf16.vlgmr.msra.gmra.mrb[16].mxu0 %vm9632_vm10, %v6256_v6 }
 0x379   : > { %v3663_v21 = vpop.f32.mrb[48].mxu1 }
 0x37a   : > { %v3665_v63 = vpop.f32.mrb[49].mxu1  ;;  %v6581_v24 = vadd.f32 %v3663_v21, %v2345_v13 }
 0x37b   : > { %v3667_v9 = vpop.f32.mrb[50].mxu1  ;;  %v6583_v55 = vadd.f32 %v3665_v63, %v2345_v13 }
 0x37c   : > { %v3668_v54 = vpop.f32.mrb[51].mxu1 }
 0x3c1   : > { %v5667_v8 = vpop.f32.mrb[16].mxu0 }
 0x3c2   : > { %v6582_v49 = vadd.f32 %v6581_v24, %v5667_v8  ;;  %v5669_v38 = vpop.f32.mrb[17].mxu0 }
 0x3c3   : > { %v6584_v0 = vadd.f32 %v6583_v55, %v5669_v38  ;;  %v5671_v2 = vpop.f32.mrb[18].mxu0 }
 0x3c4   : > { %v5676_v23 = vmax.f32 %v6582_v49, 0.0  ;;  %v5672_v15 = vpop.f32.mrb[19].mxu0 }
 0x3c5   : > { %v5677_v39 = vmax.f32 %v6584_v0, 0.0 }
 0x3c7   : > { %v5680_v3 = vcombine.low %v5676_v23, %v5677_v39 }
 0x3c9   : > { %5682 = vst [vmem:[%s293_s11] sm:$0xff] %v5680_v3 }
 0x3ca PF: > { %s16_s23 = sadd.s32 1, %s6836_s23   ;;  %s9633_s21 = smov %s6832_s22 }
 0x3cb   : > { %p13_p5 = scmp.ge.s32.totalorder %s16_s23, 4   ;;  %s9634_s22 = smov %s9636_s24 }
 0x3cd   :  { %15 = sbr.rel (!%p13_p5) target bundleno = 2 (0x2), region = 97 }

</bundles_post_ra>
